<compile_context>
chip_gen: v6e
topology: v6e:2x2x1
jax: 0.10.0
libtpu: 0.0.40
codegen_flags: <defaults>
</compile_context>

<pallas_src>
import numpy as np
import jax
import jax.numpy as jnp
from jax import lax
from jax.experimental import pallas as pl
from jax.experimental.pallas import tpu as pltpu

_KNUTH_ITERS = 20           # P[Poisson(8) > 20] ~ 1e-4 -> enough for lam < 8
_SMALL_LAMBDA = 8.0
_STRIP_ROWS = 8             # in-kernel strip height (f32 sublane tile)
_TWO_PI = 6.283185307179586

# All np scalars -> become jaxpr literals, never captured constants.
_GOLDEN = np.uint32(0x9E3779B9)
_LCG_A = np.uint32(747796405)
_LCG_C = np.uint32(2891336453)
_EXP_ONE = np.uint32(0x3F800000)


def _mix32(x):
    """lowbias32-style integer hash (uint32 -> uint32). Used once per element."""
    x = x ^ (x >> 16)
    x = x * np.uint32(0x7FEB352D)
    x = x ^ (x >> 15)
    x = x * np.uint32(0x846CA68B)
    x = x ^ (x >> 16)
    return x


def _lcg_next(state):
    """One LCG step (mul + add) per uniform draw."""
    return state * _LCG_A + _LCG_C


def _u01(state):
    """Uniform [0,1) float32 from the top 23 bits of the LCG state."""
    mant = (state >> 9) | _EXP_ONE                    # [1.0, 2.0) bit pattern
    return lax.bitcast_convert_type(mant, jnp.float32) - 1.0


def _knuth_poisson(lam, state):
    """Knuth product-of-uniforms sampler, valid for small lam (< ~8)."""
    L = jnp.exp(-lam)

    def body(i, carry):
        p, k, st = carry
        st = _lcg_next(st)
        p = p * _u01(st)
        k = k + jnp.where(p > L, 1.0, 0.0)
        return p, k, st

    _, k, state = lax.fori_loop(
        0, _KNUTH_ITERS, body,
        (jnp.ones_like(lam), jnp.zeros_like(lam), state),
        unroll=True)
    return k, state


def _gaussian_poisson(lam, state):
    """Rounded-normal N(lam, lam) approximation for lam >= ~8 (Box-Muller).

    TODO(synk): numpy Generator.poisson's exact large-lambda rejection sampler
    has no cheap Pallas equivalent; this is the standard statistically
    equivalent approximation (different RNG stream). floor() loses integer
    precision for lam > 2^24.
    """
    s1 = _lcg_next(state)
    s2 = _lcg_next(s1)
    u1 = _u01(s1)
    u2 = _u01(s2)
    r = jnp.sqrt(-2.0 * jnp.log(1.0 - u1))            # 1 - u1 in (0, 1]
    z = r * jnp.cos(_TWO_PI * u2)
    return jnp.maximum(jnp.floor(lam + jnp.sqrt(lam) * z + 0.5), 0.0)


def _poisson_kernel(seed_ref, vals_ref, maxv_ref, img_ref, out_ref):
    vals = vals_ref[0]
    max_v = maxv_ref[0]
    inv_vals = 1.0 / vals
    seed_u = seed_ref[0].astype(jnp.uint32)

    rows_t, lanes = img_ref.shape                     # static Python ints
    n_strips = rows_t // _STRIP_ROWS
    strip_elems = _STRIP_ROWS * lanes

    # Per-strip local element-id template (hoisted; broadcasts are not CSE'd).
    row_idx = lax.broadcasted_iota(jnp.uint32, (_STRIP_ROWS, lanes), 0)
    col_idx = lax.broadcasted_iota(jnp.uint32, (_STRIP_ROWS, lanes), 1)
    local_id = row_idx * np.uint32(lanes) + col_idx

    # uint32 arithmetic throughout -> no signed-int32 overflow for huge images.
    tile_base = pl.program_id(0).astype(jnp.uint32) * np.uint32(rows_t * lanes)
    key_salt = seed_u * _GOLDEN

    @pl.loop(0, n_strips)
    def _(s):
        r0 = pl.multiple_of(s * _STRIP_ROWS, _STRIP_ROWS)
        lam = img_ref[pl.ds(r0, _STRIP_ROWS), :] * vals

        elem_id = (tile_base
                   + s.astype(jnp.uint32) * np.uint32(strip_elems)
                   + local_id)
        state0 = _mix32(elem_id ^ key_salt)           # per-element LCG seed

        all_large = jnp.min(lam) >= _SMALL_LAMBDA

        def write(sample):
            out_ref[pl.ds(r0, _STRIP_ROWS), :] = jnp.clip(
                sample * inv_vals, 0.0, max_v)

        @pl.when(all_large)
        def _():
            write(_gaussian_poisson(lam, state0))

        @pl.when(jnp.logical_not(all_large))
        def _():
            k_small, st = _knuth_poisson(lam, state0)
            k_large = _gaussian_poisson(lam, st)      # EUP-slot filler, ~free
            write(jnp.where(lam < _SMALL_LAMBDA, k_small, k_large))


def _round_up(a, b):
    return ((a + b - 1) // b) * b


def poisson_noise(img, seed=1, vals=None, max_tile_rows=256, lanes=512):
    """JAX/Pallas port of Poisson.forward. Returns float32, same shape as img."""
    orig_shape = img.shape
    flat = img.reshape(-1).astype(jnp.float32)        # f32 keeps (8,128) tiling simple
    n = int(flat.shape[0])

    # ---- host-side glue (plain JAX): global max and vals ----
    max_v = jnp.max(flat)
    if vals is None:
        # TODO(synk): O(n log n) sort for #unique dominates for megapixel
        # images; for integer-valued sources pass `vals` or use a histogram.
        s = jnp.sort(flat)
        n_unique = 1 + jnp.sum((s[1:] != s[:-1]).astype(jnp.int32))
        vals = 2.0 ** jnp.ceil(jnp.log2(n_unique.astype(jnp.float32)))
    vals = jnp.asarray(vals, jnp.float32)

    # ---- lane-dense 2-D slab; >= 2 grid steps when possible (v7x megacore) ----
    rows = -(-n // lanes)
    rows8 = _round_up(rows, _STRIP_ROWS)
    if rows8 >= 2 * _STRIP_ROWS:
        grid_steps = max(2, -(-rows8 // max_tile_rows))
    else:
        grid_steps = 1
    tile_rows = _round_up(-(-rows8 // grid_steps), _STRIP_ROWS)
    padded_rows = tile_rows * grid_steps

    pad = padded_rows * lanes - n
    # Pad with max_v so the tail strips stay on the cheap Gaussian path.
    flat_p = jnp.pad(flat, (0, pad), constant_values=max_v) if pad else flat
    img2d = flat_p.reshape(padded_rows, lanes)

    seed_arr = jnp.array([seed], dtype=jnp.int32)
    vals_arr = jnp.reshape(vals, (1,)).astype(jnp.float32)
    maxv_arr = jnp.reshape(max_v, (1,)).astype(jnp.float32)

    out2d = pl.pallas_call(
        _poisson_kernel,
        out_shape=jax.ShapeDtypeStruct((padded_rows, lanes), jnp.float32),
        grid=(grid_steps,),
        in_specs=[
            pl.BlockSpec(memory_space=pltpu.MemorySpace.SMEM),    # seed
            pl.BlockSpec(memory_space=pltpu.MemorySpace.SMEM),    # vals
            pl.BlockSpec(memory_space=pltpu.MemorySpace.SMEM),    # max_v
            pl.BlockSpec((tile_rows, lanes), lambda i: (i, 0)),   # image tile
        ],
        out_specs=pl.BlockSpec((tile_rows, lanes), lambda i: (i, 0)),
        compiler_params=pltpu.CompilerParams(
            dimension_semantics=("parallel",)),
    )(seed_arr, vals_arr, maxv_arr, img2d)

    return out2d.reshape(-1)[:n].reshape(orig_shape)


if __name__ == "__main__":
    key = jax.random.PRNGKey(0)
    x = jax.random.uniform(key, (2, 4, 16, 16), dtype=jnp.float32)  # NCHW

    y = poisson_noise(x, seed=1)
    y = jax.block_until_ready(y)

    assert y.shape == x.shape
    assert y.dtype == jnp.float32
    assert bool(jnp.all(jnp.isfinite(y)))
    assert bool(jnp.all(y >= 0.0))
    assert bool(jnp.all(y <= jnp.max(x) + 1e-6))      # clipped to [0, max_v]

    print("KERNEL_OK")
</pallas_src>

<mosaic_0001>
module attributes {stable_mosaic.version = 11 : i64} {
  func.func @_poisson_kernel(%arg0: i32, %arg1: memref<1xi32, #tpu.memory_space<smem>>, %arg2: memref<1xf32, #tpu.memory_space<smem>>, %arg3: memref<1xf32, #tpu.memory_space<smem>>, %arg4: memref<8x512xf32, #tpu.memory_space<vmem>>, %arg5: memref<8x512xf32, #tpu.memory_space<vmem>>) attributes {dimension_semantics = [#tpu.dimension_semantics<parallel>], iteration_bounds = array<i64: 1>, scalar_prefetch = 0 : i64, scratch_operands = 0 : i64, tpu.core_type = #tpu.core_type<tc>, window_params = [{transform_indices = @transform_0, window_bounds = array<i64: 1>}, {transform_indices = @transform_1, window_bounds = array<i64: 1>}, {transform_indices = @transform_2, window_bounds = array<i64: 1>}, {transform_indices = @transform_3, window_bounds = array<i64: 8, 512>}, {transform_indices = @transform_4, window_bounds = array<i64: 8, 512>}]} {
    %c0 = arith.constant 0 : index
    %0 = memref.load %arg2[%c0] : memref<1xf32, #tpu.memory_space<smem>>
    %c0_0 = arith.constant 0 : index
    %1 = memref.load %arg3[%c0_0] : memref<1xf32, #tpu.memory_space<smem>>
    %cst = arith.constant 1.000000e+00 : f32
    %2 = arith.divf %cst, %0 : f32
    %c0_1 = arith.constant 0 : index
    %3 = memref.load %arg1[%c0_1] : memref<1xi32, #tpu.memory_space<smem>>
    %4 = tpu.iota {dimensions = array<i32: 0>} : vector<8x512xi32>
    %5 = tpu.iota {dimensions = array<i32: 1>} : vector<8x512xi32>
    %c512_i32 = arith.constant 512 : i32
    %6 = vector.broadcast %c512_i32 : i32 to vector<8x512xi32>
    %7 = arith.muli %4, %6 : vector<8x512xi32>
    %8 = arith.addi %7, %5 : vector<8x512xi32>
    %c4096_i32 = arith.constant 4096 : i32
    %9 = arith.muli %arg0, %c4096_i32 : i32
    %c-1640531527_i32 = arith.constant -1640531527 : i32
    %10 = arith.muli %3, %c-1640531527_i32 : i32
    %c0_i32 = arith.constant 0 : i32
    %c1_i32 = arith.constant 1 : i32
    %11 = arith.muli %c0_i32, %c1_i32 : i32
    %c0_i32_2 = arith.constant 0 : i32
    %12 = arith.addi %c0_i32_2, %11 : i32
    %c8_i32 = arith.constant 8 : i32
    %13 = arith.muli %12, %c8_i32 : i32
    %14 = tpu.assume_multiple %13, 8 : i32
    %15 = arith.index_cast %14 : i32 to index
    %c0_3 = arith.constant 0 : index
    %16 = vector.load %arg4[%15, %c0_3] : memref<8x512xf32, #tpu.memory_space<vmem>>, vector<8x512xf32>
    %17 = vector.broadcast %0 : f32 to vector<8x512xf32>
    %18 = arith.mulf %16, %17 : vector<8x512xf32>
    %c4096_i32_4 = arith.constant 4096 : i32
    %19 = arith.muli %12, %c4096_i32_4 : i32
    %20 = arith.addi %9, %19 : i32
    %21 = vector.broadcast %20 : i32 to vector<8x512xi32>
    %22 = arith.addi %21, %8 : vector<8x512xi32>
    %23 = vector.broadcast %10 : i32 to vector<8x512xi32>
    %24 = arith.xori %22, %23 : vector<8x512xi32>
    %c16_i32 = arith.constant 16 : i32
    %25 = vector.broadcast %c16_i32 : i32 to vector<8x512xi32>
    %26 = arith.shrui %24, %25 : vector<8x512xi32>
    %27 = arith.xori %24, %26 : vector<8x512xi32>
    %c2146121005_i32 = arith.constant 2146121005 : i32
    %28 = vector.broadcast %c2146121005_i32 : i32 to vector<8x512xi32>
    %29 = arith.muli %27, %28 : vector<8x512xi32>
    %c15_i32 = arith.constant 15 : i32
    %30 = vector.broadcast %c15_i32 : i32 to vector<8x512xi32>
    %31 = arith.shrui %29, %30 : vector<8x512xi32>
    %32 = arith.xori %29, %31 : vector<8x512xi32>
    %c-2073254261_i32 = arith.constant -2073254261 : i32
    %33 = vector.broadcast %c-2073254261_i32 : i32 to vector<8x512xi32>
    %34 = arith.muli %32, %33 : vector<8x512xi32>
    %c16_i32_5 = arith.constant 16 : i32
    %35 = vector.broadcast %c16_i32_5 : i32 to vector<8x512xi32>
    %36 = arith.shrui %34, %35 : vector<8x512xi32>
    %37 = arith.xori %34, %36 : vector<8x512xi32>
    %38 = vector.shape_cast %18 : vector<8x512xf32> to vector<1x8x512xf32>
    %cst_6 = arith.constant dense<0x7F800000> : vector<1xf32>
    %39 = vector.multi_reduction <minimumf>, %38, %cst_6 [1, 2] : vector<1x8x512xf32> to vector<1xf32>
    %40 = vector.shape_cast %39 : vector<1xf32> to vector<1x1x1xf32>
    %41 = vector.extract %40[0, 0, 0] : f32 from vector<1x1x1xf32>
    %cst_7 = arith.constant 8.000000e+00 : f32
    %42 = arith.cmpf oge, %41, %cst_7 : f32
    %43 = arith.extui %42 : i1 to i32
    %c0_i32_8 = arith.constant 0 : i32
    %44 = arith.cmpi ne, %43, %c0_i32_8 : i32
    scf.if %44 {
      %c747796405_i32 = arith.constant 747796405 : i32
      %48 = vector.broadcast %c747796405_i32 : i32 to vector<8x512xi32>
      %49 = arith.muli %37, %48 : vector<8x512xi32>
      %c-1403630843_i32 = arith.constant -1403630843 : i32
      %50 = vector.broadcast %c-1403630843_i32 : i32 to vector<8x512xi32>
      %51 = arith.addi %49, %50 : vector<8x512xi32>
      %c747796405_i32_11 = arith.constant 747796405 : i32
      %52 = vector.broadcast %c747796405_i32_11 : i32 to vector<8x512xi32>
      %53 = arith.muli %51, %52 : vector<8x512xi32>
      %c-1403630843_i32_12 = arith.constant -1403630843 : i32
      %54 = vector.broadcast %c-1403630843_i32_12 : i32 to vector<8x512xi32>
      %55 = arith.addi %53, %54 : vector<8x512xi32>
      %c9_i32 = arith.constant 9 : i32
      %56 = vector.broadcast %c9_i32 : i32 to vector<8x512xi32>
      %57 = arith.shrui %51, %56 : vector<8x512xi32>
      %c1065353216_i32 = arith.constant 1065353216 : i32
      %58 = vector.broadcast %c1065353216_i32 : i32 to vector<8x512xi32>
      %59 = arith.ori %57, %58 : vector<8x512xi32>
      %60 = tpu.bitcast %59 : vector<8x512xi32> -> vector<8x512xf32>
      %cst_13 = arith.constant 1.000000e+00 : f32
      %61 = vector.broadcast %cst_13 : f32 to vector<8x512xf32>
      %62 = arith.subf %60, %61 : vector<8x512xf32>
      %c9_i32_14 = arith.constant 9 : i32
      %63 = vector.broadcast %c9_i32_14 : i32 to vector<8x512xi32>
      %64 = arith.shrui %55, %63 : vector<8x512xi32>
      %c1065353216_i32_15 = arith.constant 1065353216 : i32
      %65 = vector.broadcast %c1065353216_i32_15 : i32 to vector<8x512xi32>
      %66 = arith.ori %64, %65 : vector<8x512xi32>
      %67 = tpu.bitcast %66 : vector<8x512xi32> -> vector<8x512xf32>
      %cst_16 = arith.constant 1.000000e+00 : f32
      %68 = vector.broadcast %cst_16 : f32 to vector<8x512xf32>
      %69 = arith.subf %67, %68 : vector<8x512xf32>
      %cst_17 = arith.constant 1.000000e+00 : f32
      %70 = vector.broadcast %cst_17 : f32 to vector<8x512xf32>
      %71 = arith.subf %70, %62 : vector<8x512xf32>
      %72 = math.log %71 : vector<8x512xf32>
      %cst_18 = arith.constant -2.000000e+00 : f32
      %73 = vector.broadcast %cst_18 : f32 to vector<8x512xf32>
      %74 = arith.mulf %73, %72 : vector<8x512xf32>
      %75 = math.sqrt %74 : vector<8x512xf32>
      %cst_19 = arith.constant 6.28318548 : f32
      %76 = vector.broadcast %cst_19 : f32 to vector<8x512xf32>
      %77 = arith.mulf %76, %69 : vector<8x512xf32>
      %78 = math.cos %77 : vector<8x512xf32>
      %79 = arith.mulf %75, %78 : vector<8x512xf32>
      %80 = math.sqrt %18 : vector<8x512xf32>
      %81 = arith.mulf %80, %79 : vector<8x512xf32>
      %82 = arith.addf %18, %81 : vector<8x512xf32>
      %cst_20 = arith.constant 5.000000e-01 : f32
      %83 = vector.broadcast %cst_20 : f32 to vector<8x512xf32>
      %84 = arith.addf %82, %83 : vector<8x512xf32>
      %85 = math.floor %84 : vector<8x512xf32>
      %cst_21 = arith.constant 0.000000e+00 : f32
      %86 = vector.broadcast %cst_21 : f32 to vector<8x512xf32>
      %87 = arith.maximumf %85, %86 : vector<8x512xf32>
      %88 = vector.broadcast %2 : f32 to vector<8x512xf32>
      %89 = arith.mulf %87, %88 : vector<8x512xf32>
      %cst_22 = arith.constant 0.000000e+00 : f32
      %90 = vector.broadcast %cst_22 : f32 to vector<8x512xf32>
      %91 = arith.maximumf %90, %89 : vector<8x512xf32>
      %92 = vector.broadcast %1 : f32 to vector<8x512xf32>
      %93 = arith.minimumf %92, %91 : vector<8x512xf32>
      %94 = arith.index_cast %14 : i32 to index
      %c0_23 = arith.constant 0 : index
      %95 = vector.load %arg5[%94, %c0_23] : memref<8x512xf32, #tpu.memory_space<vmem>>, vector<8x512xf32>
      tpu.vector_store %arg5[%94, %c0_23], %93 {strides = array<i32>} : memref<8x512xf32, #tpu.memory_space<vmem>>, vector<8x512xf32>,
    } else {
    }
    %true = arith.constant true
    %45 = arith.xori %42, %true : i1
    %46 = arith.extui %45 : i1 to i32
    %c0_i32_9 = arith.constant 0 : i32
    %47 = arith.cmpi ne, %46, %c0_i32_9 : i32
    scf.if %47 {
      %cst_11 = arith.constant 0.000000e+00 : f32
      %48 = vector.broadcast %cst_11 : f32 to vector<8x512xf32>
      %49 = arith.subf %48, %18 : vector<8x512xf32>
      %50 = math.exp %49 : vector<8x512xf32>
      %cst_12 = arith.constant 1.000000e+00 : f32
      %51 = vector.broadcast %cst_12 : f32 to vector<8x512xf32>
      %cst_13 = arith.constant 0.000000e+00 : f32
      %52 = vector.broadcast %cst_13 : f32 to vector<8x512xf32>
      %c0_i32_14 = arith.constant 0 : i32
      %c747796405_i32 = arith.constant 747796405 : i32
      %53 = vector.broadcast %c747796405_i32 : i32 to vector<8x512xi32>
      %54 = arith.muli %37, %53 : vector<8x512xi32>
      %c-1403630843_i32 = arith.constant -1403630843 : i32
      %55 = vector.broadcast %c-1403630843_i32 : i32 to vector<8x512xi32>
      %56 = arith.addi %54, %55 : vector<8x512xi32>
      %c9_i32 = arith.constant 9 : i32
      %57 = vector.broadcast %c9_i32 : i32 to vector<8x512xi32>
      %58 = arith.shrui %56, %57 : vector<8x512xi32>
      %c1065353216_i32 = arith.constant 1065353216 : i32
      %59 = vector.broadcast %c1065353216_i32 : i32 to vector<8x512xi32>
      %60 = arith.ori %58, %59 : vector<8x512xi32>
      %61 = tpu.bitcast %60 : vector<8x512xi32> -> vector<8x512xf32>
      %cst_15 = arith.constant 1.000000e+00 : f32
      %62 = vector.broadcast %cst_15 : f32 to vector<8x512xf32>
      %63 = arith.subf %61, %62 : vector<8x512xf32>
      %64 = arith.mulf %51, %63 : vector<8x512xf32>
      %65 = arith.cmpf ogt, %64, %50 : vector<8x512xf32>
      %cst_16 = arith.constant 1.000000e+00 : f32
      %cst_17 = arith.constant 0.000000e+00 : f32
      %66 = vector.broadcast %cst_16 : f32 to vector<8x512xf32>
      %67 = vector.broadcast %cst_17 : f32 to vector<8x512xf32>
      %68 = arith.select %65, %66, %67 : vector<8x512xi1>, vector<8x512xf32>
      %69 = arith.addf %52, %68 : vector<8x512xf32>
      %c1_i32_18 = arith.constant 1 : i32
      %c747796405_i32_19 = arith.constant 747796405 : i32
      %70 = vector.broadcast %c747796405_i32_19 : i32 to vector<8x512xi32>
      %71 = arith.muli %56, %70 : vector<8x512xi32>
      %c-1403630843_i32_20 = arith.constant -1403630843 : i32
      %72 = vector.broadcast %c-1403630843_i32_20 : i32 to vector<8x512xi32>
      %73 = arith.addi %71, %72 : vector<8x512xi32>
      %c9_i32_21 = arith.constant 9 : i32
      %74 = vector.broadcast %c9_i32_21 : i32 to vector<8x512xi32>
      %75 = arith.shrui %73, %74 : vector<8x512xi32>
      %c1065353216_i32_22 = arith.constant 1065353216 : i32
      %76 = vector.broadcast %c1065353216_i32_22 : i32 to vector<8x512xi32>
      %77 = arith.ori %75, %76 : vector<8x512xi32>
      %78 = tpu.bitcast %77 : vector<8x512xi32> -> vector<8x512xf32>
      %cst_23 = arith.constant 1.000000e+00 : f32
      %79 = vector.broadcast %cst_23 : f32 to vector<8x512xf32>
      %80 = arith.subf %78, %79 : vector<8x512xf32>
      %81 = arith.mulf %64, %80 : vector<8x512xf32>
      %82 = arith.cmpf ogt, %81, %50 : vector<8x512xf32>
      %cst_24 = arith.constant 1.000000e+00 : f32
      %cst_25 = arith.constant 0.000000e+00 : f32
      %83 = vector.broadcast %cst_24 : f32 to vector<8x512xf32>
      %84 = vector.broadcast %cst_25 : f32 to vector<8x512xf32>
      %85 = arith.select %82, %83, %84 : vector<8x512xi1>, vector<8x512xf32>
      %86 = arith.addf %69, %85 : vector<8x512xf32>
      %c2_i32 = arith.constant 2 : i32
      %c747796405_i32_26 = arith.constant 747796405 : i32
      %87 = vector.broadcast %c747796405_i32_26 : i32 to vector<8x512xi32>
      %88 = arith.muli %73, %87 : vector<8x512xi32>
      %c-1403630843_i32_27 = arith.constant -1403630843 : i32
      %89 = vector.broadcast %c-1403630843_i32_27 : i32 to vector<8x512xi32>
      %90 = arith.addi %88, %89 : vector<8x512xi32>
      %c9_i32_28 = arith.constant 9 : i32
      %91 = vector.broadcast %c9_i32_28 : i32 to vector<8x512xi32>
      %92 = arith.shrui %90, %91 : vector<8x512xi32>
      %c1065353216_i32_29 = arith.constant 1065353216 : i32
      %93 = vector.broadcast %c1065353216_i32_29 : i32 to vector<8x512xi32>
      %94 = arith.ori %92, %93 : vector<8x512xi32>
      %95 = tpu.bitcast %94 : vector<8x512xi32> -> vector<8x512xf32>
      %cst_30 = arith.constant 1.000000e+00 : f32
      %96 = vector.broadcast %cst_30 : f32 to vector<8x512xf32>
      %97 = arith.subf %95, %96 : vector<8x512xf32>
      %98 = arith.mulf %81, %97 : vector<8x512xf32>
      %99 = arith.cmpf ogt, %98, %50 : vector<8x512xf32>
      %cst_31 = arith.constant 1.000000e+00 : f32
      %cst_32 = arith.constant 0.000000e+00 : f32
      %100 = vector.broadcast %cst_31 : f32 to vector<8x512xf32>
      %101 = vector.broadcast %cst_32 : f32 to vector<8x512xf32>
      %102 = arith.select %99, %100, %101 : vector<8x512xi1>, vector<8x512xf32>
      %103 = arith.addf %86, %102 : vector<8x512xf32>
      %c3_i32 = arith.constant 3 : i32
      %c747796405_i32_33 = arith.constant 747796405 : i32
      %104 = vector.broadcast %c747796405_i32_33 : i32 to vector<8x512xi32>
      %105 = arith.muli %90, %104 : vector<8x512xi32>
      %c-1403630843_i32_34 = arith.constant -1403630843 : i32
      %106 = vector.broadcast %c-1403630843_i32_34 : i32 to vector<8x512xi32>
      %107 = arith.addi %105, %106 : vector<8x512xi32>
      %c9_i32_35 = arith.constant 9 : i32
      %108 = vector.broadcast %c9_i32_35 : i32 to vector<8x512xi32>
      %109 = arith.shrui %107, %108 : vector<8x512xi32>
      %c1065353216_i32_36 = arith.constant 1065353216 : i32
      %110 = vector.broadcast %c1065353216_i32_36 : i32 to vector<8x512xi32>
      %111 = arith.ori %109, %110 : vector<8x512xi32>
      %112 = tpu.bitcast %111 : vector<8x512xi32> -> vector<8x512xf32>
      %cst_37 = arith.constant 1.000000e+00 : f32
      %113 = vector.broadcast %cst_37 : f32 to vector<8x512xf32>
      %114 = arith.subf %112, %113 : vector<8x512xf32>
      %115 = arith.mulf %98, %114 : vector<8x512xf32>
      %116 = arith.cmpf ogt, %115, %50 : vector<8x512xf32>
      %cst_38 = arith.constant 1.000000e+00 : f32
      %cst_39 = arith.constant 0.000000e+00 : f32
      %117 = vector.broadcast %cst_38 : f32 to vector<8x512xf32>
      %118 = vector.broadcast %cst_39 : f32 to vector<8x512xf32>
      %119 = arith.select %116, %117, %118 : vector<8x512xi1>, vector<8x512xf32>
      %120 = arith.addf %103, %119 : vector<8x512xf32>
      %c4_i32 = arith.constant 4 : i32
      %c747796405_i32_40 = arith.constant 747796405 : i32
      %121 = vector.broadcast %c747796405_i32_40 : i32 to vector<8x512xi32>
      %122 = arith.muli %107, %121 : vector<8x512xi32>
      %c-1403630843_i32_41 = arith.constant -1403630843 : i32
      %123 = vector.broadcast %c-1403630843_i32_41 : i32 to vector<8x512xi32>
      %124 = arith.addi %122, %123 : vector<8x512xi32>
      %c9_i32_42 = arith.constant 9 : i32
      %125 = vector.broadcast %c9_i32_42 : i32 to vector<8x512xi32>
      %126 = arith.shrui %124, %125 : vector<8x512xi32>
      %c1065353216_i32_43 = arith.constant 1065353216 : i32
      %127 = vector.broadcast %c1065353216_i32_43 : i32 to vector<8x512xi32>
      %128 = arith.ori %126, %127 : vector<8x512xi32>
      %129 = tpu.bitcast %128 : vector<8x512xi32> -> vector<8x512xf32>
      %cst_44 = arith.constant 1.000000e+00 : f32
      %130 = vector.broadcast %cst_44 : f32 to vector<8x512xf32>
      %131 = arith.subf %129, %130 : vector<8x512xf32>
      %132 = arith.mulf %115, %131 : vector<8x512xf32>
      %133 = arith.cmpf ogt, %132, %50 : vector<8x512xf32>
      %cst_45 = arith.constant 1.000000e+00 : f32
      %cst_46 = arith.constant 0.000000e+00 : f32
      %134 = vector.broadcast %cst_45 : f32 to vector<8x512xf32>
      %135 = vector.broadcast %cst_46 : f32 to vector<8x512xf32>
      %136 = arith.select %133, %134, %135 : vector<8x512xi1>, vector<8x512xf32>
      %137 = arith.addf %120, %136 : vector<8x512xf32>
      %c5_i32 = arith.constant 5 : i32
      %c747796405_i32_47 = arith.constant 747796405 : i32
      %138 = vector.broadcast %c747796405_i32_47 : i32 to vector<8x512xi32>
      %139 = arith.muli %124, %138 : vector<8x512xi32>
      %c-1403630843_i32_48 = arith.constant -1403630843 : i32
      %140 = vector.broadcast %c-1403630843_i32_48 : i32 to vector<8x512xi32>
      %141 = arith.addi %139, %140 : vector<8x512xi32>
      %c9_i32_49 = arith.constant 9 : i32
      %142 = vector.broadcast %c9_i32_49 : i32 to vector<8x512xi32>
      %143 = arith.shrui %141, %142 : vector<8x512xi32>
      %c1065353216_i32_50 = arith.constant 1065353216 : i32
      %144 = vector.broadcast %c1065353216_i32_50 : i32 to vector<8x512xi32>
      %145 = arith.ori %143, %144 : vector<8x512xi32>
      %146 = tpu.bitcast %145 : vector<8x512xi32> -> vector<8x512xf32>
      %cst_51 = arith.constant 1.000000e+00 : f32
      %147 = vector.broadcast %cst_51 : f32 to vector<8x512xf32>
      %148 = arith.subf %146, %147 : vector<8x512xf32>
      %149 = arith.mulf %132, %148 : vector<8x512xf32>
      %150 = arith.cmpf ogt, %149, %50 : vector<8x512xf32>
      %cst_52 = arith.constant 1.000000e+00 : f32
      %cst_53 = arith.constant 0.000000e+00 : f32
      %151 = vector.broadcast %cst_52 : f32 to vector<8x512xf32>
      %152 = vector.broadcast %cst_53 : f32 to vector<8x512xf32>
      %153 = arith.select %150, %151, %152 : vector<8x512xi1>, vector<8x512xf32>
      %154 = arith.addf %137, %153 : vector<8x512xf32>
      %c6_i32 = arith.constant 6 : i32
      %c747796405_i32_54 = arith.constant 747796405 : i32
      %155 = vector.broadcast %c747796405_i32_54 : i32 to vector<8x512xi32>
      %156 = arith.muli %141, %155 : vector<8x512xi32>
      %c-1403630843_i32_55 = arith.constant -1403630843 : i32
      %157 = vector.broadcast %c-1403630843_i32_55 : i32 to vector<8x512xi32>
      %158 = arith.addi %156, %157 : vector<8x512xi32>
      %c9_i32_56 = arith.constant 9 : i32
      %159 = vector.broadcast %c9_i32_56 : i32 to vector<8x512xi32>
      %160 = arith.shrui %158, %159 : vector<8x512xi32>
      %c1065353216_i32_57 = arith.constant 1065353216 : i32
      %161 = vector.broadcast %c1065353216_i32_57 : i32 to vector<8x512xi32>
      %162 = arith.ori %160, %161 : vector<8x512xi32>
      %163 = tpu.bitcast %162 : vector<8x512xi32> -> vector<8x512xf32>
      %cst_58 = arith.constant 1.000000e+00 : f32
      %164 = vector.broadcast %cst_58 : f32 to vector<8x512xf32>
      %165 = arith.subf %163, %164 : vector<8x512xf32>
      %166 = arith.mulf %149, %165 : vector<8x512xf32>
      %167 = arith.cmpf ogt, %166, %50 : vector<8x512xf32>
      %cst_59 = arith.constant 1.000000e+00 : f32
      %cst_60 = arith.constant 0.000000e+00 : f32
      %168 = vector.broadcast %cst_59 : f32 to vector<8x512xf32>
      %169 = vector.broadcast %cst_60 : f32 to vector<8x512xf32>
      %170 = arith.select %167, %168, %169 : vector<8x512xi1>, vector<8x512xf32>
      %171 = arith.addf %154, %170 : vector<8x512xf32>
      %c7_i32 = arith.constant 7 : i32
      %c747796405_i32_61 = arith.constant 747796405 : i32
      %172 = vector.broadcast %c747796405_i32_61 : i32 to vector<8x512xi32>
      %173 = arith.muli %158, %172 : vector<8x512xi32>
      %c-1403630843_i32_62 = arith.constant -1403630843 : i32
      %174 = vector.broadcast %c-1403630843_i32_62 : i32 to vector<8x512xi32>
      %175 = arith.addi %173, %174 : vector<8x512xi32>
      %c9_i32_63 = arith.constant 9 : i32
      %176 = vector.broadcast %c9_i32_63 : i32 to vector<8x512xi32>
      %177 = arith.shrui %175, %176 : vector<8x512xi32>
      %c1065353216_i32_64 = arith.constant 1065353216 : i32
      %178 = vector.broadcast %c1065353216_i32_64 : i32 to vector<8x512xi32>
      %179 = arith.ori %177, %178 : vector<8x512xi32>
      %180 = tpu.bitcast %179 : vector<8x512xi32> -> vector<8x512xf32>
      %cst_65 = arith.constant 1.000000e+00 : f32
      %181 = vector.broadcast %cst_65 : f32 to vector<8x512xf32>
      %182 = arith.subf %180, %181 : vector<8x512xf32>
      %183 = arith.mulf %166, %182 : vector<8x512xf32>
      %184 = arith.cmpf ogt, %183, %50 : vector<8x512xf32>
      %cst_66 = arith.constant 1.000000e+00 : f32
      %cst_67 = arith.constant 0.000000e+00 : f32
      %185 = vector.broadcast %cst_66 : f32 to vector<8x512xf32>
      %186 = vector.broadcast %cst_67 : f32 to vector<8x512xf32>
      %187 = arith.select %184, %185, %186 : vector<8x512xi1>, vector<8x512xf32>
      %188 = arith.addf %171, %187 : vector<8x512xf32>
      %c8_i32_68 = arith.constant 8 : i32
      %c747796405_i32_69 = arith.constant 747796405 : i32
      %189 = vector.broadcast %c747796405_i32_69 : i32 to vector<8x512xi32>
      %190 = arith.muli %175, %189 : vector<8x512xi32>
      %c-1403630843_i32_70 = arith.constant -1403630843 : i32
      %191 = vector.broadcast %c-1403630843_i32_70 : i32 to vector<8x512xi32>
      %192 = arith.addi %190, %191 : vector<8x512xi32>
      %c9_i32_71 = arith.constant 9 : i32
      %193 = vector.broadcast %c9_i32_71 : i32 to vector<8x512xi32>
      %194 = arith.shrui %192, %193 : vector<8x512xi32>
      %c1065353216_i32_72 = arith.constant 1065353216 : i32
      %195 = vector.broadcast %c1065353216_i32_72 : i32 to vector<8x512xi32>
      %196 = arith.ori %194, %195 : vector<8x512xi32>
      %197 = tpu.bitcast %196 : vector<8x512xi32> -> vector<8x512xf32>
      %cst_73 = arith.constant 1.000000e+00 : f32
      %198 = vector.broadcast %cst_73 : f32 to vector<8x512xf32>
      %199 = arith.subf %197, %198 : vector<8x512xf32>
      %200 = arith.mulf %183, %199 : vector<8x512xf32>
      %201 = arith.cmpf ogt, %200, %50 : vector<8x512xf32>
      %cst_74 = arith.constant 1.000000e+00 : f32
      %cst_75 = arith.constant 0.000000e+00 : f32
      %202 = vector.broadcast %cst_74 : f32 to vector<8x512xf32>
      %203 = vector.broadcast %cst_75 : f32 to vector<8x512xf32>
      %204 = arith.select %201, %202, %203 : vector<8x512xi1>, vector<8x512xf32>
      %205 = arith.addf %188, %204 : vector<8x512xf32>
      %c9_i32_76 = arith.constant 9 : i32
      %c747796405_i32_77 = arith.constant 747796405 : i32
      %206 = vector.broadcast %c747796405_i32_77 : i32 to vector<8x512xi32>
      %207 = arith.muli %192, %206 : vector<8x512xi32>
      %c-1403630843_i32_78 = arith.constant -1403630843 : i32
      %208 = vector.broadcast %c-1403630843_i32_78 : i32 to vector<8x512xi32>
      %209 = arith.addi %207, %208 : vector<8x512xi32>
      %c9_i32_79 = arith.constant 9 : i32
      %210 = vector.broadcast %c9_i32_79 : i32 to vector<8x512xi32>
      %211 = arith.shrui %209, %210 : vector<8x512xi32>
      %c1065353216_i32_80 = arith.constant 1065353216 : i32
      %212 = vector.broadcast %c1065353216_i32_80 : i32 to vector<8x512xi32>
      %213 = arith.ori %211, %212 : vector<8x512xi32>
      %214 = tpu.bitcast %213 : vector<8x512xi32> -> vector<8x512xf32>
      %cst_81 = arith.constant 1.000000e+00 : f32
      %215 = vector.broadcast %cst_81 : f32 to vector<8x512xf32>
      %216 = arith.subf %214, %215 : vector<8x512xf32>
      %217 = arith.mulf %200, %216 : vector<8x512xf32>
      %218 = arith.cmpf ogt, %217, %50 : vector<8x512xf32>
      %cst_82 = arith.constant 1.000000e+00 : f32
      %cst_83 = arith.constant 0.000000e+00 : f32
      %219 = vector.broadcast %cst_82 : f32 to vector<8x512xf32>
      %220 = vector.broadcast %cst_83 : f32 to vector<8x512xf32>
      %221 = arith.select %218, %219, %220 : vector<8x512xi1>, vector<8x512xf32>
      %222 = arith.addf %205, %221 : vector<8x512xf32>
      %c10_i32 = arith.constant 10 : i32
      %c747796405_i32_84 = arith.constant 747796405 : i32
      %223 = vector.broadcast %c747796405_i32_84 : i32 to vector<8x512xi32>
      %224 = arith.muli %209, %223 : vector<8x512xi32>
      %c-1403630843_i32_85 = arith.constant -1403630843 : i32
      %225 = vector.broadcast %c-1403630843_i32_85 : i32 to vector<8x512xi32>
      %226 = arith.addi %224, %225 : vector<8x512xi32>
      %c9_i32_86 = arith.constant 9 : i32
      %227 = vector.broadcast %c9_i32_86 : i32 to vector<8x512xi32>
      %228 = arith.shrui %226, %227 : vector<8x512xi32>
      %c1065353216_i32_87 = arith.constant 1065353216 : i32
      %229 = vector.broadcast %c1065353216_i32_87 : i32 to vector<8x512xi32>
      %230 = arith.ori %228, %229 : vector<8x512xi32>
      %231 = tpu.bitcast %230 : vector<8x512xi32> -> vector<8x512xf32>
      %cst_88 = arith.constant 1.000000e+00 : f32
      %232 = vector.broadcast %cst_88 : f32 to vector<8x512xf32>
      %233 = arith.subf %231, %232 : vector<8x512xf32>
      %234 = arith.mulf %217, %233 : vector<8x512xf32>
      %235 = arith.cmpf ogt, %234, %50 : vector<8x512xf32>
      %cst_89 = arith.constant 1.000000e+00 : f32
      %cst_90 = arith.constant 0.000000e+00 : f32
      %236 = vector.broadcast %cst_89 : f32 to vector<8x512xf32>
      %237 = vector.broadcast %cst_90 : f32 to vector<8x512xf32>
      %238 = arith.select %235, %236, %237 : vector<8x512xi1>, vector<8x512xf32>
      %239 = arith.addf %222, %238 : vector<8x512xf32>
      %c11_i32 = arith.constant 11 : i32
      %c747796405_i32_91 = arith.constant 747796405 : i32
      %240 = vector.broadcast %c747796405_i32_91 : i32 to vector<8x512xi32>
      %241 = arith.muli %226, %240 : vector<8x512xi32>
      %c-1403630843_i32_92 = arith.constant -1403630843 : i32
      %242 = vector.broadcast %c-1403630843_i32_92 : i32 to vector<8x512xi32>
      %243 = arith.addi %241, %242 : vector<8x512xi32>
      %c9_i32_93 = arith.constant 9 : i32
      %244 = vector.broadcast %c9_i32_93 : i32 to vector<8x512xi32>
      %245 = arith.shrui %243, %244 : vector<8x512xi32>
      %c1065353216_i32_94 = arith.constant 1065353216 : i32
      %246 = vector.broadcast %c1065353216_i32_94 : i32 to vector<8x512xi32>
      %247 = arith.ori %245, %246 : vector<8x512xi32>
      %248 = tpu.bitcast %247 : vector<8x512xi32> -> vector<8x512xf32>
      %cst_95 = arith.constant 1.000000e+00 : f32
      %249 = vector.broadcast %cst_95 : f32 to vector<8x512xf32>
      %250 = arith.subf %248, %249 : vector<8x512xf32>
      %251 = arith.mulf %234, %250 : vector<8x512xf32>
      %252 = arith.cmpf ogt, %251, %50 : vector<8x512xf32>
      %cst_96 = arith.constant 1.000000e+00 : f32
      %cst_97 = arith.constant 0.000000e+00 : f32
      %253 = vector.broadcast %cst_96 : f32 to vector<8x512xf32>
      %254 = vector.broadcast %cst_97 : f32 to vector<8x512xf32>
      %255 = arith.select %252, %253, %254 : vector<8x512xi1>, vector<8x512xf32>
      %256 = arith.addf %239, %255 : vector<8x512xf32>
      %c12_i32 = arith.constant 12 : i32
      %c747796405_i32_98 = arith.constant 747796405 : i32
      %257 = vector.broadcast %c747796405_i32_98 : i32 to vector<8x512xi32>
      %258 = arith.muli %243, %257 : vector<8x512xi32>
      %c-1403630843_i32_99 = arith.constant -1403630843 : i32
      %259 = vector.broadcast %c-1403630843_i32_99 : i32 to vector<8x512xi32>
      %260 = arith.addi %258, %259 : vector<8x512xi32>
      %c9_i32_100 = arith.constant 9 : i32
      %261 = vector.broadcast %c9_i32_100 : i32 to vector<8x512xi32>
      %262 = arith.shrui %260, %261 : vector<8x512xi32>
      %c1065353216_i32_101 = arith.constant 1065353216 : i32
      %263 = vector.broadcast %c1065353216_i32_101 : i32 to vector<8x512xi32>
      %264 = arith.ori %262, %263 : vector<8x512xi32>
      %265 = tpu.bitcast %264 : vector<8x512xi32> -> vector<8x512xf32>
      %cst_102 = arith.constant 1.000000e+00 : f32
      %266 = vector.broadcast %cst_102 : f32 to vector<8x512xf32>
      %267 = arith.subf %265, %266 : vector<8x512xf32>
      %268 = arith.mulf %251, %267 : vector<8x512xf32>
      %269 = arith.cmpf ogt, %268, %50 : vector<8x512xf32>
      %cst_103 = arith.constant 1.000000e+00 : f32
      %cst_104 = arith.constant 0.000000e+00 : f32
      %270 = vector.broadcast %cst_103 : f32 to vector<8x512xf32>
      %271 = vector.broadcast %cst_104 : f32 to vector<8x512xf32>
      %272 = arith.select %269, %270, %271 : vector<8x512xi1>, vector<8x512xf32>
      %273 = arith.addf %256, %272 : vector<8x512xf32>
      %c13_i32 = arith.constant 13 : i32
      %c747796405_i32_105 = arith.constant 747796405 : i32
      %274 = vector.broadcast %c747796405_i32_105 : i32 to vector<8x512xi32>
      %275 = arith.muli %260, %274 : vector<8x512xi32>
      %c-1403630843_i32_106 = arith.constant -1403630843 : i32
      %276 = vector.broadcast %c-1403630843_i32_106 : i32 to vector<8x512xi32>
      %277 = arith.addi %275, %276 : vector<8x512xi32>
      %c9_i32_107 = arith.constant 9 : i32
      %278 = vector.broadcast %c9_i32_107 : i32 to vector<8x512xi32>
      %279 = arith.shrui %277, %278 : vector<8x512xi32>
      %c1065353216_i32_108 = arith.constant 1065353216 : i32
      %280 = vector.broadcast %c1065353216_i32_108 : i32 to vector<8x512xi32>
      %281 = arith.ori %279, %280 : vector<8x512xi32>
      %282 = tpu.bitcast %281 : vector<8x512xi32> -> vector<8x512xf32>
      %cst_109 = arith.constant 1.000000e+00 : f32
      %283 = vector.broadcast %cst_109 : f32 to vector<8x512xf32>
      %284 = arith.subf %282, %283 : vector<8x512xf32>
      %285 = arith.mulf %268, %284 : vector<8x512xf32>
      %286 = arith.cmpf ogt, %285, %50 : vector<8x512xf32>
      %cst_110 = arith.constant 1.000000e+00 : f32
      %cst_111 = arith.constant 0.000000e+00 : f32
      %287 = vector.broadcast %cst_110 : f32 to vector<8x512xf32>
      %288 = vector.broadcast %cst_111 : f32 to vector<8x512xf32>
      %289 = arith.select %286, %287, %288 : vector<8x512xi1>, vector<8x512xf32>
      %290 = arith.addf %273, %289 : vector<8x512xf32>
      %c14_i32 = arith.constant 14 : i32
      %c747796405_i32_112 = arith.constant 747796405 : i32
      %291 = vector.broadcast %c747796405_i32_112 : i32 to vector<8x512xi32>
      %292 = arith.muli %277, %291 : vector<8x512xi32>
      %c-1403630843_i32_113 = arith.constant -1403630843 : i32
      %293 = vector.broadcast %c-1403630843_i32_113 : i32 to vector<8x512xi32>
      %294 = arith.addi %292, %293 : vector<8x512xi32>
      %c9_i32_114 = arith.constant 9 : i32
      %295 = vector.broadcast %c9_i32_114 : i32 to vector<8x512xi32>
      %296 = arith.shrui %294, %295 : vector<8x512xi32>
      %c1065353216_i32_115 = arith.constant 1065353216 : i32
      %297 = vector.broadcast %c1065353216_i32_115 : i32 to vector<8x512xi32>
      %298 = arith.ori %296, %297 : vector<8x512xi32>
      %299 = tpu.bitcast %298 : vector<8x512xi32> -> vector<8x512xf32>
      %cst_116 = arith.constant 1.000000e+00 : f32
      %300 = vector.broadcast %cst_116 : f32 to vector<8x512xf32>
      %301 = arith.subf %299, %300 : vector<8x512xf32>
      %302 = arith.mulf %285, %301 : vector<8x512xf32>
      %303 = arith.cmpf ogt, %302, %50 : vector<8x512xf32>
      %cst_117 = arith.constant 1.000000e+00 : f32
      %cst_118 = arith.constant 0.000000e+00 : f32
      %304 = vector.broadcast %cst_117 : f32 to vector<8x512xf32>
      %305 = vector.broadcast %cst_118 : f32 to vector<8x512xf32>
      %306 = arith.select %303, %304, %305 : vector<8x512xi1>, vector<8x512xf32>
      %307 = arith.addf %290, %306 : vector<8x512xf32>
      %c15_i32_119 = arith.constant 15 : i32
      %c747796405_i32_120 = arith.constant 747796405 : i32
      %308 = vector.broadcast %c747796405_i32_120 : i32 to vector<8x512xi32>
      %309 = arith.muli %294, %308 : vector<8x512xi32>
      %c-1403630843_i32_121 = arith.constant -1403630843 : i32
      %310 = vector.broadcast %c-1403630843_i32_121 : i32 to vector<8x512xi32>
      %311 = arith.addi %309, %310 : vector<8x512xi32>
      %c9_i32_122 = arith.constant 9 : i32
      %312 = vector.broadcast %c9_i32_122 : i32 to vector<8x512xi32>
      %313 = arith.shrui %311, %312 : vector<8x512xi32>
      %c1065353216_i32_123 = arith.constant 1065353216 : i32
      %314 = vector.broadcast %c1065353216_i32_123 : i32 to vector<8x512xi32>
      %315 = arith.ori %313, %314 : vector<8x512xi32>
      %316 = tpu.bitcast %315 : vector<8x512xi32> -> vector<8x512xf32>
      %cst_124 = arith.constant 1.000000e+00 : f32
      %317 = vector.broadcast %cst_124 : f32 to vector<8x512xf32>
      %318 = arith.subf %316, %317 : vector<8x512xf32>
      %319 = arith.mulf %302, %318 : vector<8x512xf32>
      %320 = arith.cmpf ogt, %319, %50 : vector<8x512xf32>
      %cst_125 = arith.constant 1.000000e+00 : f32
      %cst_126 = arith.constant 0.000000e+00 : f32
      %321 = vector.broadcast %cst_125 : f32 to vector<8x512xf32>
      %322 = vector.broadcast %cst_126 : f32 to vector<8x512xf32>
      %323 = arith.select %320, %321, %322 : vector<8x512xi1>, vector<8x512xf32>
      %324 = arith.addf %307, %323 : vector<8x512xf32>
      %c16_i32_127 = arith.constant 16 : i32
      %c747796405_i32_128 = arith.constant 747796405 : i32
      %325 = vector.broadcast %c747796405_i32_128 : i32 to vector<8x512xi32>
      %326 = arith.muli %311, %325 : vector<8x512xi32>
      %c-1403630843_i32_129 = arith.constant -1403630843 : i32
      %327 = vector.broadcast %c-1403630843_i32_129 : i32 to vector<8x512xi32>
      %328 = arith.addi %326, %327 : vector<8x512xi32>
      %c9_i32_130 = arith.constant 9 : i32
      %329 = vector.broadcast %c9_i32_130 : i32 to vector<8x512xi32>
      %330 = arith.shrui %328, %329 : vector<8x512xi32>
      %c1065353216_i32_131 = arith.constant 1065353216 : i32
      %331 = vector.broadcast %c1065353216_i32_131 : i32 to vector<8x512xi32>
      %332 = arith.ori %330, %331 : vector<8x512xi32>
      %333 = tpu.bitcast %332 : vector<8x512xi32> -> vector<8x512xf32>
      %cst_132 = arith.constant 1.000000e+00 : f32
      %334 = vector.broadcast %cst_132 : f32 to vector<8x512xf32>
      %335 = arith.subf %333, %334 : vector<8x512xf32>
      %336 = arith.mulf %319, %335 : vector<8x512xf32>
      %337 = arith.cmpf ogt, %336, %50 : vector<8x512xf32>
      %cst_133 = arith.constant 1.000000e+00 : f32
      %cst_134 = arith.constant 0.000000e+00 : f32
      %338 = vector.broadcast %cst_133 : f32 to vector<8x512xf32>
      %339 = vector.broadcast %cst_134 : f32 to vector<8x512xf32>
      %340 = arith.select %337, %338, %339 : vector<8x512xi1>, vector<8x512xf32>
      %341 = arith.addf %324, %340 : vector<8x512xf32>
      %c17_i32 = arith.constant 17 : i32
      %c747796405_i32_135 = arith.constant 747796405 : i32
      %342 = vector.broadcast %c747796405_i32_135 : i32 to vector<8x512xi32>
      %343 = arith.muli %328, %342 : vector<8x512xi32>
      %c-1403630843_i32_136 = arith.constant -1403630843 : i32
      %344 = vector.broadcast %c-1403630843_i32_136 : i32 to vector<8x512xi32>
      %345 = arith.addi %343, %344 : vector<8x512xi32>
      %c9_i32_137 = arith.constant 9 : i32
      %346 = vector.broadcast %c9_i32_137 : i32 to vector<8x512xi32>
      %347 = arith.shrui %345, %346 : vector<8x512xi32>
      %c1065353216_i32_138 = arith.constant 1065353216 : i32
      %348 = vector.broadcast %c1065353216_i32_138 : i32 to vector<8x512xi32>
      %349 = arith.ori %347, %348 : vector<8x512xi32>
      %350 = tpu.bitcast %349 : vector<8x512xi32> -> vector<8x512xf32>
      %cst_139 = arith.constant 1.000000e+00 : f32
      %351 = vector.broadcast %cst_139 : f32 to vector<8x512xf32>
      %352 = arith.subf %350, %351 : vector<8x512xf32>
      %353 = arith.mulf %336, %352 : vector<8x512xf32>
      %354 = arith.cmpf ogt, %353, %50 : vector<8x512xf32>
      %cst_140 = arith.constant 1.000000e+00 : f32
      %cst_141 = arith.constant 0.000000e+00 : f32
      %355 = vector.broadcast %cst_140 : f32 to vector<8x512xf32>
      %356 = vector.broadcast %cst_141 : f32 to vector<8x512xf32>
      %357 = arith.select %354, %355, %356 : vector<8x512xi1>, vector<8x512xf32>
      %358 = arith.addf %341, %357 : vector<8x512xf32>
      %c18_i32 = arith.constant 18 : i32
      %c747796405_i32_142 = arith.constant 747796405 : i32
      %359 = vector.broadcast %c747796405_i32_142 : i32 to vector<8x512xi32>
      %360 = arith.muli %345, %359 : vector<8x512xi32>
      %c-1403630843_i32_143 = arith.constant -1403630843 : i32
      %361 = vector.broadcast %c-1403630843_i32_143 : i32 to vector<8x512xi32>
      %362 = arith.addi %360, %361 : vector<8x512xi32>
      %c9_i32_144 = arith.constant 9 : i32
      %363 = vector.broadcast %c9_i32_144 : i32 to vector<8x512xi32>
      %364 = arith.shrui %362, %363 : vector<8x512xi32>
      %c1065353216_i32_145 = arith.constant 1065353216 : i32
      %365 = vector.broadcast %c1065353216_i32_145 : i32 to vector<8x512xi32>
      %366 = arith.ori %364, %365 : vector<8x512xi32>
      %367 = tpu.bitcast %366 : vector<8x512xi32> -> vector<8x512xf32>
      %cst_146 = arith.constant 1.000000e+00 : f32
      %368 = vector.broadcast %cst_146 : f32 to vector<8x512xf32>
      %369 = arith.subf %367, %368 : vector<8x512xf32>
      %370 = arith.mulf %353, %369 : vector<8x512xf32>
      %371 = arith.cmpf ogt, %370, %50 : vector<8x512xf32>
      %cst_147 = arith.constant 1.000000e+00 : f32
      %cst_148 = arith.constant 0.000000e+00 : f32
      %372 = vector.broadcast %cst_147 : f32 to vector<8x512xf32>
      %373 = vector.broadcast %cst_148 : f32 to vector<8x512xf32>
      %374 = arith.select %371, %372, %373 : vector<8x512xi1>, vector<8x512xf32>
      %375 = arith.addf %358, %374 : vector<8x512xf32>
      %c19_i32 = arith.constant 19 : i32
      %c747796405_i32_149 = arith.constant 747796405 : i32
      %376 = vector.broadcast %c747796405_i32_149 : i32 to vector<8x512xi32>
      %377 = arith.muli %362, %376 : vector<8x512xi32>
      %c-1403630843_i32_150 = arith.constant -1403630843 : i32
      %378 = vector.broadcast %c-1403630843_i32_150 : i32 to vector<8x512xi32>
      %379 = arith.addi %377, %378 : vector<8x512xi32>
      %c9_i32_151 = arith.constant 9 : i32
      %380 = vector.broadcast %c9_i32_151 : i32 to vector<8x512xi32>
      %381 = arith.shrui %379, %380 : vector<8x512xi32>
      %c1065353216_i32_152 = arith.constant 1065353216 : i32
      %382 = vector.broadcast %c1065353216_i32_152 : i32 to vector<8x512xi32>
      %383 = arith.ori %381, %382 : vector<8x512xi32>
      %384 = tpu.bitcast %383 : vector<8x512xi32> -> vector<8x512xf32>
      %cst_153 = arith.constant 1.000000e+00 : f32
      %385 = vector.broadcast %cst_153 : f32 to vector<8x512xf32>
      %386 = arith.subf %384, %385 : vector<8x512xf32>
      %387 = arith.mulf %370, %386 : vector<8x512xf32>
      %388 = arith.cmpf ogt, %387, %50 : vector<8x512xf32>
      %cst_154 = arith.constant 1.000000e+00 : f32
      %cst_155 = arith.constant 0.000000e+00 : f32
      %389 = vector.broadcast %cst_154 : f32 to vector<8x512xf32>
      %390 = vector.broadcast %cst_155 : f32 to vector<8x512xf32>
      %391 = arith.select %388, %389, %390 : vector<8x512xi1>, vector<8x512xf32>
      %392 = arith.addf %375, %391 : vector<8x512xf32>
      %c747796405_i32_156 = arith.constant 747796405 : i32
      %393 = vector.broadcast %c747796405_i32_156 : i32 to vector<8x512xi32>
      %394 = arith.muli %379, %393 : vector<8x512xi32>
      %c-1403630843_i32_157 = arith.constant -1403630843 : i32
      %395 = vector.broadcast %c-1403630843_i32_157 : i32 to vector<8x512xi32>
      %396 = arith.addi %394, %395 : vector<8x512xi32>
      %c747796405_i32_158 = arith.constant 747796405 : i32
      %397 = vector.broadcast %c747796405_i32_158 : i32 to vector<8x512xi32>
      %398 = arith.muli %396, %397 : vector<8x512xi32>
      %c-1403630843_i32_159 = arith.constant -1403630843 : i32
      %399 = vector.broadcast %c-1403630843_i32_159 : i32 to vector<8x512xi32>
      %400 = arith.addi %398, %399 : vector<8x512xi32>
      %c9_i32_160 = arith.constant 9 : i32
      %401 = vector.broadcast %c9_i32_160 : i32 to vector<8x512xi32>
      %402 = arith.shrui %396, %401 : vector<8x512xi32>
      %c1065353216_i32_161 = arith.constant 1065353216 : i32
      %403 = vector.broadcast %c1065353216_i32_161 : i32 to vector<8x512xi32>
      %404 = arith.ori %402, %403 : vector<8x512xi32>
      %405 = tpu.bitcast %404 : vector<8x512xi32> -> vector<8x512xf32>
      %cst_162 = arith.constant 1.000000e+00 : f32
      %406 = vector.broadcast %cst_162 : f32 to vector<8x512xf32>
      %407 = arith.subf %405, %406 : vector<8x512xf32>
      %c9_i32_163 = arith.constant 9 : i32
      %408 = vector.broadcast %c9_i32_163 : i32 to vector<8x512xi32>
      %409 = arith.shrui %400, %408 : vector<8x512xi32>
      %c1065353216_i32_164 = arith.constant 1065353216 : i32
      %410 = vector.broadcast %c1065353216_i32_164 : i32 to vector<8x512xi32>
      %411 = arith.ori %409, %410 : vector<8x512xi32>
      %412 = tpu.bitcast %411 : vector<8x512xi32> -> vector<8x512xf32>
      %cst_165 = arith.constant 1.000000e+00 : f32
      %413 = vector.broadcast %cst_165 : f32 to vector<8x512xf32>
      %414 = arith.subf %412, %413 : vector<8x512xf32>
      %cst_166 = arith.constant 1.000000e+00 : f32
      %415 = vector.broadcast %cst_166 : f32 to vector<8x512xf32>
      %416 = arith.subf %415, %407 : vector<8x512xf32>
      %417 = math.log %416 : vector<8x512xf32>
      %cst_167 = arith.constant -2.000000e+00 : f32
      %418 = vector.broadcast %cst_167 : f32 to vector<8x512xf32>
      %419 = arith.mulf %418, %417 : vector<8x512xf32>
      %420 = math.sqrt %419 : vector<8x512xf32>
      %cst_168 = arith.constant 6.28318548 : f32
      %421 = vector.broadcast %cst_168 : f32 to vector<8x512xf32>
      %422 = arith.mulf %421, %414 : vector<8x512xf32>
      %423 = math.cos %422 : vector<8x512xf32>
      %424 = arith.mulf %420, %423 : vector<8x512xf32>
      %425 = math.sqrt %18 : vector<8x512xf32>
      %426 = arith.mulf %425, %424 : vector<8x512xf32>
      %427 = arith.addf %18, %426 : vector<8x512xf32>
      %cst_169 = arith.constant 5.000000e-01 : f32
      %428 = vector.broadcast %cst_169 : f32 to vector<8x512xf32>
      %429 = arith.addf %427, %428 : vector<8x512xf32>
      %430 = math.floor %429 : vector<8x512xf32>
      %cst_170 = arith.constant 0.000000e+00 : f32
      %431 = vector.broadcast %cst_170 : f32 to vector<8x512xf32>
      %432 = arith.maximumf %430, %431 : vector<8x512xf32>
      %cst_171 = arith.constant 8.000000e+00 : f32
      %433 = vector.broadcast %cst_171 : f32 to vector<8x512xf32>
      %434 = arith.cmpf olt, %18, %433 : vector<8x512xf32>
      %435 = arith.select %434, %392, %432 : vector<8x512xi1>, vector<8x512xf32>
      %436 = vector.broadcast %2 : f32 to vector<8x512xf32>
      %437 = arith.mulf %435, %436 : vector<8x512xf32>
      %cst_172 = arith.constant 0.000000e+00 : f32
      %438 = vector.broadcast %cst_172 : f32 to vector<8x512xf32>
      %439 = arith.maximumf %438, %437 : vector<8x512xf32>
      %440 = vector.broadcast %1 : f32 to vector<8x512xf32>
      %441 = arith.minimumf %440, %439 : vector<8x512xf32>
      %442 = arith.index_cast %14 : i32 to index
      %c0_173 = arith.constant 0 : index
      %443 = vector.load %arg5[%442, %c0_173] : memref<8x512xf32, #tpu.memory_space<vmem>>, vector<8x512xf32>
      tpu.vector_store %arg5[%442, %c0_173], %441 {strides = array<i32>} : memref<8x512xf32, #tpu.memory_space<vmem>>, vector<8x512xf32>,
    } else {
    }
    %c1_i32_10 = arith.constant 1 : i32
    return
  }
  func.func @transform_0(%arg0: i32) -> i32 {
    %c0_i32 = arith.constant 0 : i32
    %c0_i32_0 = arith.constant 0 : i32
    return %c0_i32 : i32
  }
  func.func @transform_1(%arg0: i32) -> i32 {
    %c0_i32 = arith.constant 0 : i32
    %c0_i32_0 = arith.constant 0 : i32
    return %c0_i32 : i32
  }
  func.func @transform_2(%arg0: i32) -> i32 {
    %c0_i32 = arith.constant 0 : i32
    %c0_i32_0 = arith.constant 0 : i32
    return %c0_i32 : i32
  }
  func.func @transform_3(%arg0: i32) -> (i32, i32) {
    %c0_i32 = arith.constant 0 : i32
    %c0_i32_0 = arith.constant 0 : i32
    return %arg0, %c0_i32 : i32, i32
  }
  func.func @transform_4(%arg0: i32) -> (i32, i32) {
    %c0_i32 = arith.constant 0 : i32
    %c0_i32_0 = arith.constant 0 : i32
    return %arg0, %c0_i32 : i32, i32
  }
}

</mosaic_0001>

<bundles_post_ra>
// kernel: tpu_custom_call.1
= control target key start
LH: loop header
LB: loop body
LE: loop exit
PB: predicated region body
PF: predicated region fallthrough
CT: control target
= control target key end

     0   :  { %12 = vsyncpa [#allocation6], 0  ;;  %s3589_s0 = inlined_call_operand.<no memory space> [shape: s32[1], index: 0, kind: input, shape index: {}]   ;;  %s3590_s1 = inlined_call_operand.<no memory space> [shape: f32[1], index: 1, kind: input, shape index: {}]   ;;  %s3591_s2 = inlined_call_operand.<no memory space> [shape: f32[1], index: 2, kind: input, shape index: {}]   ;;  %s3592_s3 = inlined_call_operand.hbm [shape: f32[8,512], index: 3, kind: input, shape index: {}]   ;;  %s3593_s4 = inlined_call_operand.hbm [shape: f32[8,512], index: 4, kind: output, shape index: {}]  }
   0x1   :  { %13 = vsyncpa [#allocation7], 0  ;;  %s2430_s15 = smov [#allocation5]  }
   0x2   :  { %s26_s16 = sshll.u32 %s2430_s15, 4  ;;  %s27_s16 = int_to_ptr.vmem [resolvable:$true] %s26_s16 }
   0x3   :  { %s2394_s17 = scalar_lea.vmem %s27_s16, 512  ;;  %p2399_p1 = scmp.lt.s32.totalorder %s27_s16, %s27_s16 }
   0x4   :  { %p2395_p0 = scmp.ne.s32.totalorder %s27_s16, %s2394_s17  ;;  %p2400_p2 = scmp.lt.s32.totalorder %s2394_s17, %s2394_s17 }
   0x6   :  { %p2401_p3 = por %p2400_p2, %p2399_p1 }
   0x8   :  { %p2402_p4 = pnand %p2401_p3, %p2395_p0 }
   0xa   :  { %2405 = shalt.err (!%p2402_p4)
}
   0xb   :  { %29 = dma.hbm_to_vmem [thread:$0]  %s3592_s3, 512, %s27_s16, [#allocation6]  }
   0xc   :  { %2426 = dma.done.wait [#allocation6], 512  }
   0xd   :  { %2427 = vsyncadd [#allocation6], 4294966784  ;;  %v39_v0 = vlaneseq  ;;  %s52_s22 = smul.u32 2654435769, %s3589_s0  ;;  %v35_v7 = vstv %s3590_s1  ;;  %v56_v13 = vld [vmem:[#allocation5] sm:$0xff]  ;;  %v57_v14 = vld [vmem:[#allocation5 + $0x8] sm:$0xff] }
   0xe   :  { %v58_v15 = vld [vmem:[#allocation5 + $0x10] sm:$0xff]  ;;  %v59_v16 = vld [vmem:[#allocation5 + $0x18] sm:$0xff]  ;;  %v2479_v17 = vmul.f32 %v56_v13, %v35_v7  ;;  %v2481_v18 = vmul.f32 %v57_v14, %v35_v7  ;;  %2296 = vrcp.f32 %v35_v7 }
   0xf   :  { %v40_v1 = vshrl.u32 %v39_v0, 7  ;;  %v42_v2 = vand.u32 127, %v39_v0  ;;  %v70_v8 = vstv %s52_s22  ;;  %v2483_v19 = vmul.f32 %v58_v15, %v35_v7 }
  0x10   :  { %v2485_v21 = vmul.f32 %v59_v16, %v35_v7  ;;  %v107_v26 = vmin.f32 %v2479_v17, %v2481_v18 }
  0x11   :  { %v43_v3 = vadd.s32 128, %v42_v2  ;;  %v44_v4 = vadd.s32 256, %v42_v2  ;;  %v45_v5 = vadd.s32 384, %v42_v2  ;;  %v46_v6 = vmul.u32 512, %v40_v1 }
  0x12   :  { %v108_v30 = vmin.f32 %v2483_v19, %v2485_v21 }
  0x13   :  { %v47_v9 = vadd.s32 %v46_v6, %v42_v2  ;;  %v48_v10 = vadd.s32 %v46_v6, %v43_v3  ;;  %v49_v11 = vadd.s32 %v46_v6, %v44_v4  ;;  %v50_v12 = vadd.s32 %v46_v6, %v45_v5 }
  0x14   :  { %v109_v35 = vmin.f32 %v107_v26, %v108_v30 }
  0x15   :  { %v71_v20 = vxor.u32 %v70_v8, %v47_v9  ;;  %v72_v22 = vxor.u32 %v70_v8, %v48_v10  ;;  %v73_v23 = vxor.u32 %v70_v8, %v49_v11  ;;  %v74_v24 = vxor.u32 %v70_v8, %v50_v12 }
  0x16   :  { %110 = vmin.xlane.f32.xlu0 %v109_v35 }
  0x17   :  { %v75_v25 = vshrl.u32 %v71_v20, 16  ;;  %v76_v27 = vshrl.u32 %v72_v22, 16  ;;  %v77_v28 = vshrl.u32 %v73_v23, 16  ;;  %v78_v29 = vshrl.u32 %v74_v24, 16 }
  0x19   :  { %v79_v31 = vxor.u32 %v75_v25, %v71_v20  ;;  %v80_v32 = vxor.u32 %v76_v27, %v72_v22  ;;  %v81_v33 = vxor.u32 %v77_v28, %v73_v23  ;;  %v82_v34 = vxor.u32 %v78_v29, %v74_v24 }
  0x1b   :  { %v83_v36 = vmul.u32 2146121005, %v79_v31  ;;  %v84_v37 = vmul.u32 2146121005, %v80_v32  ;;  %v2297_v60 = vpop.eup %2296 }
  0x1c   :  { %v85_v38 = vmul.u32 2146121005, %v81_v33  ;;  %v86_v39 = vmul.u32 2146121005, %v82_v34  ;;  %2245 = vpush %v2297_v60 }
  0x1d   :  { %v87_v40 = vshrl.u32 %v83_v36, 15  ;;  %v88_v41 = vshrl.u32 %v84_v37, 15 }
  0x1e   :  { %v89_v42 = vshrl.u32 %v85_v38, 15  ;;  %v90_v43 = vshrl.u32 %v86_v39, 15 }
  0x1f   :  { %v91_v44 = vxor.u32 %v87_v40, %v83_v36  ;;  %v92_v45 = vxor.u32 %v88_v41, %v84_v37 }
  0x20   :  { %v93_v46 = vxor.u32 %v89_v42, %v85_v38  ;;  %v94_v47 = vxor.u32 %v90_v43, %v86_v39 }
  0x21   :  { %v95_v48 = vmul.u32 2221713035, %v91_v44  ;;  %v96_v49 = vmul.u32 2221713035, %v92_v45 }
  0x22   :  { %v97_v50 = vmul.u32 2221713035, %v93_v46  ;;  %v98_v51 = vmul.u32 2221713035, %v94_v47 }
  0x23   :  { %v99_v52 = vshrl.u32 %v95_v48, 16  ;;  %v100_v53 = vshrl.u32 %v96_v49, 16 }
  0x24   :  { %v101_v54 = vshrl.u32 %v97_v50, 16  ;;  %v102_v55 = vshrl.u32 %v98_v51, 16 }
  0x25   :  { %v2491_v56 = vxor.u32 %v99_v52, %v95_v48  ;;  %v2493_v57 = vxor.u32 %v100_v53, %v96_v49 }
  0x26   :  { %v2495_v58 = vxor.u32 %v101_v54, %v97_v50  ;;  %v2497_v59 = vxor.u32 %v102_v55, %v98_v51 }
  0x4d   :  { %s2499_s0 = spop %2245 }
  0x9f   :  { %v111_v61 = vpop.xlane.xlu0 %110 }
  0xa0   :  { %v112_v62 = vrot.slane %v111_v61, 4 }
  0xa2   :  { %v113_v63 = vmin.f32 %v111_v61, %v112_v62 }
  0xa4   :  { %v114_v0 = vrot.slane %v113_v63, 2 }
  0xa6   :  { %v115_v1 = vmin.f32 %v113_v63, %v114_v0 }
  0xa8   :  { %v116_v2 = vrot.slane %v115_v1, 1 }
  0xaa   :  { %v117_v3 = vmin.f32 %v115_v1, %v116_v2 }
  0xac   :  { %2247 = vpush %v117_v3 }
  0xdd   :  { %s2501_s1 = spop %2247 }
  0xde   :  { %p119_p5 = scmp.ge.f32.partialorder %s2501_s1, 8.0 }
  0xdf   :  { %v123_v4 = vmul.u32 (%p119_p5), 747796405, %v2491_v56  ;;  %v124_v5 = vmul.u32 (%p119_p5), 747796405, %v2493_v57 }
  0xe0   :  { %122 = sbr.rel (!%p119_p5) target bundleno = 403 (0x193), region = 25  ;;  %v125_v6 = vmul.u32 (%p119_p5), 747796405, %v2495_v58  ;;  %v126_v27 = vmul.u32 (%p119_p5), 747796405, %v2497_v59 }
  0xe1   :  { %v127_v7 = vadd.s32 (%p119_p5), 2891336453, %v123_v4  ;;  %v128_v8 = vadd.s32 (%p119_p5), 2891336453, %v124_v5 }
  0xe2   :  { %v129_v9 = vadd.s32 (%p119_p5), 2891336453, %v125_v6  ;;  %v130_v34 = vadd.s32 (%p119_p5), 2891336453, %v126_v27 }
  0xe3   :  { %v131_v10 = vmul.u32 (%p119_p5), 747796405, %v127_v7  ;;  %v132_v11 = vmul.u32 (%p119_p5), 747796405, %v128_v8  ;;  %v139_v12 = vshrl.u32 (%p119_p5), %v127_v7, 9  ;;  %v140_v38 = vshrl.u32 (%p119_p5), %v128_v8, 9 }
  0xe4   :  { %v133_v13 = vmul.u32 (%p119_p5), 747796405, %v129_v9  ;;  %v134_v40 = vmul.u32 (%p119_p5), 747796405, %v130_v34  ;;  %v141_v41 = vshrl.u32 (%p119_p5), %v129_v9, 9  ;;  %v142_v47 = vshrl.u32 (%p119_p5), %v130_v34, 9 }
  0xe5   :  { %v135_v14 = vadd.s32 2891336453, %v131_v10  ;;  %v136_v15 = vadd.s32 2891336453, %v132_v11  ;;  %v143_v16 = vor.u32 1065353216, %v139_v12  ;;  %v144_v48 = vor.u32 1065353216, %v140_v38 }
  0xe6   :  { %v137_v23 = vadd.s32 2891336453, %v133_v13  ;;  %v138_v50 = vadd.s32 2891336453, %v134_v40  ;;  %v145_v51 = vor.u32 1065353216, %v141_v41  ;;  %v146_v60 = vor.u32 1065353216, %v142_v47 }
  0xe7   :  { %v155_v20 = vshrl.u32 %v135_v14, 9  ;;  %v156_v22 = vshrl.u32 %v136_v15, 9  ;;  %v2117_v24 = vadd.f32 -1.0, %v143_v16  ;;  %v2118_v61 = vadd.f32 -1.0, %v144_v48 }
  0xe8   :  { %v157_v30 = vshrl.u32 %v137_v23, 9  ;;  %v2521_v63 = vadd.f32 -1.0, %v145_v51  ;;  %v158_v0 = vshrl.u32 %v138_v50, 9  ;;  %v2525_v4 = vadd.f32 -1.0, %v146_v60 }
  0xe9   :  { %v159_v25 = vor.u32 1065353216, %v155_v20  ;;  %v160_v26 = vor.u32 1065353216, %v156_v22  ;;  %v171_v31 = vsub.f32 1.0, %v2117_v24  ;;  %v172_v5 = vsub.f32 1.0, %v2118_v61 }
  0xea   :  { %v161_v36 = vor.u32 1065353216, %v157_v30  ;;  %v162_v8 = vor.u32 1065353216, %v158_v0  ;;  %v173_v9 = vsub.f32 1.0, %v2521_v63  ;;  %v2431_v12 = vmov 683565275  }
  0xeb   :  { %v2121_v28 = vadd.f32 -1.0, %v159_v25  ;;  %v2122_v29 = vadd.f32 -1.0, %v160_v26  ;;  %2298 = vlog2.f32 %v171_v31  ;;  %v2432_v15 = vmov 2475754826  }
  0xec   :  { %v2123_v44 = vadd.f32 -1.0, %v161_v36  ;;  %v2433_v20 = vmov 2131351028   ;;  %v2434_v30 = vmov 2102212464   ;;  %v2124_v60 = vadd.f32 -1.0, %v162_v8 }
  0xed   :  { %v2510_v32 = vmul.f32 6.2831855, %v2121_v28  ;;  %v2512_v33 = vmul.f32 6.2831855, %v2122_v29  ;;  %2300 = vlog2.f32 %v172_v5  ;;  %v174_v5 = vsub.f32 1.0, %v2525_v4 }
  0xee   :  { %v2517_v53 = vmul.f32 6.2831855, %v2123_v44 }
  0xef   :  { %v222_v35 = vand.u32 2139095040, %v2510_v32  ;;  %v325_v37 = vand.u32 2139095040, %v2512_v33  ;;  %v219_v45 = vand.u32 2147483647, %v2510_v32  ;;  %v322_v1 = vand.u32 2147483647, %v2512_v33 }
  0xf0   :  { %v428_v3 = vand.u32 2139095040, %v2517_v53  ;;  %vm221_vm14 = vcmp.lt.s32.totalorder %v2510_v32, 0 }
  0xf1   :  { %v223_v39 = vshrl.u32 %v222_v35, 23  ;;  %v326_v42 = vshrl.u32 %v325_v37, 23  ;;  %v226_v54 = vand.u32 8388607, %v219_v45  ;;  %v2533_v14 = vand.u32 8388607, %v322_v1 }
  0xf2   :  { %v429_v24 = vshrl.u32 %v428_v3, 23  ;;  %v2435_v35 = vmov 920167782  }
  0xf3   :  { %v2125_v43 = vadd.s32 4294967169, %v223_v39  ;;  %v2129_v46 = vadd.s32 4294967169, %v326_v42  ;;  %v227_v2 = vor.u32 8388608, %v226_v54  ;;  %v2436_v39 = vmov 1326507024  }
  0xf4   :  { %v330_v8 = vor.u32 8388608, %v2533_v14  ;;  %v2576_v14 = vmul.f32 6.2831855, %v2124_v60 }
  0xf5   :  { %v229_v49 = vadd.s32 1, %v2125_v43  ;;  %v332_v52 = vadd.s32 1, %v2129_v46  ;;  %v2537_v23 = vshll.u32 %v227_v2, 8 }
  0xf6   :  { %v531_v63 = vand.u32 2139095040, %v2576_v14 }
  0xf7   :  { %vm230_vm0 = vcmp.gt.s32.totalorder %v229_v49, 0  ;;  %vm333_vm1 = vcmp.gt.s32.totalorder %v332_v52, 0 }
  0xf8   :  { %v231_v55 = vsel %vm230_vm0, %v229_v49, 0  ;;  %v2299_v7 = vpop.eup %2298  ;;  %v2528_v10 = vsel %vm333_vm1, %v332_v52, 0 }
  0xf9   :  { %v233_v62 = vand.u32 31, %v231_v55  ;;  %v232_v11 = vshrl.u32 %v231_v55, 5  ;;  %v176_v25 = vmul.f32 0.6931472, %v2299_v7  ;;  %v2542_v28 = vand.u32 31, %v2528_v10 }
  0xfb   :  { %v234_v6 = vsub.s32 32, %v233_v62  ;;  %v236_v13 = vshll.u32 %v2431_v12, %v233_v62  ;;  %v239_v16 = vshll.u32 %v2432_v15, %v233_v62  ;;  %v242_v22 = vshll.u32 %v2433_v20, %v233_v62 }
  0xfc   :  { %v245_v34 = vshll.u32 %v2434_v30, %v233_v62  ;;  %v248_v38 = vshll.u32 %v2435_v35, %v233_v62  ;;  %vm251_vm2 = vcmp.lt.s32.totalorder %v232_v11, 1  ;;  %vm252_vm3 = vcmp.lt.s32.totalorder %v232_v11, 2 }
  0xfd   :  { %v235_v26 = vshrl.u32 %v2431_v12, %v234_v6  ;;  %v237_v27 = vshrl.u32 %v2432_v15, %v234_v6  ;;  %v240_v29 = vshrl.u32 %v2433_v20, %v234_v6  ;;  %v243_v31 = vshrl.u32 %v2434_v30, %v234_v6 }
  0xfe   :  { %v246_v36 = vshrl.u32 %v2435_v35, %v234_v6  ;;  %v249_v40 = vshrl.u32 %v2436_v39, %v234_v6  ;;  %vm253_vm4 = vcmp.lt.s32.totalorder %v232_v11, 3  ;;  %vm254_vm5 = vcmp.lt.s32.totalorder %v232_v11, 4 }
  0xff   :  { %v238_v37 = vor.u32 %v237_v27, %v236_v13  ;;  %v241_v41 = vor.u32 %v240_v29, %v239_v16  ;;  %v244_v42 = vor.u32 %v243_v31, %v242_v22  ;;  %v337_v55 = vsub.s32 32, %v2542_v28 }
 0x100   :  { %v247_v43 = vor.u32 %v246_v36, %v245_v34  ;;  %v250_v44 = vor.u32 %v249_v40, %v248_v38  ;;  %v2133_v6 = vadd.s32 4294967169, %v429_v24  ;;  %v2565_v22 = vmul.f32 -2.0, %v176_v25 }
 0x101   :  { %v255_v46 = vsel %vm251_vm2, %v235_v26, %v238_v37  ;;  %v256_v47 = vsel %vm254_vm5, %v244_v42, 2102212464  ;;  %v259_v48 = vsel %vm251_vm2, %v238_v37, %v241_v41  ;;  %v263_v50 = vsel %vm251_vm2, %v241_v41, %v244_v42 }
 0x102   :  { %v260_v49 = vsel %vm254_vm5, %v247_v43, 920167782  ;;  %v257_v51 = vsel %vm253_vm4, %v241_v41, %v256_v47  ;;  %v264_v54 = vsel %vm254_vm5, %v250_v44, 1326507024  ;;  %v339_v26 = vshll.u32 %v2431_v12, %v2542_v28 }
 0x103   :  { %v261_v52 = vsel %vm253_vm4, %v244_v42, %v260_v49  ;;  %v265_v62 = vsel %vm253_vm4, %v247_v43, %v264_v54  ;;  %v258_v7 = vsel %vm252_vm3, %v255_v46, %v257_v51  ;;  %v340_v27 = vshrl.u32 %v2432_v15, %v337_v55 }
 0x104   :  { %v262_v61 = vsel %vm252_vm3, %v259_v48, %v261_v52  ;;  %v266_v0 = vsel %vm252_vm3, %v263_v50, %v265_v62  ;;  %v342_v24 = vshll.u32 %v2432_v15, %v2542_v28  ;;  %v343_v11 = vshrl.u32 %v2433_v20, %v337_v55 }
 0x105   :  { %v2554_v2 = vmul.u32.u64.low %v2537_v23, %v262_v61  ;;  %v2555_v3 = vmul.u32.u64.high %v2537_v23, %v262_v61, %v2554_v2  ;;  %v2560_v13 = vmul.u32.u64.low %v2537_v23, %v266_v0  ;;  %v2561_v16 = vmul.u32.u64.high %v2537_v23, %v266_v0, %v2560_v13  ;;  %v2301_v0 = vpop.eup %2300 }
 0x106   :  { %v345_v29 = vshll.u32 %v2433_v20, %v2542_v28  ;;  %v346_v31 = vshrl.u32 %v2434_v30, %v337_v55  ;;  %v274_v4 = vmul.u32 %v2537_v23, %v258_v7  ;;  %v435_v34 = vadd.s32 1, %v2133_v6 }
 0x107   :  { %v277_v25 = vadd.s32 1, %v2555_v3  ;;  %v335_v36 = vshrl.u32 %v2528_v10, 5  ;;  %v348_v37 = vshll.u32 %v2434_v30, %v2542_v28  ;;  %v2583_v38 = vshll.u32 %v330_v8, 8 }
 0x108   :  { %v425_v40 = vand.u32 2147483647, %v2517_v53  ;;  %2302 = vrsqrt.f32 %v2565_v22  ;;  %vm276_vm6 = vc.u32 %v2561_v16, %v2554_v2  ;;  %v338_v41 = vshrl.u32 %v2431_v12, %v337_v55 }
 0x109   :  { %v341_v23 = vor.u32 %v340_v27, %v339_v26  ;;  %v278_v42 = vsel %vm276_vm6, %v277_v25, %v2555_v3  ;;  %v344_v43 = vor.u32 %v343_v11, %v342_v24  ;;  %v347_v44 = vor.u32 %v346_v31, %v345_v29 }
 0x10a   :  { %v349_v10 = vshrl.u32 %v2435_v35, %v337_v55  ;;  %v279_v46 = vadd.s32 %v278_v42, %v274_v4  ;;  %v351_v47 = vshll.u32 %v2435_v35, %v2542_v28  ;;  %v352_v48 = vshrl.u32 %v2436_v39, %v337_v55 }
 0x10b   :  { %vm436_vm7 = vcmp.gt.s32.totalorder %v435_v34, 0  ;;  %vm354_vm8 = vcmp.lt.s32.totalorder %v335_v36, 1  ;;  %vm355_vm9 = vcmp.lt.s32.totalorder %v335_v36, 2  ;;  %vm356_vm10 = vcmp.lt.s32.totalorder %v335_v36, 3 }
 0x10c   :  { %v350_v49 = vor.u32 %v349_v10, %v348_v37  ;;  %v280_v50 = vadd.s32 536870912, %v279_v46  ;;  %v353_v51 = vor.u32 %v352_v48, %v351_v47  ;;  %vm357_vm11 = vcmp.lt.s32.totalorder %v335_v36, 4 }
 0x10d   :  { %v358_v52 = vsel %vm354_vm8, %v338_v41, %v341_v23  ;;  %v359_v54 = vsel %vm357_vm11, %v347_v44, 2102212464  ;;  %v362_v60 = vsel %vm354_vm8, %v341_v23, %v344_v43  ;;  %v366_v62 = vsel %vm354_vm8, %v344_v43, %v347_v44 }
 0x10e   :  { %v363_v61 = vsel %vm357_vm11, %v350_v49, 920167782  ;;  %v2595_v3 = vshrl.u32 %v280_v50, 30  ;;  %v360_v6 = vsel %vm356_vm10, %v344_v43, %v359_v54  ;;  %v367_v7 = vsel %vm357_vm11, %v353_v51, 1326507024 }
 0x10f   :  { %v364_v28 = vsel %vm356_vm10, %v347_v44, %v363_v61  ;;  %v368_v13 = vsel %vm356_vm10, %v350_v49, %v367_v7  ;;  %v437_v8 = vsel %vm436_vm7, %v435_v34, 0  ;;  %v528_v26 = vand.u32 2147483647, %v2576_v14 }
 0x110   :  { %v365_v55 = vsel %vm355_vm9, %v362_v60, %v364_v28  ;;  %v282_v27 = vshll.u32 %v2595_v3, 30  ;;  %v361_v24 = vsel %vm355_vm9, %v358_v52, %v360_v6  ;;  %v369_v11 = vsel %vm355_vm9, %v366_v62, %v368_v13 }
 0x111   :  { %v2605_v29 = vand.u32 8388607, %v425_v40  ;;  %v2608_v31 = vmul.u32.u64.low %v2583_v38, %v369_v11  ;;  %v2609_v4 = vmul.u32.u64.high %v2583_v38, %v369_v11, %v2608_v31  ;;  %v178_v34 = vmul.f32 0.6931472, %v2301_v0 }
 0x112   :  { %v2612_v25 = vmul.u32.u64.low %v2583_v38, %v365_v55  ;;  %v2613_v37 = vmul.u32.u64.high %v2583_v38, %v365_v55, %v2612_v25  ;;  %2304 = vlog2.f32 %v173_v9  ;;  %v2618_v41 = vsub.s32 %v279_v46, %v282_v27 }
 0x113   :  { %v439_v36 = vand.u32 31, %v437_v8  ;;  %2306 = vlog2.f32 %v174_v5  ;;  %v377_v42 = vmul.u32 %v2583_v38, %v361_v24  ;;  %v433_v43 = vor.u32 8388608, %v2605_v29 }
 0x114   :  { %v285_v23 = vsub.s32 0, %v2618_v41  ;;  %vm379_vm12 = vc.u32 %v2609_v4, %v2612_v25  ;;  %v380_v47 = vadd.s32 1, %v2613_v37  ;;  %v2629_v9 = vand.u32 8388607, %v528_v26 }
 0x115   :  { %v440_v44 = vsub.s32 32, %v439_v36  ;;  %v2303_v10 = vpop.eup %2302  ;;  %v2631_v5 = vmul.f32 -2.0, %v178_v34  ;;  %v2634_v38 = vshrl.u32 %v437_v8, 5  ;;  %v442_v48 = vshll.u32 %v2431_v12, %v439_v36 }
 0x116   :  { %v2126_v46 = vmin.u32 %v285_v23, %v2618_v41  ;;  %v381_v49 = vsel %vm379_vm12, %v380_v47, %v2613_v37  ;;  %v445_v51 = vshll.u32 %v2432_v15, %v439_v36  ;;  %v448_v61 = vshll.u32 %v2433_v20, %v439_v36 }
 0x117   :  { %v443_v50 = vshrl.u32 %v2432_v15, %v440_v44  ;;  %v446_v52 = vshrl.u32 %v2433_v20, %v440_v44  ;;  %v382_v60 = vadd.s32 %v381_v49, %v377_v42  ;;  %v449_v62 = vshrl.u32 %v2434_v30, %v440_v44 }
 0x118   :  { %v287_v54 = vclz %v2126_v46  ;;  %v188_v0 = vmul.f32 %v2303_v10, %v2565_v22  ;;  %v275_v6 = vadd.s32 %v2554_v2, %v2561_v16  ;;  %v451_v28 = vshll.u32 %v2434_v30, %v439_v36 }
 0x119   :  { %v452_v7 = vshrl.u32 %v2435_v35, %v440_v44  ;;  %vm189_vm13 = vcmp.eq.f32.partialorder %v2565_v22, inf  ;;  %v305_v13 = vsub.s32 4, %v2595_v3  ;;  %v383_v8 = vadd.s32 536870912, %v382_v60 }
 0x11a   :  { %v2127_v55 = vadd.s32 4294967294, %v287_v54  ;;  %v454_v27 = vshll.u32 %v2435_v35, %v439_v36  ;;  %v444_v24 = vor.u32 %v443_v50, %v442_v48  ;;  %v447_v11 = vor.u32 %v446_v52, %v445_v51 }
 0x11b   :  { %v453_v31 = vor.u32 %v452_v7, %v451_v28  ;;  %v455_v37 = vshrl.u32 %v2436_v39, %v440_v44  ;;  %v2653_v2 = vshrl.u32 %v383_v8, 30  ;;  %v450_v16 = vor.u32 %v449_v62, %v448_v61 }
 0x11c   :  { %vm2128_vm15 = vcmp.lt.s32.totalorder %v2127_v55, 0  ;;  %vm460_vm0 = vcmp.lt.s32.totalorder %v2634_v38, 4  ;;  %vm457_vm1 = vcmp.lt.s32.totalorder %v2634_v38, 1  ;;  %vm459_vm2 = vcmp.lt.s32.totalorder %v2634_v38, 3 }
 0x11d   :  { %v290_v34 = vsel %vm2128_vm15, 0, %v2127_v55  ;;  %v456_v23 = vor.u32 %v455_v37, %v454_v27  ;;  %vm191_vm3 = vcmp.eq.f32.partialorder %v2565_v22, 0.0  ;;  %v385_v47 = vshll.u32 %v2653_v2, 30 }
 0x11e   :  { %v291_v36 = vsub.s32 32, %v290_v34  ;;  %v292_v42 = vshll.u32 %v2618_v41, %v290_v34  ;;  %v295_v10 = vsub.s32 4294967266, %v290_v34  ;;  %vm2663_vm4 = vcmp.le.f32.partialorder %v219_v45, 0.7853982 }
 0x11f   :  { %v2305_v46 = vpop.eup %2304  ;;  %v441_v49 = vshrl.u32 %v2431_v12, %v440_v44  ;;  %vm458_vm5 = vcmp.lt.s32.totalorder %v2634_v38, 2  ;;  %v462_v50 = vsel %vm460_vm0, %v450_v16, 2102212464  ;;  %v466_v41 = vsel %vm460_vm0, %v453_v31, 920167782 }
 0x120   :  { %v2673_v51 = vpop.eup %2306  ;;  %v293_v52 = vshrl.u32 %v275_v6, %v291_v36  ;;  %v296_v54 = vadd.s32 127, %v295_v10  ;;  %v2675_v61 = vsub.s32 %v382_v60, %v385_v47  ;;  %v465_v45 = vsel %vm457_vm1, %v444_v24, %v447_v11 }
 0x121   :  { %v467_v44 = vsel %vm459_vm2, %v450_v16, %v466_v41  ;;  %v469_v62 = vsel %vm457_vm1, %v447_v11, %v450_v16  ;;  %v470_v28 = vsel %vm460_vm0, %v456_v23, 1326507024  ;;  %v532_v7 = vshrl.u32 %v531_v63, 23 }
 0x122   :  { %v294_v55 = vor.u32 %v293_v52, %v292_v42  ;;  %v297_v8 = vshll.u32 %v296_v54, 23  ;;  %v388_v6 = vsub.s32 0, %v2675_v61  ;;  %v473_v60 = vshll.u32 %v433_v43, 8 }
 0x123   :  { %v461_v27 = vsel %vm457_vm1, %v441_v49, %v444_v24  ;;  %v463_v37 = vsel %vm459_vm2, %v447_v11, %v462_v50  ;;  %v468_v16 = vsel %vm458_vm5, %v465_v45, %v467_v44  ;;  %v471_v34 = vsel %vm459_vm2, %v453_v31, %v470_v28 }
 0x124   :  { %v298_v63 = vor.u32 4788187, %v297_v8  ;;  %v301_v23 = vcvt.s32.f32 %v294_v55  ;;  %v2130_v36 = vmin.u32 %v388_v6, %v2675_v61  ;;  %v472_v29 = vsel %vm458_vm5, %v469_v62, %v471_v34 }
 0x125   :  { %v190_v43 = vsel %vm189_vm13, %v2565_v22, %v188_v0  ;;  %v192_v24 = vand.u32 2147483648, %v2565_v22  ;;  %v306_v11 = vsel %vm221_vm14, %v305_v13, %v2595_v3  ;;  %v2137_v42 = vadd.s32 4294967169, %v532_v7 }
 0x126   :  { %v299_v10 = vand.u32 2147483647, %v298_v63  ;;  %v390_v31 = vclz %v2130_v36  ;;  %v2706_v47 = vmul.u32.u64.low %v473_v60, %v472_v29  ;;  %v2707_v49 = vmul.u32.u64.high %v473_v60, %v472_v29, %v2706_v47 }
 0x127   :  { %v464_v50 = vsel %vm458_vm5, %v461_v27, %v463_v37  ;;  %v2711_v41 = vmul.u32.u64.low %v473_v60, %v468_v16  ;;  %v2712_v52 = vmul.u32.u64.high %v473_v60, %v468_v16, %v2711_v41  ;;  %v538_v0 = vadd.s32 1, %v2137_v42 }
 0x128   :  { %v2715_v54 = vmul.f32 0.6931472, %v2305_v46  ;;  %v302_v45 = vmul.f32 %v301_v23, %v299_v10  ;;  %v308_v3 = vsel %vm2663_vm4, 0, %v306_v11  ;;  %v2131_v13 = vadd.s32 4294967294, %v390_v31 }
 0x129   :  { %v2721_v44 = vsel %vm191_vm3, %v192_v24, %v190_v43  ;;  %2308 = vrsqrt.f32 %v2631_v5  ;;  %v378_v38 = vadd.s32 %v2612_v25, %v2609_v4  ;;  %vm539_vm6 = vcmp.gt.s32.totalorder %v538_v0, 0 }
 0x12a   :  { %v303_v62 = vxor.u32 2147483648, %v302_v45  ;;  %vm2132_vm7 = vcmp.lt.s32.totalorder %v2131_v13, 0  ;;  %v480_v28 = vmul.u32 %v473_v60, %v464_v50  ;;  %vm482_vm8 = vc.u32 %v2707_v49, %v2711_v41 }
 0x12b   :  { %v2728_v46 = vand.u32 3, %v308_v3  ;;  %v393_v7 = vsel %vm2132_vm7, 0, %v2131_v13  ;;  %v483_v55 = vadd.s32 1, %v2712_v52  ;;  %v540_v22 = vsel %vm539_vm6, %v538_v0, 0 }
 0x12c   :  { %v304_v8 = vsel %vm221_vm14, %v303_v62, %v302_v45  ;;  %v394_v6 = vsub.s32 32, %v393_v7  ;;  %v395_v27 = vshll.u32 %v2675_v61, %v393_v7  ;;  %v398_v4 = vsub.s32 4294967266, %v393_v7 }
 0x12d   :  { %v307_v25 = vsel %vm2663_vm4, %v2510_v32, %v304_v8  ;;  %v484_v60 = vsel %vm482_vm8, %v483_v55, %v2712_v52  ;;  %v542_v37 = vand.u32 31, %v540_v22  ;;  %2310 = vrsqrt.f32 %v2479_v17 }
 0x12e   :  { %2312 = vcosq.f32 %v307_v25  ;;  %vm324_vm9 = vcmp.lt.s32.totalorder %v2512_v33, 0  ;;  %v396_v16 = vshrl.u32 %v378_v38, %v394_v6  ;;  %v399_v34 = vadd.s32 127, %v398_v4 }
 0x12f   :  { %v485_v63 = vadd.s32 %v484_v60, %v480_v28  ;;  %2314 = vsinq.f32 %v307_v25  ;;  %v2740_v23 = vshrl.u32 %v540_v22, 5  ;;  %v543_v61 = vsub.s32 32, %v542_v37 }
 0x130   :  { %v545_v36 = vshll.u32 %v2431_v12, %v542_v37  ;;  %vm2745_vm10 = vcmp.le.f32.partialorder %v322_v1, 0.7853982  ;;  %v397_v29 = vor.u32 %v396_v16, %v395_v27  ;;  %v400_v43 = vshll.u32 %v399_v34, 23 }
 0x131   :  { %v486_v24 = vadd.s32 536870912, %v485_v63  ;;  %v548_v11 = vshll.u32 %v2432_v15, %v542_v37  ;;  %v546_v42 = vshrl.u32 %v2432_v15, %v543_v61  ;;  %v549_v10 = vshrl.u32 %v2433_v20, %v543_v61 }
 0x132   :  { %v551_v31 = vshll.u32 %v2433_v20, %v542_v37  ;;  %v552_v47 = vshrl.u32 %v2434_v30, %v543_v61  ;;  %v401_v50 = vor.u32 4788187, %v400_v43  ;;  %v404_v52 = vcvt.s32.f32 %v397_v29 }
 0x133   :  { %v2754_v0 = vshrl.u32 %v486_v24, 30  ;;  %v554_v1 = vshll.u32 %v2434_v30, %v542_v37  ;;  %vm317_vm11 = vcmp.eq.s32.totalorder %v2728_v46, 2  ;;  %v408_v45 = vsub.s32 4, %v2653_v2 }
 0x134   :  { %v536_v3 = vor.u32 8388608, %v2629_v9  ;;  %v555_v15 = vshrl.u32 %v2435_v35, %v543_v61  ;;  %vm314_vm12 = vcmp.eq.s32.totalorder %v2728_v46, 0  ;;  %v402_v13 = vand.u32 2147483647, %v401_v50 }
 0x135   :  { %v488_v20 = vshll.u32 %v2754_v0, 30  ;;  %v544_v38 = vshrl.u32 %v2431_v12, %v543_v61  ;;  %v547_v62 = vor.u32 %v546_v42, %v545_v36  ;;  %vm313_vm13 = vcmp.lt.s32.totalorder %v2728_v46, 2 }
 0x136   :  { %v550_v28 = vor.u32 %v549_v10, %v548_v11  ;;  %v556_v30 = vor.u32 %v555_v15, %v554_v1  ;;  %v557_v7 = vshll.u32 %v2435_v35, %v542_v37  ;;  %v558_v55 = vshrl.u32 %v2436_v39, %v543_v61  ;;  %v2767_v22 = vpop.eup %2308 }
 0x137   :  { %v405_v9 = vmul.f32 %v404_v52, %v402_v13  ;;  %v2769_v8 = vsub.s32 %v485_v63, %v488_v20  ;;  %v553_v6 = vor.u32 %v552_v47, %v551_v31  ;;  %vm560_vm14 = vcmp.lt.s32.totalorder %v2740_v23, 1 }
 0x138   :  { %vm311_vm15 = vweird.f32 %v2510_v32  ;;  %v2776_v12 = vsel %vm324_vm9, %v408_v45, %v2653_v2  ;;  %vm563_vm0 = vcmp.lt.s32.totalorder %v2740_v23, 4  ;;  %v2779_v35 = vshll.u32 %v536_v3, 8 }
 0x139   :  { %2316 = vrsqrt.f32 %v2481_v18  ;;  %v406_v39 = vxor.u32 2147483648, %v405_v9  ;;  %v491_v27 = vsub.s32 0, %v2769_v8  ;;  %vm562_vm1 = vcmp.lt.s32.totalorder %v2740_v23, 3 }
 0x13a   :  { %v565_v4 = vsel %vm563_vm0, %v553_v6, 2102212464  ;;  %vm637_vm2 = vcmp.eq.f32.partialorder %v2479_v17, inf  ;;  %v559_v25 = vor.u32 %v558_v55, %v557_v7  ;;  %vm561_vm3 = vcmp.lt.s32.totalorder %v2740_v23, 2  ;;  %v2311_v37 = vpop.eup %2310 }
 0x13b   :  { %v568_v2 = vsel %vm560_vm14, %v547_v62, %v550_v28  ;;  %v569_v60 = vsel %vm563_vm0, %v556_v30, 920167782  ;;  %v407_v16 = vsel %vm324_vm9, %v406_v39, %v405_v9  ;;  %v2134_v34 = vmin.u32 %v491_v27, %v2769_v8  ;;  %v2313_v36 = vpop.eup %2312 }
 0x13c   :  { %v564_v63 = vsel %vm560_vm14, %v544_v38, %v547_v62  ;;  %v566_v61 = vsel %vm562_vm1, %v550_v28, %v565_v4  ;;  %v410_v29 = vsel %vm2745_vm10, %v2512_v33, %v407_v16  ;;  %v481_v43 = vadd.s32 %v2711_v41, %v2707_v49  ;;  %v2315_v42 = vpop.eup %2314 }
 0x13d   :  { %v570_v24 = vsel %vm562_vm1, %v553_v6, %v569_v60  ;;  %v572_v11 = vsel %vm560_vm14, %v550_v28, %v553_v6  ;;  %v318_v10 = vxor.u32 2147483648, %v2313_v36  ;;  %2318 = vcosq.f32 %v410_v29 }
 0x13e   :  { %v493_v31 = vclz %v2134_v34  ;;  %v571_v47 = vsel %vm561_vm3, %v568_v2, %v570_v24  ;;  %v315_v50 = vxor.u32 2147483648, %v2315_v42  ;;  %2320 = vsinq.f32 %v410_v29 }
 0x13f   :  { %v567_v52 = vsel %vm561_vm3, %v564_v63, %v566_v61  ;;  %v573_v49 = vsel %vm563_vm0, %v559_v25, 1326507024  ;;  %v319_v41 = vsel %vm317_vm11, %v318_v10, %v2315_v42  ;;  %v636_v3 = vmul.f32 %v2311_v37, %v2479_v17 }
 0x140   :  { %v2135_v1 = vadd.s32 4294967294, %v493_v31  ;;  %v574_v45 = vsel %vm562_vm1, %v556_v30, %v573_v49  ;;  %v316_v15 = vsel %vm314_vm12, %v2313_v36, %v315_v50  ;;  %v411_v7 = vsel %vm2745_vm10, 0, %v2776_v12 }
 0x141   :  { %v575_v13 = vsel %vm561_vm3, %v572_v11, %v574_v45  ;;  %v2824_v20 = vmul.u32.u64.low %v2779_v35, %v571_v47  ;;  %v2825_v38 = vmul.u32.u64.high %v2779_v35, %v571_v47, %v2824_v20  ;;  %v320_v62 = vsel %vm313_vm13, %v316_v15, %v319_v41 }
 0x142   :  { %vm2136_vm4 = vcmp.lt.s32.totalorder %v2135_v1, 0  ;;  %v2831_v28 = vmul.u32.u64.low %v2779_v35, %v575_v13  ;;  %v2832_v30 = vmul.u32.u64.high %v2779_v35, %v575_v13, %v2831_v28  ;;  %v583_v23 = vmul.u32 %v2779_v35, %v567_v52 }
 0x143   :  { %v496_v55 = vsel %vm2136_vm4, 0, %v2135_v1  ;;  %v640_v9 = vand.u32 2147483648, %v2479_v17  ;;  %v321_v6 = vsel %vm311_vm15, nan, %v320_v62  ;;  %v2843_v4 = vmul.f32 -2.0, %v2715_v54 }
 0x144   :  { %v497_v39 = vsub.s32 32, %v496_v55  ;;  %v498_v46 = vshll.u32 %v2769_v8, %v496_v55  ;;  %v501_v27 = vsub.s32 4294967266, %v496_v55  ;;  %v586_v25 = vadd.s32 1, %v2825_v38 }
 0x145   :  { %v638_v48 = vsel %vm637_vm2, %v2479_v17, %v636_v3  ;;  %vm639_vm5 = vcmp.eq.f32.partialorder %v2479_v17, 0.0  ;;  %v195_v32 = vmul.f32 %v2767_v22, %v2631_v5  ;;  %vm414_vm6 = vweird.f32 %v2512_v33 }
 0x146   :  { %v2317_v12 = vpop.eup %2316  ;;  %v499_v35 = vshrl.u32 %v481_v43, %v497_v39  ;;  %v502_v8 = vadd.s32 127, %v501_v27  ;;  %vm585_vm7 = vc.u32 %v2832_v30, %v2824_v20  ;;  %vm196_vm8 = vcmp.eq.f32.partialorder %v2631_v5, inf }
 0x147   :  { %v415_v54 = vand.u32 3, %v411_v7  ;;  %vm427_vm9 = vcmp.lt.s32.totalorder %v2517_v53, 0  ;;  %v587_v2 = vsel %vm585_vm7, %v586_v25, %v2825_v38  ;;  %v631_v60 = vmul.f32 %v321_v6, %v2721_v44 }
 0x148   :  { %v500_v37 = vor.u32 %v499_v35, %v498_v46  ;;  %v503_v16 = vshll.u32 %v502_v8, 23  ;;  %v588_v34 = vadd.s32 %v587_v2, %v583_v23  ;;  %v641_v22 = vsel %vm639_vm5, %v640_v9, %v638_v48 }
 0x149   :  { %vm198_vm10 = vcmp.eq.f32.partialorder %v2631_v5, 0.0  ;;  %v199_v63 = vand.u32 2147483648, %v2631_v5  ;;  %2322 = vrsqrt.f32 %v2843_v4  ;;  %vm2864_vm11 = vcmp.le.f32.partialorder %v425_v40, 0.7853982 }
 0x14a   :  { %v197_v36 = vsel %vm196_vm8, %v2631_v5, %v195_v32  ;;  %v504_v29 = vor.u32 4788187, %v503_v16  ;;  %v507_v44 = vcvt.s32.f32 %v500_v37  ;;  %v589_v43 = vadd.s32 536870912, %v588_v34  ;;  %v2319_v24 = vpop.eup %2318 }
 0x14b   :  { %vm417_vm12 = vcmp.eq.s32.totalorder %v415_v54, 0  ;;  %vm420_vm13 = vcmp.eq.s32.totalorder %v415_v54, 2  ;;  %v643_v11 = vmul.f32 %v2317_v12, %v2481_v18  ;;  %v663_v42 = vmul.f32 %v641_v22, %v631_v60  ;;  %v2321_v10 = vpop.eup %2320 }
 0x14c   :  { %v421_v31 = vxor.u32 2147483648, %v2319_v24  ;;  %v505_v47 = vand.u32 2147483647, %v504_v29  ;;  %v2870_v50 = vshrl.u32 %v589_v43, 30  ;;  %vm644_vm14 = vcmp.eq.f32.partialorder %v2481_v18, inf }
 0x14d   :  { %v200_v40 = vsel %vm198_vm10, %v199_v63, %v197_v36  ;;  %vm416_vm15 = vcmp.lt.s32.totalorder %v415_v54, 2  ;;  %v418_v52 = vxor.u32 2147483648, %v2321_v10  ;;  %v667_v49 = vadd.f32 %v663_v42, %v2479_v17 }
 0x14e   :  { %v422_v41 = vsel %vm420_vm13, %v421_v31, %v2321_v10  ;;  %v508_v1 = vmul.f32 %v507_v44, %v505_v47  ;;  %v591_v45 = vshll.u32 %v2870_v50, 30  ;;  %v647_v3 = vand.u32 2147483648, %v2481_v18 }
 0x14f   :  { %v419_v15 = vsel %vm417_vm12, %v2319_v24, %v418_v52  ;;  %v645_v13 = vsel %vm644_vm14, %v2481_v18, %v643_v11  ;;  %vm646_vm0 = vcmp.eq.f32.partialorder %v2481_v18, 0.0  ;;  %v671_v38 = vadd.f32 0.5, %v667_v49 }
 0x150   :  { %v423_v5 = vsel %vm416_vm15, %v419_v15, %v422_v41  ;;  %v509_v62 = vxor.u32 2147483648, %v508_v1  ;;  %v592_v28 = vsub.s32 %v588_v34, %v591_v45  ;;  %2324 = vrsqrt.f32 %v2483_v19 }
 0x151   :  { %v424_v7 = vsel %vm414_vm6, nan, %v423_v5  ;;  %v675_v55 = vfloor.f32 %v671_v38  ;;  %v648_v39 = vsel %vm646_vm0, %v647_v3, %v645_v13  ;;  %v511_v46 = vsub.s32 4, %v2754_v0 }
 0x152   :  { %v510_v23 = vsel %vm427_vm9, %v509_v62, %v508_v1  ;;  %v594_v9 = vsub.s32 0, %v592_v28  ;;  %v632_v6 = vmul.f32 %v424_v7, %v200_v40  ;;  %v2891_v48 = vstv %s2499_s0 }
 0x153   :  { %v513_v27 = vsel %vm2864_vm11, %v2517_v53, %v510_v23  ;;  %v679_v25 = vmax.f32 %v675_v55, 0.0  ;;  %v512_v54 = vsel %vm427_vm9, %v511_v46, %v2754_v0  ;;  %v2901_v60 = vstv %s3591_s2 }
 0x154   :  { %2326 = vcosq.f32 %v513_v27  ;;  %v2138_v12 = vmin.u32 %v594_v9, %v592_v28  ;;  %v664_v33 = vmul.f32 %v648_v39, %v632_v6  ;;  %v514_v22 = vsel %vm2864_vm11, 0, %v512_v54 }
 0x155   :  { %2328 = vsinq.f32 %v513_v27  ;;  %v684_v8 = vmul.f32 %v2891_v48, %v679_v25  ;;  %v584_v63 = vadd.s32 %v2824_v20, %v2832_v30  ;;  %v182_v0 = vmul.f32 0.6931472, %v2673_v51 }
 0x156   :  { %v2323_v32 = vpop.eup %2322  ;;  %v596_v35 = vclz %v2138_v12  ;;  %v668_v2 = vadd.f32 %v664_v33, %v2481_v18  ;;  %v518_v31 = vand.u32 3, %v514_v22  ;;  %vm203_vm2 = vcmp.eq.f32.partialorder %v2843_v4, inf }
 0x157   :  { %v688_v16 = vmax.f32 %v684_v8, 0.0  ;;  %v202_v10 = vmul.f32 %v2323_v32, %v2843_v4  ;;  %v2911_v30 = vmul.f32 -2.0, %v182_v0  ;;  %vm205_vm3 = vcmp.eq.f32.partialorder %v2843_v4, 0.0 }
 0x158   :  { %v2139_v37 = vadd.s32 4294967294, %v596_v35  ;;  %v672_v34 = vadd.f32 0.5, %v668_v2  ;;  %vm517_vm4 = vweird.f32 %v2517_v53  ;;  %v206_v40 = vand.u32 2147483648, %v2843_v4 }
 0x159   :  { %v693_v36 = vmin.f32 %v2901_v60, %v688_v16  ;;  %v204_v45 = vsel %vm203_vm2, %v2843_v4, %v202_v10  ;;  %vm523_vm5 = vcmp.eq.s32.totalorder %v518_v31, 2  ;;  %vm651_vm6 = vcmp.eq.f32.partialorder %v2483_v19, inf }
 0x15a   :  { %vm2140_vm1 = vcmp.lt.s32.totalorder %v2139_v37, 0  ;;  %v676_v44 = vfloor.f32 %v672_v34  ;;  %vm520_vm7 = vcmp.eq.s32.totalorder %v518_v31, 0  ;;  %vm519_vm8 = vcmp.lt.s32.totalorder %v518_v31, 2 }
 0x15b   :  { %v599_v29 = vsel %vm2140_vm1, 0, %v2139_v37  ;;  %699 = vst [vmem:[#allocation8] sm:$0xff] %v693_v36  ;;  %vm653_vm9 = vcmp.eq.f32.partialorder %v2483_v19, 0.0  ;;  %v207_v6 = vsel %vm205_vm3, %v206_v40, %v204_v45  ;;  %2330 = vrsqrt.f32 %v2911_v30 }
 0x15c   :  { %v600_v43 = vsub.s32 32, %v599_v29  ;;  %v601_v24 = vshll.u32 %v592_v28, %v599_v29  ;;  %v604_v11 = vsub.s32 4294967266, %v599_v29  ;;  %v680_v61 = vmax.f32 %v676_v44, 0.0 }
 0x15d   :  { %v2325_v42 = vpop.eup %2324  ;;  %v654_v28 = vand.u32 2147483648, %v2483_v19  ;;  %vm530_vm10 = vcmp.lt.s32.totalorder %v2576_v14, 0  ;;  %vm2932_vm11 = vcmp.le.f32.partialorder %v528_v26, 0.7853982  ;;  %2332 = vrsqrt.f32 %v2485_v21 }
 0x15e   :  { %v602_v47 = vshrl.u32 %v584_v63, %v600_v43  ;;  %v605_v20 = vadd.s32 127, %v604_v11  ;;  %v685_v51 = vmul.f32 %v2891_v48, %v680_v61  ;;  %v650_v41 = vmul.f32 %v2325_v42, %v2483_v19 }
 0x15f   :  { %v614_v54 = vsub.s32 4, %v2870_v50  ;;  %vm210_vm12 = vcmp.eq.f32.partialorder %v2911_v30, inf  ;;  %v213_v42 = vand.u32 2147483648, %v2911_v30  ;;  %vm658_vm14 = vcmp.eq.f32.partialorder %v2485_v21, inf }
 0x160   :  { %v603_v52 = vor.u32 %v602_v47, %v601_v24  ;;  %v606_v49 = vshll.u32 %v605_v20, 23  ;;  %v689_v3 = vmax.f32 %v685_v51, 0.0  ;;  %v652_v9 = vsel %vm651_vm6, %v2483_v19, %v650_v41 }
 0x161   :  { %v2327_v1 = vpop.eup %2326  ;;  %v655_v12 = vsel %vm653_vm9, %v654_v28, %v652_v9  ;;  %v615_v37 = vsel %vm530_vm10, %v614_v54, %v2870_v50  ;;  %vm212_vm15 = vcmp.eq.f32.partialorder %v2911_v30, 0.0  ;;  %v661_v20 = vand.u32 2147483648, %v2485_v21 }
 0x162   :  { %v2329_v15 = vpop.eup %2328  ;;  %v524_v13 = vxor.u32 2147483648, %v2327_v1  ;;  %v607_v38 = vor.u32 4788187, %v606_v49  ;;  %v610_v5 = vcvt.s32.f32 %v603_v52  ;;  %v694_v7 = vmin.f32 %v2901_v60, %v689_v3 }
 0x163   :  { %v521_v62 = vxor.u32 2147483648, %v2329_v15  ;;  %v617_v34 = vsel %vm2932_vm11, 0, %v615_v37  ;;  %vm620_vm2 = vweird.f32 %v2576_v14  ;;  %vm660_vm3 = vcmp.eq.f32.partialorder %v2485_v21, 0.0 }
 0x164   :  { %v525_v55 = vsel %vm523_vm5, %v524_v13, %v2329_v15  ;;  %v608_v23 = vand.u32 2147483647, %v607_v38  ;;  %700 = vst [vmem:[#allocation8 + $0x8] sm:$0xff] %v694_v7  ;;  %v621_v29 = vand.u32 3, %v617_v34 }
 0x165   :  { %v522_v39 = vsel %vm520_vm7, %v2327_v1, %v521_v62 }
 0x166   :  { %v526_v46 = vsel %vm519_vm8, %v522_v39, %v525_v55  ;;  %v611_v27 = vmul.f32 %v610_v5, %v608_v23  ;;  %vm626_vm13 = vcmp.eq.s32.totalorder %v621_v29, 2  ;;  %vm623_vm0 = vcmp.eq.s32.totalorder %v621_v29, 0 }
 0x167   :  { %v527_v25 = vsel %vm517_vm4, nan, %v526_v46  ;;  %vm622_vm1 = vcmp.lt.s32.totalorder %v621_v29, 2 }
 0x168   :  { %v612_v4 = vxor.u32 2147483648, %v611_v27  ;;  %v633_v32 = vmul.f32 %v527_v25, %v207_v6  ;;  %v2331_v63 = vpop.eup %2330 }
 0x169   :  { %v209_v44 = vmul.f32 %v2331_v63, %v2911_v30 }
 0x16a   :  { %v613_v35 = vsel %vm530_vm10, %v612_v4, %v611_v27  ;;  %v665_v8 = vmul.f32 %v655_v12, %v633_v32  ;;  %v2333_v0 = vpop.eup %2332 }
 0x16b   :  { %v616_v53 = vsel %vm2932_vm11, %v2576_v14, %v613_v35  ;;  %v657_v24 = vmul.f32 %v2333_v0, %v2485_v21  ;;  %v211_v31 = vsel %vm210_vm12, %v2911_v30, %v209_v44 }
 0x16c   :  { %2334 = vcosq.f32 %v616_v53  ;;  %v669_v2 = vadd.f32 %v665_v8, %v2483_v19  ;;  %v214_v52 = vsel %vm212_vm15, %v213_v42, %v211_v31 }
 0x16d   :  { %2336 = vsinq.f32 %v616_v53  ;;  %v659_v40 = vsel %vm658_vm14, %v2485_v21, %v657_v24 }
 0x16e   :  { %v673_v26 = vadd.f32 0.5, %v669_v2  ;;  %v662_v45 = vsel %vm660_vm3, %v661_v20, %v659_v40 }
 0x170   :  { %v677_v16 = vfloor.f32 %v673_v26 }
 0x172   :  { %v681_v22 = vmax.f32 %v677_v16, 0.0 }
 0x174   :  { %v686_v36 = vmul.f32 %v2891_v48, %v681_v22 }
 0x176   :  { %v690_v43 = vmax.f32 %v686_v36, 0.0 }
 0x178   :  { %v695_v11 = vmin.f32 %v2901_v60, %v690_v43 }
 0x179   :  { %v2335_v50 = vpop.eup %2334 }
 0x17a   :  { %v2337_v10 = vpop.eup %2336  ;;  %v627_v61 = vxor.u32 2147483648, %v2335_v50  ;;  %701 = vst [vmem:[#allocation8 + $0x10] sm:$0xff] %v695_v11 }
 0x17b   :  { %v624_v47 = vxor.u32 2147483648, %v2337_v10 }
 0x17c   :  { %v628_v51 = vsel %vm626_vm13, %v627_v61, %v2337_v10 }
 0x17d   :  { %v625_v49 = vsel %vm623_vm0, %v2335_v50, %v624_v47 }
 0x17e   :  { %v629_v41 = vsel %vm622_vm1, %v625_v49, %v628_v51 }
 0x17f   :  { %v630_v1 = vsel %vm620_vm2, nan, %v629_v41 }
 0x180   :  { %v634_v30 = vmul.f32 %v630_v1, %v214_v52 }
 0x182   :  { %v666_v3 = vmul.f32 %v662_v45, %v634_v30 }
 0x184   :  { %v670_v15 = vadd.f32 %v666_v3, %v2485_v21 }
 0x186   :  { %v674_v13 = vadd.f32 0.5, %v670_v15 }
 0x188   :  { %v678_v38 = vfloor.f32 %v674_v13 }
 0x18a   :  { %v682_v5 = vmax.f32 %v678_v38, 0.0 }
 0x18c   :  { %v687_v62 = vmul.f32 %v2891_v48, %v682_v5 }
 0x18e   :  { %v691_v14 = vmax.f32 %v687_v62, 0.0 }
 0x190   :  { %v696_v28 = vmin.f32 %v2901_v60, %v691_v14 }
 0x192   :  { %702 = vst [vmem:[#allocation8 + $0x18] sm:$0xff] %v696_v28 }
 0x193 PF:  { %705 = sbr.rel (%p119_p5) target bundleno = 771 (0x303), region = 29 }
 0x198   :  { %v706_v7 = vsub.f32 0.0, %v2479_v17  ;;  %v707_v55 = vsub.f32 0.0, %v2481_v18  ;;  %v708_v23 = vsub.f32 0.0, %v2483_v19  ;;  %v709_v9 = vsub.f32 0.0, %v2485_v21 }
 0x199   :  { %v718_v6 = vmul.u32 747796405, %v2491_v56  ;;  %v719_v48 = vmul.u32 747796405, %v2493_v57 }
 0x19a   :  { %v710_v39 = vmul.f32 1.442695, %v706_v7  ;;  %v712_v46 = vmul.f32 1.442695, %v707_v55  ;;  %v714_v60 = vmul.f32 1.442695, %v708_v23 }
 0x19b   :  { %v716_v27 = vmul.f32 1.442695, %v709_v9  ;;  %v720_v25 = vmul.u32 747796405, %v2495_v58  ;;  %v721_v12 = vmul.u32 747796405, %v2497_v59 }
 0x19c   :  { %2338 = vpow2.f32 %v710_v39  ;;  %v722_v33 = vadd.s32 2891336453, %v718_v6  ;;  %v723_v4 = vadd.s32 2891336453, %v719_v48 }
 0x19d   :  { %2340 = vpow2.f32 %v712_v46  ;;  %v724_v32 = vadd.s32 2891336453, %v720_v25  ;;  %v725_v35 = vadd.s32 2891336453, %v721_v12 }
 0x19e   :  { %2342 = vpow2.f32 %v714_v60  ;;  %v726_v8 = vshrl.u32 %v722_v33, 9  ;;  %v727_v54 = vshrl.u32 %v723_v4, 9  ;;  %v754_v56 = vmul.u32 747796405, %v722_v33 }
 0x19f   :  { %2344 = vpow2.f32 %v716_v27  ;;  %v728_v57 = vshrl.u32 %v724_v32, 9  ;;  %v729_v53 = vshrl.u32 %v725_v35, 9  ;;  %v755_v2 = vmul.u32 747796405, %v723_v4 }
 0x1a0   :  { %v730_v26 = vor.u32 1065353216, %v726_v8  ;;  %v731_v37 = vor.u32 1065353216, %v727_v54  ;;  %v756_v16 = vmul.u32 747796405, %v724_v32  ;;  %v757_v58 = vmul.u32 747796405, %v725_v35 }
 0x1a1   :  { %v732_v34 = vor.u32 1065353216, %v728_v57  ;;  %v733_v59 = vor.u32 1065353216, %v729_v53  ;;  %v758_v22 = vadd.s32 2891336453, %v754_v56  ;;  %v759_v63 = vadd.s32 2891336453, %v755_v2 }
 0x1a2   :  { %v2141_v36 = vadd.f32 -1.0, %v730_v26  ;;  %v2142_v0 = vadd.f32 -1.0, %v731_v37  ;;  %v760_v29 = vadd.s32 2891336453, %v756_v16  ;;  %v761_v44 = vadd.s32 2891336453, %v757_v58 }
 0x1a3   :  { %v2143_v43 = vadd.f32 -1.0, %v732_v34  ;;  %v2144_v24 = vadd.f32 -1.0, %v733_v59  ;;  %v762_v11 = vshrl.u32 %v758_v22, 9  ;;  %v763_v50 = vshrl.u32 %v759_v63, 9 }
 0x1a4   :  { %v764_v42 = vshrl.u32 %v760_v29, 9  ;;  %v765_v10 = vshrl.u32 %v761_v44, 9  ;;  %v794_v31 = vmul.u32 747796405, %v758_v22  ;;  %v795_v61 = vmul.u32 747796405, %v759_v63 }
 0x1a5   :  { %v766_v47 = vor.u32 1065353216, %v762_v11  ;;  %v767_v20 = vor.u32 1065353216, %v763_v50  ;;  %v796_v51 = vmul.u32 747796405, %v760_v29  ;;  %v797_v40 = vmul.u32 747796405, %v761_v44 }
 0x1a6   :  { %v768_v52 = vor.u32 1065353216, %v764_v42  ;;  %v769_v49 = vor.u32 1065353216, %v765_v10  ;;  %v798_v41 = vadd.s32 2891336453, %v794_v31  ;;  %v799_v1 = vadd.s32 2891336453, %v795_v61 }
 0x1a7   :  { %v2145_v45 = vadd.f32 -1.0, %v766_v47  ;;  %v2146_v30 = vadd.f32 -1.0, %v767_v20  ;;  %v800_v3 = vadd.s32 2891336453, %v796_v51  ;;  %v801_v15 = vadd.s32 2891336453, %v797_v40 }
 0x1a8   :  { %v2147_v13 = vadd.f32 -1.0, %v768_v52  ;;  %v2148_v38 = vadd.f32 -1.0, %v769_v49  ;;  %v802_v5 = vshrl.u32 %v798_v41, 9  ;;  %v803_v62 = vshrl.u32 %v799_v1, 9 }
 0x1a9   :  { %v2971_v14 = vpop.eup %2338  ;;  %v778_v28 = vmul.f32 %v2145_v45, %v2141_v36  ;;  %v779_v7 = vmul.f32 %v2146_v30, %v2142_v0  ;;  %v804_v55 = vshrl.u32 %v800_v3, 9  ;;  %v805_v23 = vshrl.u32 %v801_v15, 9 }
 0x1aa   :  { %v2973_v9 = vpop.eup %2340  ;;  %vm742_vm4 = vcmp.gt.f32.partialorder %v2141_v36, %v2971_v14  ;;  %v780_v6 = vmul.f32 %v2147_v13, %v2143_v43  ;;  %v781_v48 = vmul.f32 %v2148_v38, %v2144_v24  ;;  %v806_v39 = vor.u32 1065353216, %v802_v5 }
 0x1ab   :  { %v2976_v46 = vpop.eup %2342  ;;  %vm743_vm5 = vcmp.gt.f32.partialorder %v2142_v0, %v2973_v9  ;;  %v2437_v60 = vmov 0.0   ;;  %vm782_vm6 = vcmp.gt.f32.partialorder %v778_v28, %v2971_v14  ;;  %vm783_vm7 = vcmp.gt.f32.partialorder %v779_v7, %v2973_v9 }
 0x1ac   :  { %v746_v27 = vsel %vm742_vm4, 1.0, %v2437_v60  ;;  %v2982_v25 = vpop.eup %2344  ;;  %vm744_vm8 = vcmp.gt.f32.partialorder %v2143_v43, %v2976_v46  ;;  %v747_v12 = vsel %vm743_vm5, 1.0, %v2437_v60  ;;  %vm784_vm9 = vcmp.gt.f32.partialorder %v780_v6, %v2976_v46 }
 0x1ad   :  { %v786_v33 = vsel %vm782_vm6, 1.0, %v2437_v60  ;;  %vm745_vm10 = vcmp.gt.f32.partialorder %v2144_v24, %v2982_v25  ;;  %v748_v4 = vsel %vm744_vm8, 1.0, %v2437_v60  ;;  %vm785_vm11 = vcmp.gt.f32.partialorder %v781_v48, %v2982_v25 }
 0x1ae   :  { %v787_v32 = vsel %vm783_vm7, 1.0, %v2437_v60  ;;  %v749_v35 = vsel %vm745_vm10, 1.0, %v2437_v60  ;;  %v788_v8 = vsel %vm784_vm9, 1.0, %v2437_v60  ;;  %v789_v54 = vsel %vm785_vm11, 1.0, %v2437_v60 }
 0x1af   :  { %v790_v56 = vadd.f32 %v786_v33, %v746_v27  ;;  %v791_v57 = vadd.f32 %v787_v32, %v747_v12  ;;  %v792_v53 = vadd.f32 %v788_v8, %v748_v4  ;;  %v793_v2 = vadd.f32 %v789_v54, %v749_v35 }
 0x1b0   :  { %v807_v26 = vor.u32 1065353216, %v803_v62  ;;  %v808_v37 = vor.u32 1065353216, %v804_v55  ;;  %v809_v16 = vor.u32 1065353216, %v805_v23  ;;  %v2149_v58 = vadd.f32 -1.0, %v806_v39 }
 0x1b1   :  { %v834_v34 = vmul.u32 747796405, %v798_v41  ;;  %v835_v22 = vmul.u32 747796405, %v799_v1 }
 0x1b2   :  { %v2150_v59 = vadd.f32 -1.0, %v807_v26  ;;  %v836_v63 = vmul.u32 747796405, %v800_v3  ;;  %v2151_v36 = vadd.f32 -1.0, %v808_v37  ;;  %v2152_v0 = vadd.f32 -1.0, %v809_v16 }
 0x1b3   :  { %v818_v29 = vmul.f32 %v2149_v58, %v778_v28  ;;  %v837_v44 = vmul.u32 747796405, %v801_v15  ;;  %v838_v24 = vadd.s32 2891336453, %v834_v34  ;;  %v839_v11 = vadd.s32 2891336453, %v835_v22 }
 0x1b4   :  { %v819_v43 = vmul.f32 %v2150_v59, %v779_v7  ;;  %v840_v50 = vadd.s32 2891336453, %v836_v63  ;;  %v820_v42 = vmul.f32 %v2151_v36, %v780_v6  ;;  %v821_v10 = vmul.f32 %v2152_v0, %v781_v48 }
 0x1b5   :  { %vm822_vm12 = vcmp.gt.f32.partialorder %v818_v29, %v2971_v14  ;;  %v841_v31 = vadd.s32 2891336453, %v837_v44  ;;  %v842_v47 = vshrl.u32 %v838_v24, 9  ;;  %v843_v20 = vshrl.u32 %v839_v11, 9 }
 0x1b6   :  { %vm823_vm13 = vcmp.gt.f32.partialorder %v819_v43, %v2973_v9  ;;  %v826_v61 = vsel %vm822_vm12, 1.0, %v2437_v60  ;;  %vm824_vm14 = vcmp.gt.f32.partialorder %v820_v42, %v2976_v46  ;;  %vm825_vm15 = vcmp.gt.f32.partialorder %v821_v10, %v2982_v25 }
 0x1b7   :  { %v827_v51 = vsel %vm823_vm13, 1.0, %v2437_v60  ;;  %v830_v40 = vadd.f32 %v826_v61, %v790_v56  ;;  %v828_v52 = vsel %vm824_vm14, 1.0, %v2437_v60  ;;  %v829_v49 = vsel %vm825_vm15, 1.0, %v2437_v60 }
 0x1b8   :  { %v831_v41 = vadd.f32 %v827_v51, %v791_v57  ;;  %v844_v1 = vshrl.u32 %v840_v50, 9  ;;  %v832_v45 = vadd.f32 %v828_v52, %v792_v53  ;;  %v833_v30 = vadd.f32 %v829_v49, %v793_v2 }
 0x1b9   :  { %v845_v3 = vshrl.u32 %v841_v31, 9  ;;  %v846_v15 = vor.u32 1065353216, %v842_v47  ;;  %v847_v13 = vor.u32 1065353216, %v843_v20  ;;  %v874_v5 = vmul.u32 747796405, %v838_v24 }
 0x1ba   :  { %v848_v38 = vor.u32 1065353216, %v844_v1  ;;  %v875_v62 = vmul.u32 747796405, %v839_v11  ;;  %v876_v55 = vmul.u32 747796405, %v840_v50 }
 0x1bb   :  { %v849_v28 = vor.u32 1065353216, %v845_v3  ;;  %v2153_v7 = vadd.f32 -1.0, %v846_v15  ;;  %v877_v23 = vmul.u32 747796405, %v841_v31  ;;  %v2154_v6 = vadd.f32 -1.0, %v847_v13 }
 0x1bc   :  { %v2155_v48 = vadd.f32 -1.0, %v848_v38  ;;  %v878_v39 = vadd.s32 2891336453, %v874_v5  ;;  %v879_v27 = vadd.s32 2891336453, %v875_v62 }
 0x1bd   :  { %v2156_v12 = vadd.f32 -1.0, %v849_v28  ;;  %v858_v33 = vmul.f32 %v2153_v7, %v818_v29  ;;  %v880_v4 = vadd.s32 2891336453, %v876_v55  ;;  %v881_v32 = vadd.s32 2891336453, %v877_v23 }
 0x1be   :  { %v859_v35 = vmul.f32 %v2154_v6, %v819_v43  ;;  %v860_v8 = vmul.f32 %v2155_v48, %v820_v42  ;;  %v882_v54 = vshrl.u32 %v878_v39, 9  ;;  %v883_v56 = vshrl.u32 %v879_v27, 9 }
 0x1bf   :  { %v861_v57 = vmul.f32 %v2156_v12, %v821_v10  ;;  %vm862_vm0 = vcmp.gt.f32.partialorder %v858_v33, %v2971_v14  ;;  %v884_v53 = vshrl.u32 %v880_v4, 9  ;;  %v885_v2 = vshrl.u32 %v881_v32, 9 }
 0x1c0   :  { %vm863_vm1 = vcmp.gt.f32.partialorder %v859_v35, %v2973_v9  ;;  %vm864_vm2 = vcmp.gt.f32.partialorder %v860_v8, %v2976_v46  ;;  %v866_v26 = vsel %vm862_vm0, 1.0, %v2437_v60  ;;  %v886_v37 = vor.u32 1065353216, %v882_v54 }
 0x1c1   :  { %vm865_vm3 = vcmp.gt.f32.partialorder %v861_v57, %v2982_v25  ;;  %v867_v16 = vsel %vm863_vm1, 1.0, %v2437_v60  ;;  %v868_v58 = vsel %vm864_vm2, 1.0, %v2437_v60  ;;  %v870_v34 = vadd.f32 %v866_v26, %v830_v40 }
 0x1c2   :  { %v869_v59 = vsel %vm865_vm3, 1.0, %v2437_v60  ;;  %v871_v22 = vadd.f32 %v867_v16, %v831_v41  ;;  %v872_v63 = vadd.f32 %v868_v58, %v832_v45  ;;  %v887_v36 = vor.u32 1065353216, %v883_v56 }
 0x1c3   :  { %v873_v0 = vadd.f32 %v869_v59, %v833_v30  ;;  %v888_v29 = vor.u32 1065353216, %v884_v53  ;;  %v889_v44 = vor.u32 1065353216, %v885_v2  ;;  %v2157_v43 = vadd.f32 -1.0, %v886_v37 }
 0x1c4   :  { %v2158_v24 = vadd.f32 -1.0, %v887_v36  ;;  %v914_v11 = vmul.u32 747796405, %v878_v39  ;;  %v915_v50 = vmul.u32 747796405, %v879_v27 }
 0x1c5   :  { %v2159_v42 = vadd.f32 -1.0, %v888_v29  ;;  %v2160_v10 = vadd.f32 -1.0, %v889_v44  ;;  %v898_v31 = vmul.f32 %v2157_v43, %v858_v33  ;;  %v916_v61 = vmul.u32 747796405, %v880_v4 }
 0x1c6   :  { %v899_v47 = vmul.f32 %v2158_v24, %v859_v35  ;;  %v917_v20 = vmul.u32 747796405, %v881_v32  ;;  %v918_v51 = vadd.s32 2891336453, %v914_v11  ;;  %v919_v40 = vadd.s32 2891336453, %v915_v50 }
 0x1c7   :  { %v900_v52 = vmul.f32 %v2159_v42, %v860_v8  ;;  %v901_v49 = vmul.f32 %v2160_v10, %v861_v57  ;;  %vm902_vm4 = vcmp.gt.f32.partialorder %v898_v31, %v2971_v14  ;;  %v920_v41 = vadd.s32 2891336453, %v916_v61 }
 0x1c8   :  { %vm903_vm5 = vcmp.gt.f32.partialorder %v899_v47, %v2973_v9  ;;  %v906_v1 = vsel %vm902_vm4, 1.0, %v2437_v60  ;;  %v921_v45 = vadd.s32 2891336453, %v917_v20  ;;  %v922_v30 = vshrl.u32 %v918_v51, 9 }
 0x1c9   :  { %vm904_vm6 = vcmp.gt.f32.partialorder %v900_v52, %v2976_v46  ;;  %vm905_vm7 = vcmp.gt.f32.partialorder %v901_v49, %v2982_v25  ;;  %v907_v3 = vsel %vm903_vm5, 1.0, %v2437_v60  ;;  %v910_v15 = vadd.f32 %v906_v1, %v870_v34 }
 0x1ca   :  { %v908_v13 = vsel %vm904_vm6, 1.0, %v2437_v60  ;;  %v909_v38 = vsel %vm905_vm7, 1.0, %v2437_v60  ;;  %v911_v5 = vadd.f32 %v907_v3, %v871_v22  ;;  %v923_v62 = vshrl.u32 %v919_v40, 9 }
 0x1cb   :  { %v912_v28 = vadd.f32 %v908_v13, %v872_v63  ;;  %v913_v7 = vadd.f32 %v909_v38, %v873_v0  ;;  %v924_v55 = vshrl.u32 %v920_v41, 9  ;;  %v925_v23 = vshrl.u32 %v921_v45, 9 }
 0x1cc   :  { %v926_v6 = vor.u32 1065353216, %v922_v30  ;;  %v927_v48 = vor.u32 1065353216, %v923_v62  ;;  %v954_v39 = vmul.u32 747796405, %v918_v51  ;;  %v955_v27 = vmul.u32 747796405, %v919_v40 }
 0x1cd   :  { %v928_v12 = vor.u32 1065353216, %v924_v55  ;;  %v929_v33 = vor.u32 1065353216, %v925_v23  ;;  %v956_v4 = vmul.u32 747796405, %v920_v41  ;;  %v957_v32 = vmul.u32 747796405, %v921_v45 }
 0x1ce   :  { %v2161_v35 = vadd.f32 -1.0, %v926_v6  ;;  %v2162_v8 = vadd.f32 -1.0, %v927_v48  ;;  %v958_v54 = vadd.s32 2891336453, %v954_v39  ;;  %v959_v56 = vadd.s32 2891336453, %v955_v27 }
 0x1cf   :  { %v2163_v57 = vadd.f32 -1.0, %v928_v12  ;;  %v2164_v53 = vadd.f32 -1.0, %v929_v33  ;;  %v960_v2 = vadd.s32 2891336453, %v956_v4  ;;  %v961_v26 = vadd.s32 2891336453, %v957_v32 }
 0x1d0   :  { %v938_v37 = vmul.f32 %v2161_v35, %v898_v31  ;;  %v939_v16 = vmul.f32 %v2162_v8, %v899_v47  ;;  %v962_v58 = vshrl.u32 %v958_v54, 9  ;;  %v963_v34 = vshrl.u32 %v959_v56, 9 }
 0x1d1   :  { %v940_v59 = vmul.f32 %v2163_v57, %v900_v52  ;;  %v941_v22 = vmul.f32 %v2164_v53, %v901_v49  ;;  %v964_v63 = vshrl.u32 %v960_v2, 9  ;;  %v965_v36 = vshrl.u32 %v961_v26, 9 }
 0x1d2   :  { %vm942_vm8 = vcmp.gt.f32.partialorder %v938_v37, %v2971_v14  ;;  %vm943_vm9 = vcmp.gt.f32.partialorder %v939_v16, %v2973_v9  ;;  %v966_v0 = vor.u32 1065353216, %v962_v58  ;;  %v967_v29 = vor.u32 1065353216, %v963_v34 }
 0x1d3   :  { %vm944_vm10 = vcmp.gt.f32.partialorder %v940_v59, %v2976_v46  ;;  %vm945_vm11 = vcmp.gt.f32.partialorder %v941_v22, %v2982_v25  ;;  %v946_v44 = vsel %vm942_vm8, 1.0, %v2437_v60  ;;  %v947_v43 = vsel %vm943_vm9, 1.0, %v2437_v60 }
 0x1d4   :  { %v948_v24 = vsel %vm944_vm10, 1.0, %v2437_v60  ;;  %v949_v11 = vsel %vm945_vm11, 1.0, %v2437_v60  ;;  %v950_v50 = vadd.f32 %v946_v44, %v910_v15  ;;  %v951_v42 = vadd.f32 %v947_v43, %v911_v5 }
 0x1d5   :  { %v952_v10 = vadd.f32 %v948_v24, %v912_v28  ;;  %v953_v31 = vadd.f32 %v949_v11, %v913_v7  ;;  %v968_v61 = vor.u32 1065353216, %v964_v63  ;;  %v969_v47 = vor.u32 1065353216, %v965_v36 }
 0x1d6   :  { %v2165_v20 = vadd.f32 -1.0, %v966_v0  ;;  %v2166_v51 = vadd.f32 -1.0, %v967_v29  ;;  %v994_v40 = vmul.u32 747796405, %v958_v54  ;;  %v995_v52 = vmul.u32 747796405, %v959_v56 }
 0x1d7   :  { %v2167_v49 = vadd.f32 -1.0, %v968_v61  ;;  %v2168_v41 = vadd.f32 -1.0, %v969_v47  ;;  %v996_v1 = vmul.u32 747796405, %v960_v2  ;;  %v997_v45 = vmul.u32 747796405, %v961_v26 }
 0x1d8   :  { %v978_v30 = vmul.f32 %v2165_v20, %v938_v37  ;;  %v979_v3 = vmul.f32 %v2166_v51, %v939_v16  ;;  %v998_v13 = vadd.s32 2891336453, %v994_v40  ;;  %v999_v38 = vadd.s32 2891336453, %v995_v52 }
 0x1d9   :  { %v980_v62 = vmul.f32 %v2167_v49, %v940_v59  ;;  %v981_v55 = vmul.f32 %v2168_v41, %v941_v22  ;;  %v1000_v15 = vadd.s32 2891336453, %v996_v1  ;;  %v1001_v5 = vadd.s32 2891336453, %v997_v45 }
 0x1da   :  { %vm982_vm12 = vcmp.gt.f32.partialorder %v978_v30, %v2971_v14  ;;  %vm983_vm13 = vcmp.gt.f32.partialorder %v979_v3, %v2973_v9  ;;  %v1002_v28 = vshrl.u32 %v998_v13, 9  ;;  %v1003_v7 = vshrl.u32 %v999_v38, 9 }
 0x1db   :  { %vm984_vm14 = vcmp.gt.f32.partialorder %v980_v62, %v2976_v46  ;;  %vm985_vm15 = vcmp.gt.f32.partialorder %v981_v55, %v2982_v25  ;;  %v986_v23 = vsel %vm982_vm12, 1.0, %v2437_v60  ;;  %v987_v6 = vsel %vm983_vm13, 1.0, %v2437_v60 }
 0x1dc   :  { %v988_v48 = vsel %vm984_vm14, 1.0, %v2437_v60  ;;  %v989_v39 = vsel %vm985_vm15, 1.0, %v2437_v60  ;;  %v990_v27 = vadd.f32 %v986_v23, %v950_v50  ;;  %v991_v12 = vadd.f32 %v987_v6, %v951_v42 }
 0x1dd   :  { %v992_v33 = vadd.f32 %v988_v48, %v952_v10  ;;  %v993_v4 = vadd.f32 %v989_v39, %v953_v31  ;;  %v1004_v32 = vshrl.u32 %v1000_v15, 9  ;;  %v1005_v35 = vshrl.u32 %v1001_v5, 9 }
 0x1de   :  { %v1006_v8 = vor.u32 1065353216, %v1002_v28  ;;  %v1007_v54 = vor.u32 1065353216, %v1003_v7  ;;  %v1034_v56 = vmul.u32 747796405, %v998_v13  ;;  %v1035_v57 = vmul.u32 747796405, %v999_v38 }
 0x1df   :  { %v1008_v53 = vor.u32 1065353216, %v1004_v32  ;;  %v1009_v2 = vor.u32 1065353216, %v1005_v35  ;;  %v1036_v26 = vmul.u32 747796405, %v1000_v15  ;;  %v1037_v37 = vmul.u32 747796405, %v1001_v5 }
 0x1e0   :  { %v2169_v16 = vadd.f32 -1.0, %v1006_v8  ;;  %v2170_v58 = vadd.f32 -1.0, %v1007_v54  ;;  %v1038_v34 = vadd.s32 2891336453, %v1034_v56  ;;  %v1039_v59 = vadd.s32 2891336453, %v1035_v57 }
 0x1e1   :  { %v2171_v22 = vadd.f32 -1.0, %v1008_v53  ;;  %v2172_v63 = vadd.f32 -1.0, %v1009_v2  ;;  %v1040_v36 = vadd.s32 2891336453, %v1036_v26  ;;  %v1041_v0 = vadd.s32 2891336453, %v1037_v37 }
 0x1e2   :  { %v1018_v29 = vmul.f32 %v2169_v16, %v978_v30  ;;  %v1019_v44 = vmul.f32 %v2170_v58, %v979_v3  ;;  %v1042_v43 = vshrl.u32 %v1038_v34, 9  ;;  %v1043_v24 = vshrl.u32 %v1039_v59, 9 }
 0x1e3   :  { %v1020_v11 = vmul.f32 %v2171_v22, %v980_v62  ;;  %v1021_v50 = vmul.f32 %v2172_v63, %v981_v55  ;;  %v1044_v42 = vshrl.u32 %v1040_v36, 9  ;;  %v1045_v10 = vshrl.u32 %v1041_v0, 9 }
 0x1e4   :  { %vm1022_vm0 = vcmp.gt.f32.partialorder %v1018_v29, %v2971_v14  ;;  %vm1023_vm1 = vcmp.gt.f32.partialorder %v1019_v44, %v2973_v9  ;;  %v1046_v31 = vor.u32 1065353216, %v1042_v43  ;;  %v1047_v61 = vor.u32 1065353216, %v1043_v24 }
 0x1e5   :  { %vm1024_vm2 = vcmp.gt.f32.partialorder %v1020_v11, %v2976_v46  ;;  %vm1025_vm3 = vcmp.gt.f32.partialorder %v1021_v50, %v2982_v25  ;;  %v1026_v47 = vsel %vm1022_vm0, 1.0, %v2437_v60  ;;  %v1027_v20 = vsel %vm1023_vm1, 1.0, %v2437_v60 }
 0x1e6   :  { %v1028_v51 = vsel %vm1024_vm2, 1.0, %v2437_v60  ;;  %v1029_v40 = vsel %vm1025_vm3, 1.0, %v2437_v60  ;;  %v1030_v52 = vadd.f32 %v1026_v47, %v990_v27  ;;  %v1031_v49 = vadd.f32 %v1027_v20, %v991_v12 }
 0x1e7   :  { %v1032_v41 = vadd.f32 %v1028_v51, %v992_v33  ;;  %v1033_v1 = vadd.f32 %v1029_v40, %v993_v4  ;;  %v1048_v45 = vor.u32 1065353216, %v1044_v42  ;;  %v1049_v30 = vor.u32 1065353216, %v1045_v10 }
 0x1e8   :  { %v2173_v3 = vadd.f32 -1.0, %v1046_v31  ;;  %v2174_v13 = vadd.f32 -1.0, %v1047_v61  ;;  %v1074_v38 = vmul.u32 747796405, %v1038_v34  ;;  %v1075_v62 = vmul.u32 747796405, %v1039_v59 }
 0x1e9   :  { %v2175_v55 = vadd.f32 -1.0, %v1048_v45  ;;  %v2176_v15 = vadd.f32 -1.0, %v1049_v30  ;;  %v1076_v5 = vmul.u32 747796405, %v1040_v36  ;;  %v1077_v28 = vmul.u32 747796405, %v1041_v0 }
 0x1ea   :  { %v1058_v7 = vmul.f32 %v2173_v3, %v1018_v29  ;;  %v1059_v23 = vmul.f32 %v2174_v13, %v1019_v44  ;;  %v1078_v6 = vadd.s32 2891336453, %v1074_v38  ;;  %v1079_v48 = vadd.s32 2891336453, %v1075_v62 }
 0x1eb   :  { %v1060_v39 = vmul.f32 %v2175_v55, %v1020_v11  ;;  %v1061_v32 = vmul.f32 %v2176_v15, %v1021_v50  ;;  %v1080_v27 = vadd.s32 2891336453, %v1076_v5  ;;  %v1081_v12 = vadd.s32 2891336453, %v1077_v28 }
 0x1ec   :  { %vm1062_vm4 = vcmp.gt.f32.partialorder %v1058_v7, %v2971_v14  ;;  %vm1063_vm5 = vcmp.gt.f32.partialorder %v1059_v23, %v2973_v9  ;;  %v1082_v33 = vshrl.u32 %v1078_v6, 9  ;;  %v1083_v4 = vshrl.u32 %v1079_v48, 9 }
 0x1ed   :  { %vm1064_vm6 = vcmp.gt.f32.partialorder %v1060_v39, %v2976_v46  ;;  %vm1065_vm7 = vcmp.gt.f32.partialorder %v1061_v32, %v2982_v25  ;;  %v1066_v35 = vsel %vm1062_vm4, 1.0, %v2437_v60  ;;  %v1067_v8 = vsel %vm1063_vm5, 1.0, %v2437_v60 }
 0x1ee   :  { %v1068_v54 = vsel %vm1064_vm6, 1.0, %v2437_v60  ;;  %v1069_v56 = vsel %vm1065_vm7, 1.0, %v2437_v60  ;;  %v1070_v57 = vadd.f32 %v1066_v35, %v1030_v52  ;;  %v1071_v53 = vadd.f32 %v1067_v8, %v1031_v49 }
 0x1ef   :  { %v1072_v2 = vadd.f32 %v1068_v54, %v1032_v41  ;;  %v1073_v26 = vadd.f32 %v1069_v56, %v1033_v1  ;;  %v1084_v37 = vshrl.u32 %v1080_v27, 9  ;;  %v1085_v16 = vshrl.u32 %v1081_v12, 9 }
 0x1f0   :  { %v1086_v58 = vor.u32 1065353216, %v1082_v33  ;;  %v1087_v34 = vor.u32 1065353216, %v1083_v4  ;;  %v1114_v59 = vmul.u32 747796405, %v1078_v6  ;;  %v1115_v22 = vmul.u32 747796405, %v1079_v48 }
 0x1f1   :  { %v1088_v63 = vor.u32 1065353216, %v1084_v37  ;;  %v1089_v36 = vor.u32 1065353216, %v1085_v16  ;;  %v1116_v0 = vmul.u32 747796405, %v1080_v27  ;;  %v1117_v29 = vmul.u32 747796405, %v1081_v12 }
 0x1f2   :  { %v2177_v44 = vadd.f32 -1.0, %v1086_v58  ;;  %v2178_v43 = vadd.f32 -1.0, %v1087_v34  ;;  %v1118_v24 = vadd.s32 2891336453, %v1114_v59  ;;  %v1119_v11 = vadd.s32 2891336453, %v1115_v22 }
 0x1f3   :  { %v2179_v50 = vadd.f32 -1.0, %v1088_v63  ;;  %v2180_v42 = vadd.f32 -1.0, %v1089_v36  ;;  %v1120_v10 = vadd.s32 2891336453, %v1116_v0  ;;  %v1121_v31 = vadd.s32 2891336453, %v1117_v29 }
 0x1f4   :  { %v1098_v61 = vmul.f32 %v2177_v44, %v1058_v7  ;;  %v1099_v47 = vmul.f32 %v2178_v43, %v1059_v23  ;;  %v1122_v20 = vshrl.u32 %v1118_v24, 9  ;;  %v1123_v51 = vshrl.u32 %v1119_v11, 9 }
 0x1f5   :  { %v1100_v40 = vmul.f32 %v2179_v50, %v1060_v39  ;;  %v1101_v52 = vmul.f32 %v2180_v42, %v1061_v32  ;;  %v1124_v49 = vshrl.u32 %v1120_v10, 9  ;;  %v1125_v41 = vshrl.u32 %v1121_v31, 9 }
 0x1f6   :  { %vm1102_vm8 = vcmp.gt.f32.partialorder %v1098_v61, %v2971_v14  ;;  %vm1103_vm9 = vcmp.gt.f32.partialorder %v1099_v47, %v2973_v9  ;;  %v1126_v1 = vor.u32 1065353216, %v1122_v20  ;;  %v1127_v45 = vor.u32 1065353216, %v1123_v51 }
 0x1f7   :  { %vm1104_vm10 = vcmp.gt.f32.partialorder %v1100_v40, %v2976_v46  ;;  %vm1105_vm11 = vcmp.gt.f32.partialorder %v1101_v52, %v2982_v25  ;;  %v1106_v30 = vsel %vm1102_vm8, 1.0, %v2437_v60  ;;  %v1107_v3 = vsel %vm1103_vm9, 1.0, %v2437_v60 }
 0x1f8   :  { %v1108_v13 = vsel %vm1104_vm10, 1.0, %v2437_v60  ;;  %v1109_v38 = vsel %vm1105_vm11, 1.0, %v2437_v60  ;;  %v1110_v62 = vadd.f32 %v1106_v30, %v1070_v57  ;;  %v1111_v55 = vadd.f32 %v1107_v3, %v1071_v53 }
 0x1f9   :  { %v1112_v15 = vadd.f32 %v1108_v13, %v1072_v2  ;;  %v1113_v5 = vadd.f32 %v1109_v38, %v1073_v26  ;;  %v1128_v28 = vor.u32 1065353216, %v1124_v49  ;;  %v1129_v7 = vor.u32 1065353216, %v1125_v41 }
 0x1fa   :  { %v2181_v23 = vadd.f32 -1.0, %v1126_v1  ;;  %v2182_v6 = vadd.f32 -1.0, %v1127_v45  ;;  %v1154_v48 = vmul.u32 747796405, %v1118_v24  ;;  %v1155_v39 = vmul.u32 747796405, %v1119_v11 }
 0x1fb   :  { %v2183_v32 = vadd.f32 -1.0, %v1128_v28  ;;  %v2184_v27 = vadd.f32 -1.0, %v1129_v7  ;;  %v1156_v12 = vmul.u32 747796405, %v1120_v10  ;;  %v1157_v33 = vmul.u32 747796405, %v1121_v31 }
 0x1fc   :  { %v1138_v4 = vmul.f32 %v2181_v23, %v1098_v61  ;;  %v1139_v35 = vmul.f32 %v2182_v6, %v1099_v47  ;;  %v1158_v8 = vadd.s32 2891336453, %v1154_v48  ;;  %v1159_v54 = vadd.s32 2891336453, %v1155_v39 }
 0x1fd   :  { %v1140_v56 = vmul.f32 %v2183_v32, %v1100_v40  ;;  %v1141_v37 = vmul.f32 %v2184_v27, %v1101_v52  ;;  %v1160_v57 = vadd.s32 2891336453, %v1156_v12  ;;  %v1161_v53 = vadd.s32 2891336453, %v1157_v33 }
 0x1fe   :  { %vm1142_vm12 = vcmp.gt.f32.partialorder %v1138_v4, %v2971_v14  ;;  %vm1143_vm13 = vcmp.gt.f32.partialorder %v1139_v35, %v2973_v9  ;;  %v1162_v2 = vshrl.u32 %v1158_v8, 9  ;;  %v1163_v26 = vshrl.u32 %v1159_v54, 9 }
 0x1ff   :  { %vm1144_vm14 = vcmp.gt.f32.partialorder %v1140_v56, %v2976_v46  ;;  %vm1145_vm15 = vcmp.gt.f32.partialorder %v1141_v37, %v2982_v25  ;;  %v1146_v16 = vsel %vm1142_vm12, 1.0, %v2437_v60  ;;  %v1147_v58 = vsel %vm1143_vm13, 1.0, %v2437_v60 }
 0x200   :  { %v1148_v34 = vsel %vm1144_vm14, 1.0, %v2437_v60  ;;  %v1149_v59 = vsel %vm1145_vm15, 1.0, %v2437_v60  ;;  %v1150_v22 = vadd.f32 %v1146_v16, %v1110_v62  ;;  %v1151_v63 = vadd.f32 %v1147_v58, %v1111_v55 }
 0x201   :  { %v1152_v36 = vadd.f32 %v1148_v34, %v1112_v15  ;;  %v1153_v0 = vadd.f32 %v1149_v59, %v1113_v5  ;;  %v1164_v29 = vshrl.u32 %v1160_v57, 9  ;;  %v1165_v44 = vshrl.u32 %v1161_v53, 9 }
 0x202   :  { %v1166_v43 = vor.u32 1065353216, %v1162_v2  ;;  %v1167_v24 = vor.u32 1065353216, %v1163_v26  ;;  %v1194_v11 = vmul.u32 747796405, %v1158_v8  ;;  %v1195_v50 = vmul.u32 747796405, %v1159_v54 }
 0x203   :  { %v1168_v42 = vor.u32 1065353216, %v1164_v29  ;;  %v1169_v10 = vor.u32 1065353216, %v1165_v44  ;;  %v1196_v31 = vmul.u32 747796405, %v1160_v57  ;;  %v1197_v61 = vmul.u32 747796405, %v1161_v53 }
 0x204   :  { %v2185_v47 = vadd.f32 -1.0, %v1166_v43  ;;  %v2186_v20 = vadd.f32 -1.0, %v1167_v24  ;;  %v1198_v51 = vadd.s32 2891336453, %v1194_v11  ;;  %v1199_v40 = vadd.s32 2891336453, %v1195_v50 }
 0x205   :  { %v2187_v52 = vadd.f32 -1.0, %v1168_v42  ;;  %v2188_v49 = vadd.f32 -1.0, %v1169_v10  ;;  %v1200_v41 = vadd.s32 2891336453, %v1196_v31  ;;  %v1201_v1 = vadd.s32 2891336453, %v1197_v61 }
 0x206   :  { %v1178_v45 = vmul.f32 %v2185_v47, %v1138_v4  ;;  %v1179_v30 = vmul.f32 %v2186_v20, %v1139_v35  ;;  %v1202_v3 = vshrl.u32 %v1198_v51, 9  ;;  %v1203_v13 = vshrl.u32 %v1199_v40, 9 }
 0x207   :  { %v1180_v38 = vmul.f32 %v2187_v52, %v1140_v56  ;;  %v1181_v62 = vmul.f32 %v2188_v49, %v1141_v37  ;;  %v1204_v55 = vshrl.u32 %v1200_v41, 9  ;;  %v1205_v15 = vshrl.u32 %v1201_v1, 9 }
 0x208   :  { %vm1182_vm0 = vcmp.gt.f32.partialorder %v1178_v45, %v2971_v14  ;;  %vm1183_vm1 = vcmp.gt.f32.partialorder %v1179_v30, %v2973_v9  ;;  %v1206_v5 = vor.u32 1065353216, %v1202_v3  ;;  %v1207_v28 = vor.u32 1065353216, %v1203_v13 }
 0x209   :  { %vm1184_vm2 = vcmp.gt.f32.partialorder %v1180_v38, %v2976_v46  ;;  %vm1185_vm3 = vcmp.gt.f32.partialorder %v1181_v62, %v2982_v25  ;;  %v1186_v7 = vsel %vm1182_vm0, 1.0, %v2437_v60  ;;  %v1187_v23 = vsel %vm1183_vm1, 1.0, %v2437_v60 }
 0x20a   :  { %v1188_v6 = vsel %vm1184_vm2, 1.0, %v2437_v60  ;;  %v1189_v48 = vsel %vm1185_vm3, 1.0, %v2437_v60  ;;  %v1190_v39 = vadd.f32 %v1186_v7, %v1150_v22  ;;  %v1191_v32 = vadd.f32 %v1187_v23, %v1151_v63 }
 0x20b   :  { %v1192_v27 = vadd.f32 %v1188_v6, %v1152_v36  ;;  %v1193_v12 = vadd.f32 %v1189_v48, %v1153_v0  ;;  %v1208_v33 = vor.u32 1065353216, %v1204_v55  ;;  %v1209_v4 = vor.u32 1065353216, %v1205_v15 }
 0x20c   :  { %v2189_v35 = vadd.f32 -1.0, %v1206_v5  ;;  %v2190_v8 = vadd.f32 -1.0, %v1207_v28  ;;  %v1234_v54 = vmul.u32 747796405, %v1198_v51  ;;  %v1235_v56 = vmul.u32 747796405, %v1199_v40 }
 0x20d   :  { %v2191_v37 = vadd.f32 -1.0, %v1208_v33  ;;  %v2192_v57 = vadd.f32 -1.0, %v1209_v4  ;;  %v1236_v53 = vmul.u32 747796405, %v1200_v41  ;;  %v1237_v2 = vmul.u32 747796405, %v1201_v1 }
 0x20e   :  { %v1218_v26 = vmul.f32 %v2189_v35, %v1178_v45  ;;  %v1219_v16 = vmul.f32 %v2190_v8, %v1179_v30  ;;  %v1238_v58 = vadd.s32 2891336453, %v1234_v54  ;;  %v1239_v34 = vadd.s32 2891336453, %v1235_v56 }
 0x20f   :  { %v1220_v59 = vmul.f32 %v2191_v37, %v1180_v38  ;;  %v1221_v29 = vmul.f32 %v2192_v57, %v1181_v62  ;;  %v1240_v22 = vadd.s32 2891336453, %v1236_v53  ;;  %v1241_v63 = vadd.s32 2891336453, %v1237_v2 }
 0x210   :  { %vm1222_vm4 = vcmp.gt.f32.partialorder %v1218_v26, %v2971_v14  ;;  %vm1223_vm5 = vcmp.gt.f32.partialorder %v1219_v16, %v2973_v9  ;;  %v1242_v36 = vshrl.u32 %v1238_v58, 9  ;;  %v1243_v0 = vshrl.u32 %v1239_v34, 9 }
 0x211   :  { %vm1224_vm6 = vcmp.gt.f32.partialorder %v1220_v59, %v2976_v46  ;;  %vm1225_vm7 = vcmp.gt.f32.partialorder %v1221_v29, %v2982_v25  ;;  %v1226_v44 = vsel %vm1222_vm4, 1.0, %v2437_v60  ;;  %v1227_v43 = vsel %vm1223_vm5, 1.0, %v2437_v60 }
 0x212   :  { %v1228_v24 = vsel %vm1224_vm6, 1.0, %v2437_v60  ;;  %v1229_v11 = vsel %vm1225_vm7, 1.0, %v2437_v60  ;;  %v1230_v50 = vadd.f32 %v1226_v44, %v1190_v39  ;;  %v1231_v42 = vadd.f32 %v1227_v43, %v1191_v32 }
 0x213   :  { %v1232_v10 = vadd.f32 %v1228_v24, %v1192_v27  ;;  %v1233_v31 = vadd.f32 %v1229_v11, %v1193_v12  ;;  %v1244_v61 = vshrl.u32 %v1240_v22, 9  ;;  %v1245_v47 = vshrl.u32 %v1241_v63, 9 }
 0x214   :  { %v1246_v20 = vor.u32 1065353216, %v1242_v36  ;;  %v1247_v51 = vor.u32 1065353216, %v1243_v0  ;;  %v1274_v40 = vmul.u32 747796405, %v1238_v58  ;;  %v1275_v52 = vmul.u32 747796405, %v1239_v34 }
 0x215   :  { %v1248_v49 = vor.u32 1065353216, %v1244_v61  ;;  %v1249_v41 = vor.u32 1065353216, %v1245_v47  ;;  %v1276_v1 = vmul.u32 747796405, %v1240_v22  ;;  %v1277_v45 = vmul.u32 747796405, %v1241_v63 }
 0x216   :  { %v2193_v30 = vadd.f32 -1.0, %v1246_v20  ;;  %v2194_v3 = vadd.f32 -1.0, %v1247_v51  ;;  %v1278_v13 = vadd.s32 2891336453, %v1274_v40  ;;  %v1279_v38 = vadd.s32 2891336453, %v1275_v52 }
 0x217   :  { %v2195_v62 = vadd.f32 -1.0, %v1248_v49  ;;  %v2196_v55 = vadd.f32 -1.0, %v1249_v41  ;;  %v1280_v15 = vadd.s32 2891336453, %v1276_v1  ;;  %v1281_v5 = vadd.s32 2891336453, %v1277_v45 }
 0x218   :  { %v1258_v28 = vmul.f32 %v2193_v30, %v1218_v26  ;;  %v1259_v7 = vmul.f32 %v2194_v3, %v1219_v16  ;;  %v1282_v23 = vshrl.u32 %v1278_v13, 9  ;;  %v1283_v6 = vshrl.u32 %v1279_v38, 9 }
 0x219   :  { %v1260_v48 = vmul.f32 %v2195_v62, %v1220_v59  ;;  %v1261_v39 = vmul.f32 %v2196_v55, %v1221_v29  ;;  %v1284_v32 = vshrl.u32 %v1280_v15, 9  ;;  %v1285_v27 = vshrl.u32 %v1281_v5, 9 }
 0x21a   :  { %vm1262_vm8 = vcmp.gt.f32.partialorder %v1258_v28, %v2971_v14  ;;  %vm1263_vm9 = vcmp.gt.f32.partialorder %v1259_v7, %v2973_v9  ;;  %v1286_v12 = vor.u32 1065353216, %v1282_v23  ;;  %v1287_v33 = vor.u32 1065353216, %v1283_v6 }
 0x21b   :  { %vm1264_vm10 = vcmp.gt.f32.partialorder %v1260_v48, %v2976_v46  ;;  %vm1265_vm11 = vcmp.gt.f32.partialorder %v1261_v39, %v2982_v25  ;;  %v1266_v4 = vsel %vm1262_vm8, 1.0, %v2437_v60  ;;  %v1267_v35 = vsel %vm1263_vm9, 1.0, %v2437_v60 }
 0x21c   :  { %v1268_v8 = vsel %vm1264_vm10, 1.0, %v2437_v60  ;;  %v1269_v54 = vsel %vm1265_vm11, 1.0, %v2437_v60  ;;  %v1270_v56 = vadd.f32 %v1266_v4, %v1230_v50  ;;  %v1271_v37 = vadd.f32 %v1267_v35, %v1231_v42 }
 0x21d   :  { %v1272_v57 = vadd.f32 %v1268_v8, %v1232_v10  ;;  %v1273_v53 = vadd.f32 %v1269_v54, %v1233_v31  ;;  %v1288_v2 = vor.u32 1065353216, %v1284_v32  ;;  %v1289_v26 = vor.u32 1065353216, %v1285_v27 }
 0x21e   :  { %v2197_v16 = vadd.f32 -1.0, %v1286_v12  ;;  %v2198_v58 = vadd.f32 -1.0, %v1287_v33  ;;  %v1314_v34 = vmul.u32 747796405, %v1278_v13  ;;  %v1315_v59 = vmul.u32 747796405, %v1279_v38 }
 0x21f   :  { %v2199_v29 = vadd.f32 -1.0, %v1288_v2  ;;  %v2200_v22 = vadd.f32 -1.0, %v1289_v26  ;;  %v1316_v63 = vmul.u32 747796405, %v1280_v15  ;;  %v1317_v36 = vmul.u32 747796405, %v1281_v5 }
 0x220   :  { %v1298_v0 = vmul.f32 %v2197_v16, %v1258_v28  ;;  %v1299_v44 = vmul.f32 %v2198_v58, %v1259_v7  ;;  %v1318_v43 = vadd.s32 2891336453, %v1314_v34  ;;  %v1319_v24 = vadd.s32 2891336453, %v1315_v59 }
 0x221   :  { %v1300_v11 = vmul.f32 %v2199_v29, %v1260_v48  ;;  %v1301_v61 = vmul.f32 %v2200_v22, %v1261_v39  ;;  %v1320_v50 = vadd.s32 2891336453, %v1316_v63  ;;  %v1321_v42 = vadd.s32 2891336453, %v1317_v36 }
 0x222   :  { %vm1302_vm12 = vcmp.gt.f32.partialorder %v1298_v0, %v2971_v14  ;;  %vm1303_vm13 = vcmp.gt.f32.partialorder %v1299_v44, %v2973_v9  ;;  %v1322_v10 = vshrl.u32 %v1318_v43, 9  ;;  %v1323_v31 = vshrl.u32 %v1319_v24, 9 }
 0x223   :  { %vm1304_vm14 = vcmp.gt.f32.partialorder %v1300_v11, %v2976_v46  ;;  %vm1305_vm15 = vcmp.gt.f32.partialorder %v1301_v61, %v2982_v25  ;;  %v1306_v47 = vsel %vm1302_vm12, 1.0, %v2437_v60  ;;  %v1307_v20 = vsel %vm1303_vm13, 1.0, %v2437_v60 }
 0x224   :  { %v1308_v51 = vsel %vm1304_vm14, 1.0, %v2437_v60  ;;  %v1309_v40 = vsel %vm1305_vm15, 1.0, %v2437_v60  ;;  %v1310_v52 = vadd.f32 %v1306_v47, %v1270_v56  ;;  %v1311_v49 = vadd.f32 %v1307_v20, %v1271_v37 }
 0x225   :  { %v1312_v41 = vadd.f32 %v1308_v51, %v1272_v57  ;;  %v1313_v1 = vadd.f32 %v1309_v40, %v1273_v53  ;;  %v1324_v45 = vshrl.u32 %v1320_v50, 9  ;;  %v1325_v30 = vshrl.u32 %v1321_v42, 9 }
 0x226   :  { %v1326_v3 = vor.u32 1065353216, %v1322_v10  ;;  %v1327_v13 = vor.u32 1065353216, %v1323_v31  ;;  %v1354_v38 = vmul.u32 747796405, %v1318_v43  ;;  %v1355_v62 = vmul.u32 747796405, %v1319_v24 }
 0x227   :  { %v1328_v55 = vor.u32 1065353216, %v1324_v45  ;;  %v1329_v15 = vor.u32 1065353216, %v1325_v30  ;;  %v1356_v5 = vmul.u32 747796405, %v1320_v50  ;;  %v1357_v28 = vmul.u32 747796405, %v1321_v42 }
 0x228   :  { %v2201_v7 = vadd.f32 -1.0, %v1326_v3  ;;  %v2202_v23 = vadd.f32 -1.0, %v1327_v13  ;;  %v1358_v6 = vadd.s32 2891336453, %v1354_v38  ;;  %v1359_v48 = vadd.s32 2891336453, %v1355_v62 }
 0x229   :  { %v2203_v39 = vadd.f32 -1.0, %v1328_v55  ;;  %v2204_v32 = vadd.f32 -1.0, %v1329_v15  ;;  %v1360_v27 = vadd.s32 2891336453, %v1356_v5  ;;  %v1361_v12 = vadd.s32 2891336453, %v1357_v28 }
 0x22a   :  { %v1338_v33 = vmul.f32 %v2201_v7, %v1298_v0  ;;  %v1339_v4 = vmul.f32 %v2202_v23, %v1299_v44  ;;  %v1362_v35 = vshrl.u32 %v1358_v6, 9  ;;  %v1363_v8 = vshrl.u32 %v1359_v48, 9 }
 0x22b   :  { %v1340_v54 = vmul.f32 %v2203_v39, %v1300_v11  ;;  %v1341_v56 = vmul.f32 %v2204_v32, %v1301_v61  ;;  %v1364_v37 = vshrl.u32 %v1360_v27, 9  ;;  %v1365_v57 = vshrl.u32 %v1361_v12, 9 }
 0x22c   :  { %vm1342_vm0 = vcmp.gt.f32.partialorder %v1338_v33, %v2971_v14  ;;  %vm1343_vm1 = vcmp.gt.f32.partialorder %v1339_v4, %v2973_v9  ;;  %v1366_v53 = vor.u32 1065353216, %v1362_v35  ;;  %v1367_v2 = vor.u32 1065353216, %v1363_v8 }
 0x22d   :  { %vm1344_vm2 = vcmp.gt.f32.partialorder %v1340_v54, %v2976_v46  ;;  %vm1345_vm3 = vcmp.gt.f32.partialorder %v1341_v56, %v2982_v25  ;;  %v1346_v26 = vsel %vm1342_vm0, 1.0, %v2437_v60  ;;  %v1347_v16 = vsel %vm1343_vm1, 1.0, %v2437_v60 }
 0x22e   :  { %v1348_v58 = vsel %vm1344_vm2, 1.0, %v2437_v60  ;;  %v1349_v34 = vsel %vm1345_vm3, 1.0, %v2437_v60  ;;  %v1350_v59 = vadd.f32 %v1346_v26, %v1310_v52  ;;  %v1351_v29 = vadd.f32 %v1347_v16, %v1311_v49 }
 0x22f   :  { %v1352_v22 = vadd.f32 %v1348_v58, %v1312_v41  ;;  %v1353_v63 = vadd.f32 %v1349_v34, %v1313_v1  ;;  %v1368_v36 = vor.u32 1065353216, %v1364_v37  ;;  %v1369_v0 = vor.u32 1065353216, %v1365_v57 }
 0x230   :  { %v2205_v44 = vadd.f32 -1.0, %v1366_v53  ;;  %v2206_v43 = vadd.f32 -1.0, %v1367_v2  ;;  %v1394_v24 = vmul.u32 747796405, %v1358_v6  ;;  %v1395_v11 = vmul.u32 747796405, %v1359_v48 }
 0x231   :  { %v2207_v61 = vadd.f32 -1.0, %v1368_v36  ;;  %v2208_v50 = vadd.f32 -1.0, %v1369_v0  ;;  %v1396_v42 = vmul.u32 747796405, %v1360_v27  ;;  %v1397_v10 = vmul.u32 747796405, %v1361_v12 }
 0x232   :  { %v1378_v31 = vmul.f32 %v2205_v44, %v1338_v33  ;;  %v1379_v47 = vmul.f32 %v2206_v43, %v1339_v4  ;;  %v1398_v20 = vadd.s32 2891336453, %v1394_v24  ;;  %v1399_v51 = vadd.s32 2891336453, %v1395_v11 }
 0x233   :  { %v1380_v40 = vmul.f32 %v2207_v61, %v1340_v54  ;;  %v1381_v45 = vmul.f32 %v2208_v50, %v1341_v56  ;;  %v1400_v52 = vadd.s32 2891336453, %v1396_v42  ;;  %v1401_v49 = vadd.s32 2891336453, %v1397_v10 }
 0x234   :  { %vm1382_vm4 = vcmp.gt.f32.partialorder %v1378_v31, %v2971_v14  ;;  %vm1383_vm5 = vcmp.gt.f32.partialorder %v1379_v47, %v2973_v9  ;;  %v1402_v41 = vshrl.u32 %v1398_v20, 9  ;;  %v1403_v1 = vshrl.u32 %v1399_v51, 9 }
 0x235   :  { %vm1384_vm6 = vcmp.gt.f32.partialorder %v1380_v40, %v2976_v46  ;;  %vm1385_vm7 = vcmp.gt.f32.partialorder %v1381_v45, %v2982_v25  ;;  %v1386_v30 = vsel %vm1382_vm4, 1.0, %v2437_v60  ;;  %v1387_v3 = vsel %vm1383_vm5, 1.0, %v2437_v60 }
 0x236   :  { %v1388_v13 = vsel %vm1384_vm6, 1.0, %v2437_v60  ;;  %v1389_v38 = vsel %vm1385_vm7, 1.0, %v2437_v60  ;;  %v1390_v62 = vadd.f32 %v1386_v30, %v1350_v59  ;;  %v1391_v55 = vadd.f32 %v1387_v3, %v1351_v29 }
 0x237   :  { %v1392_v15 = vadd.f32 %v1388_v13, %v1352_v22  ;;  %v1393_v5 = vadd.f32 %v1389_v38, %v1353_v63  ;;  %v1404_v28 = vshrl.u32 %v1400_v52, 9  ;;  %v1405_v7 = vshrl.u32 %v1401_v49, 9 }
 0x238   :  { %v1406_v23 = vor.u32 1065353216, %v1402_v41  ;;  %v1407_v6 = vor.u32 1065353216, %v1403_v1  ;;  %v1434_v48 = vmul.u32 747796405, %v1398_v20  ;;  %v1435_v39 = vmul.u32 747796405, %v1399_v51 }
 0x239   :  { %v1408_v32 = vor.u32 1065353216, %v1404_v28  ;;  %v1409_v27 = vor.u32 1065353216, %v1405_v7  ;;  %v1436_v12 = vmul.u32 747796405, %v1400_v52  ;;  %v1437_v33 = vmul.u32 747796405, %v1401_v49 }
 0x23a   :  { %v2209_v4 = vadd.f32 -1.0, %v1406_v23  ;;  %v2210_v35 = vadd.f32 -1.0, %v1407_v6  ;;  %v1438_v8 = vadd.s32 2891336453, %v1434_v48  ;;  %v1439_v54 = vadd.s32 2891336453, %v1435_v39 }
 0x23b   :  { %v2211_v56 = vadd.f32 -1.0, %v1408_v32  ;;  %v2212_v37 = vadd.f32 -1.0, %v1409_v27  ;;  %v1440_v57 = vadd.s32 2891336453, %v1436_v12  ;;  %v1441_v53 = vadd.s32 2891336453, %v1437_v33 }
 0x23c   :  { %v1418_v2 = vmul.f32 %v2209_v4, %v1378_v31  ;;  %v1419_v26 = vmul.f32 %v2210_v35, %v1379_v47  ;;  %v1442_v16 = vshrl.u32 %v1438_v8, 9  ;;  %v1443_v58 = vshrl.u32 %v1439_v54, 9 }
 0x23d   :  { %v1420_v34 = vmul.f32 %v2211_v56, %v1380_v40  ;;  %v1421_v59 = vmul.f32 %v2212_v37, %v1381_v45  ;;  %v1444_v29 = vshrl.u32 %v1440_v57, 9  ;;  %v1445_v22 = vshrl.u32 %v1441_v53, 9 }
 0x23e   :  { %vm1422_vm8 = vcmp.gt.f32.partialorder %v1418_v2, %v2971_v14  ;;  %vm1423_vm9 = vcmp.gt.f32.partialorder %v1419_v26, %v2973_v9  ;;  %v1446_v63 = vor.u32 1065353216, %v1442_v16  ;;  %v1447_v36 = vor.u32 1065353216, %v1443_v58 }
 0x23f   :  { %vm1424_vm10 = vcmp.gt.f32.partialorder %v1420_v34, %v2976_v46  ;;  %vm1425_vm11 = vcmp.gt.f32.partialorder %v1421_v59, %v2982_v25  ;;  %v1426_v0 = vsel %vm1422_vm8, 1.0, %v2437_v60  ;;  %v1427_v44 = vsel %vm1423_vm9, 1.0, %v2437_v60 }
 0x240   :  { %v1428_v43 = vsel %vm1424_vm10, 1.0, %v2437_v60  ;;  %v1429_v24 = vsel %vm1425_vm11, 1.0, %v2437_v60  ;;  %v1430_v11 = vadd.f32 %v1426_v0, %v1390_v62  ;;  %v1431_v61 = vadd.f32 %v1427_v44, %v1391_v55 }
 0x241   :  { %v1432_v50 = vadd.f32 %v1428_v43, %v1392_v15  ;;  %v1433_v42 = vadd.f32 %v1429_v24, %v1393_v5  ;;  %v1448_v10 = vor.u32 1065353216, %v1444_v29  ;;  %v1449_v31 = vor.u32 1065353216, %v1445_v22 }
 0x242   :  { %v2213_v47 = vadd.f32 -1.0, %v1446_v63  ;;  %v2214_v20 = vadd.f32 -1.0, %v1447_v36  ;;  %v1474_v51 = vmul.u32 747796405, %v1438_v8  ;;  %v1475_v40 = vmul.u32 747796405, %v1439_v54 }
 0x243   :  { %v2215_v45 = vadd.f32 -1.0, %v1448_v10  ;;  %v2216_v52 = vadd.f32 -1.0, %v1449_v31  ;;  %v1476_v49 = vmul.u32 747796405, %v1440_v57  ;;  %v1477_v41 = vmul.u32 747796405, %v1441_v53 }
 0x244   :  { %v1458_v1 = vmul.f32 %v2213_v47, %v1418_v2  ;;  %v1459_v30 = vmul.f32 %v2214_v20, %v1419_v26  ;;  %v1478_v3 = vadd.s32 2891336453, %v1474_v51  ;;  %v1479_v13 = vadd.s32 2891336453, %v1475_v40 }
 0x245   :  { %v1460_v38 = vmul.f32 %v2215_v45, %v1420_v34  ;;  %v1461_v28 = vmul.f32 %v2216_v52, %v1421_v59  ;;  %v1480_v62 = vadd.s32 2891336453, %v1476_v49  ;;  %v3123_v55 = vadd.s32 2891336453, %v1477_v41 }
 0x246   :  { %vm1462_vm12 = vcmp.gt.f32.partialorder %v1458_v1, %v2971_v14  ;;  %vm1463_vm13 = vcmp.gt.f32.partialorder %v1459_v30, %v2973_v9  ;;  %v1482_v15 = vshrl.u32 %v1478_v3, 9  ;;  %v1483_v5 = vshrl.u32 %v1479_v13, 9 }
 0x247   :  { %vm1464_vm14 = vcmp.gt.f32.partialorder %v1460_v38, %v2976_v46  ;;  %vm1465_vm15 = vcmp.gt.f32.partialorder %v1461_v28, %v2982_v25  ;;  %v1466_v7 = vsel %vm1462_vm12, 1.0, %v2437_v60  ;;  %v1467_v23 = vsel %vm1463_vm13, 1.0, %v2437_v60 }
 0x248   :  { %v1468_v6 = vsel %vm1464_vm14, 1.0, %v2437_v60  ;;  %v1469_v48 = vsel %vm1465_vm15, 1.0, %v2437_v60  ;;  %v1470_v39 = vadd.f32 %v1466_v7, %v1430_v11  ;;  %v1471_v32 = vadd.f32 %v1467_v23, %v1431_v61 }
 0x249   :  { %v1472_v27 = vadd.f32 %v1468_v6, %v1432_v50  ;;  %v1473_v12 = vadd.f32 %v1469_v48, %v1433_v42  ;;  %v1484_v33 = vshrl.u32 %v1480_v62, 9  ;;  %v1485_v4 = vshrl.u32 %v3123_v55, 9 }
 0x24a   :  { %v1486_v35 = vor.u32 1065353216, %v1482_v15  ;;  %v1487_v8 = vor.u32 1065353216, %v1483_v5  ;;  %v1514_v54 = vmul.u32 747796405, %v1478_v3  ;;  %v1515_v56 = vmul.u32 747796405, %v1479_v13 }
 0x24b   :  { %v1488_v37 = vor.u32 1065353216, %v1484_v33  ;;  %v1489_v57 = vor.u32 1065353216, %v1485_v4  ;;  %v1516_v53 = vmul.u32 747796405, %v1480_v62  ;;  %v1517_v49 = vmul.u32 747796405, %v3123_v55 }
 0x24c   :  { %v2217_v2 = vadd.f32 -1.0, %v1486_v35  ;;  %v2218_v26 = vadd.f32 -1.0, %v1487_v8  ;;  %v1518_v16 = vadd.s32 2891336453, %v1514_v54  ;;  %v1519_v58 = vadd.s32 2891336453, %v1515_v56 }
 0x24d   :  { %v2219_v34 = vadd.f32 -1.0, %v1488_v37  ;;  %v2220_v59 = vadd.f32 -1.0, %v1489_v57  ;;  %v3134_v43 = vadd.s32 2891336453, %v1516_v53  ;;  %v1521_v13 = vadd.s32 2891336453, %v1517_v49 }
 0x24e   :  { %v1498_v29 = vmul.f32 %v2217_v2, %v1458_v1  ;;  %v1499_v22 = vmul.f32 %v2218_v26, %v1459_v30  ;;  %v1522_v63 = vmul.u32 747796405, %v1518_v16  ;;  %v1523_v36 = vmul.u32 747796405, %v1519_v58 }
 0x24f   :  { %v1500_v0 = vmul.f32 %v2219_v34, %v1460_v38  ;;  %v1501_v44 = vmul.f32 %v2220_v59, %v1461_v28  ;;  %v1530_v1 = vshrl.u32 %v1518_v16, 9  ;;  %v1525_v7 = vmul.u32 747796405, %v1521_v13 }
 0x250   :  { %vm1502_vm0 = vcmp.gt.f32.partialorder %v1498_v29, %v2971_v14  ;;  %vm1503_vm1 = vcmp.gt.f32.partialorder %v1499_v22, %v2973_v9  ;;  %v1526_v24 = vadd.s32 2891336453, %v1522_v63  ;;  %v1527_v11 = vadd.s32 2891336453, %v1523_v36 }
 0x251   :  { %vm1504_vm2 = vcmp.gt.f32.partialorder %v1500_v0, %v2976_v46  ;;  %vm1505_vm3 = vcmp.gt.f32.partialorder %v1501_v44, %v2982_v25  ;;  %v1506_v61 = vsel %vm1502_vm0, 1.0, %v2437_v60  ;;  %v1507_v50 = vsel %vm1503_vm1, 1.0, %v2437_v60 }
 0x252   :  { %v1508_v42 = vsel %vm1504_vm2, 1.0, %v2437_v60  ;;  %v1509_v10 = vsel %vm1505_vm3, 1.0, %v2437_v60  ;;  %v3144_v31 = vadd.f32 %v1506_v61, %v1470_v39  ;;  %v3146_v47 = vadd.f32 %v1507_v50, %v1471_v32 }
 0x253   :  { %v3148_v14 = vadd.f32 %v1508_v42, %v1472_v27  ;;  %v3150_v9 = vadd.f32 %v1509_v10, %v1473_v12  ;;  %v1524_v46 = vmul.u32 747796405, %v3134_v43  ;;  %v1546_v20 = vshrl.u32 %v1526_v24, 9 }
 0x254   :  { %v1547_v25 = vshrl.u32 %v1527_v11, 9  ;;  %v1534_v62 = vor.u32 1065353216, %v1530_v1  ;;  %v1531_v23 = vshrl.u32 %v1519_v58, 9  ;;  %v1529_v27 = vadd.s32 2891336453, %v1525_v7 }
 0x255   :  { %v1528_v51 = vadd.s32 2891336453, %v1524_v46  ;;  %v1550_v40 = vor.u32 1065353216, %v1546_v20  ;;  %v1532_v57 = vshrl.u32 %v3134_v43, 9  ;;  %v1533_v53 = vshrl.u32 %v1521_v13, 9 }
 0x256   :  { %v1551_v45 = vor.u32 1065353216, %v1547_v25  ;;  %v2221_v39 = vadd.f32 -1.0, %v1534_v62  ;;  %v1535_v33 = vor.u32 1065353216, %v1531_v23  ;;  %v1549_v2 = vshrl.u32 %v1529_v27, 9 }
 0x257   :  { %v2225_v52 = vadd.f32 -1.0, %v1550_v40  ;;  %v1548_v41 = vshrl.u32 %v1528_v51, 9  ;;  %v2438_v58 = vmov 683565275   ;;  %v2439_v59 = vmov 2475754826  }
 0x258   :  { %v2226_v30 = vadd.f32 -1.0, %v1551_v45  ;;  %v1562_v8 = vsub.f32 1.0, %v2221_v39  ;;  %v3166_v26 = vadd.f32 -1.0, %v1535_v33  ;;  %v2440_v63 = vmov 2131351028  }
 0x259   :  { %v3154_v60 = vmul.f32 6.2831855, %v2225_v52  ;;  %v1552_v38 = vor.u32 1065353216, %v1548_v41  ;;  %v2441_v11 = vmov 2102212464   ;;  %v1536_v46 = vor.u32 1065353216, %v1532_v57 }
 0x25a   :  { %v3157_v15 = vmul.f32 6.2831855, %v2226_v30  ;;  %2346 = vlog2.f32 %v1562_v8  ;;  %v2442_v42 = vmov 920167782   ;;  %v1537_v20 = vor.u32 1065353216, %v1533_v53 }
 0x25b   :  { %v1613_v3 = vand.u32 2139095040, %v3154_v60  ;;  %v2227_v6 = vadd.f32 -1.0, %v1552_v38  ;;  %v1610_v55 = vand.u32 2147483647, %v3154_v60  ;;  %v1553_v25 = vor.u32 1065353216, %v1549_v2 }
 0x25c   :  { %v1716_v32 = vand.u32 2139095040, %v3157_v15  ;;  %v1563_v51 = vsub.f32 1.0, %v3166_v26  ;;  %v1713_v1 = vand.u32 2147483647, %v3157_v15  ;;  %v3195_v57 = vadd.f32 -1.0, %v1536_v46 }
 0x25d   :  { %v1614_v28 = vshrl.u32 %v1613_v3, 23  ;;  %v3161_v4 = vmul.f32 6.2831855, %v2227_v6  ;;  %v1617_v54 = vand.u32 8388607, %v1610_v55  ;;  %v3208_v46 = vadd.f32 -1.0, %v1537_v20 }
 0x25e   :  { %v1717_v37 = vshrl.u32 %v1716_v32, 23  ;;  %v1720_v27 = vand.u32 8388607, %v1713_v1  ;;  %2348 = vlog2.f32 %v1563_v51 }
 0x25f   :  { %v2229_v5 = vadd.s32 4294967169, %v1614_v28  ;;  %v1819_v16 = vand.u32 2139095040, %v3161_v4  ;;  %v1618_v0 = vor.u32 8388608, %v1617_v54  ;;  %v2443_v28 = vmov 1326507024  }
 0x260   :  { %v2233_v43 = vadd.s32 4294967169, %v1717_v37  ;;  %v1816_v37 = vand.u32 2147483647, %v3161_v4 }
 0x261   :  { %v1620_v48 = vadd.s32 1, %v2229_v5  ;;  %v1820_v52 = vshrl.u32 %v1819_v16, 23  ;;  %v1658_v13 = vshll.u32 %v1618_v0, 8 }
 0x262   :  { %v1723_v38 = vadd.s32 1, %v2233_v43 }
 0x263   :  { %vm1621_vm4 = vcmp.gt.s32.totalorder %v1620_v48, 0  ;;  %v2237_v6 = vadd.s32 4294967169, %v1820_v52 }
 0x264   :  { %v1622_v12 = vsel %vm1621_vm4, %v1620_v48, 0  ;;  %vm1724_vm9 = vcmp.gt.s32.totalorder %v1723_v38, 0 }
 0x265   :  { %v1624_v35 = vand.u32 31, %v1622_v12  ;;  %v1623_v44 = vshrl.u32 %v1622_v12, 5  ;;  %v1725_v2 = vsel %vm1724_vm9, %v1723_v38, 0  ;;  %v1826_v26 = vadd.s32 1, %v2237_v6 }
 0x267   :  { %v1625_v56 = vsub.s32 32, %v1624_v35  ;;  %v1627_v34 = vshll.u32 %v2438_v58, %v1624_v35  ;;  %v1630_v22 = vshll.u32 %v2439_v59, %v1624_v35  ;;  %v1633_v24 = vshll.u32 %v2440_v63, %v1624_v35 }
 0x268   :  { %v1636_v50 = vshll.u32 %v2441_v11, %v1624_v35  ;;  %v1639_v41 = vshll.u32 %v2442_v42, %v1624_v35  ;;  %vm1642_vm5 = vcmp.lt.s32.totalorder %v1623_v44, 1  ;;  %vm1643_vm6 = vcmp.lt.s32.totalorder %v1623_v44, 2 }
 0x269   :  { %v1628_v29 = vshrl.u32 %v2439_v59, %v1625_v56  ;;  %v1631_v36 = vshrl.u32 %v2440_v63, %v1625_v56  ;;  %v1634_v61 = vshrl.u32 %v2441_v11, %v1625_v56  ;;  %v1637_v10 = vshrl.u32 %v2442_v42, %v1625_v56 }
 0x26a   :  { %v1626_v49 = vshrl.u32 %v2438_v58, %v1625_v56  ;;  %v1640_v62 = vshrl.u32 %v2443_v28, %v1625_v56  ;;  %vm1644_vm7 = vcmp.lt.s32.totalorder %v1623_v44, 3  ;;  %vm1645_vm8 = vcmp.lt.s32.totalorder %v1623_v44, 4 }
 0x26b   :  { %v1629_v40 = vor.u32 %v1628_v29, %v1627_v34  ;;  %v1632_v45 = vor.u32 %v1631_v36, %v1630_v22  ;;  %v1635_v30 = vor.u32 %v1634_v61, %v1633_v24  ;;  %v1638_v3 = vor.u32 %v1637_v10, %v1636_v50  ;;  %v2347_v22 = vpop.eup %2346 }
 0x26c   :  { %v1641_v48 = vor.u32 %v1640_v62, %v1639_v41  ;;  %v1727_v29 = vand.u32 31, %v1725_v2  ;;  %v2228_v36 = vadd.f32 -1.0, %v1553_v25  ;;  %v1721_v24 = vor.u32 8388608, %v1720_v27 }
 0x26d   :  { %v1647_v5 = vsel %vm1645_vm8, %v1635_v30, 2102212464  ;;  %v1650_v7 = vsel %vm1642_vm5, %v1629_v40, %v1632_v45  ;;  %v1651_v23 = vsel %vm1645_vm8, %v1638_v3, 920167782  ;;  %v1646_v39 = vsel %vm1642_vm5, %v1626_v49, %v1629_v40 }
 0x26e   :  { %v1652_v32 = vsel %vm1644_vm7, %v1635_v30, %v1651_v23  ;;  %v1648_v12 = vsel %vm1644_vm7, %v1632_v45, %v1647_v5  ;;  %v1654_v35 = vsel %vm1642_vm5, %v1632_v45, %v1635_v30  ;;  %v1655_v8 = vsel %vm1645_vm8, %v1641_v48, 1326507024 }
 0x26f   :  { %v1653_v33 = vsel %vm1643_vm6, %v1650_v7, %v1652_v32  ;;  %v1656_v53 = vsel %vm1644_vm7, %v1638_v3, %v1655_v8  ;;  %v1649_v16 = vsel %vm1643_vm6, %v1646_v39, %v1648_v12  ;;  %v1728_v50 = vsub.s32 32, %v1727_v29 }
 0x270   :  { %v3190_v54 = vmul.u32.u64.low %v1658_v13, %v1653_v33  ;;  %v3191_v56 = vmul.u32.u64.high %v1658_v13, %v1653_v33, %v3190_v54  ;;  %v1657_v34 = vsel %vm1643_vm6, %v1654_v35, %v1656_v53  ;;  %v3206_v10 = vand.u32 8388607, %v1816_v37 }
 0x271   :  { %v3200_v0 = vmul.u32.u64.low %v1658_v13, %v1657_v34  ;;  %v3201_v43 = vmul.u32.u64.high %v1658_v13, %v1657_v34, %v3200_v0  ;;  %v1564_v44 = vsub.f32 1.0, %v3195_v57  ;;  %v1665_v40 = vmul.u32 %v1658_v13, %v1649_v16 }
 0x272   :  { %v1668_v61 = vadd.s32 1, %v3191_v56  ;;  %vm1827_vm10 = vcmp.gt.s32.totalorder %v1826_v26, 0  ;;  %v1730_v25 = vshll.u32 %v2438_v58, %v1727_v29  ;;  %v1731_v45 = vshrl.u32 %v2439_v59, %v1728_v50 }
 0x273   :  { %v1733_v52 = vshll.u32 %v2439_v59, %v1727_v29  ;;  %v1734_v51 = vshrl.u32 %v2440_v63, %v1728_v50  ;;  %v1567_v49 = vmul.f32 0.6931472, %v2347_v22  ;;  %v3215_v41 = vmul.f32 6.2831855, %v2228_v36 }
 0x274   :  { %vm1667_vm11 = vc.u32 %v3201_v43, %v3190_v54  ;;  %v3219_v20 = vshll.u32 %v1721_v24, 8  ;;  %v1726_v3 = vshrl.u32 %v1725_v2, 5  ;;  %v1736_v13 = vshll.u32 %v2440_v63, %v1727_v29 }
 0x275   :  { %v1669_v30 = vsel %vm1667_vm11, %v1668_v61, %v3191_v56  ;;  %v1824_v38 = vor.u32 8388608, %v3206_v10  ;;  %v1739_v5 = vshll.u32 %v2441_v11, %v1727_v29  ;;  %v1742_v7 = vshll.u32 %v2442_v42, %v1727_v29  ;;  %v2349_v10 = vpop.eup %2348 }
 0x276   :  { %v1670_v62 = vadd.s32 %v1669_v30, %v1665_v40  ;;  %v1828_v23 = vsel %vm1827_vm10, %v1826_v26, 0  ;;  %v1729_v6 = vshrl.u32 %v2438_v58, %v1728_v50  ;;  %v1732_v48 = vor.u32 %v1731_v45, %v1730_v25 }
 0x277   :  { %v1735_v39 = vor.u32 %v1734_v51, %v1733_v52  ;;  %v1737_v32 = vshrl.u32 %v2441_v11, %v1728_v50  ;;  %v3229_v27 = vmul.f32 -2.0, %v1567_v49  ;;  %v1740_v33 = vshrl.u32 %v2442_v42, %v1728_v50 }
 0x278   :  { %v1671_v12 = vadd.s32 536870912, %v1670_v62  ;;  %v1743_v35 = vshrl.u32 %v2443_v28, %v1728_v50  ;;  %vm1745_vm12 = vcmp.lt.s32.totalorder %v1726_v3, 1  ;;  %vm1747_vm13 = vcmp.lt.s32.totalorder %v1726_v3, 3 }
 0x279   :  { %v1738_v8 = vor.u32 %v1737_v32, %v1736_v13  ;;  %v1830_v56 = vand.u32 31, %v1828_v23  ;;  %v1741_v53 = vor.u32 %v1740_v33, %v1739_v5  ;;  %vm1748_vm14 = vcmp.lt.s32.totalorder %v1726_v3, 4 }
 0x27a   :  { %v3233_v57 = vshrl.u32 %v1671_v12, 30  ;;  %v1744_v2 = vor.u32 %v1743_v35, %v1742_v7  ;;  %vm1746_vm15 = vcmp.lt.s32.totalorder %v1726_v3, 2  ;;  %v1749_v26 = vsel %vm1745_vm12, %v1729_v6, %v1732_v48 }
 0x27b   :  { %v1750_v16 = vsel %vm1748_vm14, %v1738_v8, 2102212464  ;;  %v1753_v34 = vsel %vm1745_vm12, %v1732_v48, %v1735_v39  ;;  %v1754_v36 = vsel %vm1748_vm14, %v1741_v53, 920167782  ;;  %v1757_v0 = vsel %vm1745_vm12, %v1735_v39, %v1738_v8 }
 0x27c   :  { %v1673_v29 = vshll.u32 %v3233_v57, 30  ;;  %v1751_v22 = vsel %vm1747_vm13, %v1735_v39, %v1750_v16  ;;  %2350 = vrsqrt.f32 %v3229_v27  ;;  %v1755_v24 = vsel %vm1747_vm13, %v1738_v8, %v1754_v36 }
 0x27d   :  { %v1758_v61 = vsel %vm1748_vm14, %v1744_v2, 1326507024  ;;  %v1922_v50 = vand.u32 2139095040, %v3215_v41  ;;  %v1752_v25 = vsel %vm1746_vm15, %v1749_v26, %v1751_v22  ;;  %v1756_v45 = vsel %vm1746_vm15, %v1753_v34, %v1755_v24 }
 0x27e   :  { %v3240_v40 = vsub.s32 %v1670_v62, %v1673_v29  ;;  %v1759_v52 = vsel %vm1747_vm13, %v1741_v53, %v1758_v61  ;;  %v3247_v49 = vmul.u32.u64.low %v3219_v20, %v1756_v45  ;;  %v3248_v30 = vmul.u32.u64.high %v3219_v20, %v1756_v45, %v3247_v49 }
 0x27f   :  { %v1760_v51 = vsel %vm1746_vm15, %v1757_v0, %v1759_v52  ;;  %v1831_v13 = vsub.s32 32, %v1830_v56  ;;  %v1565_v5 = vsub.f32 1.0, %v3208_v46  ;;  %v3257_v48 = vmul.f32 0.6931472, %v2349_v10 }
 0x280   :  { %v1676_v7 = vsub.s32 0, %v3240_v40  ;;  %v3254_v62 = vmul.u32.u64.low %v3219_v20, %v1760_v51  ;;  %v3255_v6 = vmul.u32.u64.high %v3219_v20, %v1760_v51, %v3254_v62  ;;  %2352 = vlog2.f32 %v1564_v44 }
 0x281   :  { %v3259_v39 = vshll.u32 %v1824_v38, 8  ;;  %v1919_v3 = vand.u32 2147483647, %v3215_v41  ;;  %v1768_v12 = vmul.u32 %v3219_v20, %v1752_v25  ;;  %v1833_v33 = vshll.u32 %v2438_v58, %v1830_v56 }
 0x282   :  { %v2230_v32 = vmin.u32 %v1676_v7, %v3240_v40  ;;  %v1923_v35 = vshrl.u32 %v1922_v50, 23  ;;  %v1771_v8 = vadd.s32 1, %v3248_v30  ;;  %v1834_v53 = vshrl.u32 %v2439_v59, %v1831_v13 }
 0x283   :  { %v1836_v2 = vshll.u32 %v2439_v59, %v1830_v56  ;;  %v1837_v26 = vshrl.u32 %v2440_v63, %v1831_v13  ;;  %vm1770_vm0 = vc.u32 %v3255_v6, %v3247_v49  ;;  %v3271_v38 = vshrl.u32 %v1828_v23, 5 }
 0x284   :  { %v1678_v44 = vclz %v2230_v32  ;;  %v1839_v16 = vshll.u32 %v2440_v63, %v1830_v56  ;;  %v1666_v20 = vadd.s32 %v3190_v54, %v3201_v43  ;;  %v1772_v34 = vsel %vm1770_vm0, %v1771_v8, %v3248_v30 }
 0x285   :  { %v1840_v29 = vshrl.u32 %v2441_v11, %v1831_v13  ;;  %v1842_v22 = vshll.u32 %v2441_v11, %v1830_v56  ;;  %v1773_v0 = vadd.s32 %v1772_v34, %v1768_v12  ;;  %v1843_v24 = vshrl.u32 %v2442_v42, %v1831_v13 }
 0x286   :  { %v2231_v36 = vadd.s32 4294967294, %v1678_v44  ;;  %v1845_v61 = vshll.u32 %v2442_v42, %v1830_v56  ;;  %v1835_v50 = vor.u32 %v1834_v53, %v1833_v33  ;;  %v1838_v23 = vor.u32 %v1837_v26, %v1836_v2 }
 0x287   :  { %v1841_v10 = vor.u32 %v1840_v29, %v1839_v16  ;;  %v1846_v25 = vshrl.u32 %v2443_v28, %v1831_v13  ;;  %vm1580_vm1 = vcmp.eq.f32.partialorder %v3229_v27, inf  ;;  %v1774_v54 = vadd.s32 536870912, %v1773_v0 }
 0x288   :  { %vm2232_vm2 = vcmp.lt.s32.totalorder %v2231_v36, 0  ;;  %v1844_v43 = vor.u32 %v1843_v24, %v1842_v22  ;;  %vm1848_vm3 = vcmp.lt.s32.totalorder %v3271_v38, 1  ;;  %vm1850_vm4 = vcmp.lt.s32.totalorder %v3271_v38, 3 }
 0x289   :  { %v1681_v45 = vsel %vm2232_vm2, 0, %v2231_v36  ;;  %v1847_v52 = vor.u32 %v1846_v25, %v1845_v61  ;;  %vm1851_vm5 = vcmp.lt.s32.totalorder %v3271_v38, 4  ;;  %v2351_v51 = vpop.eup %2350  ;;  %v3287_v62 = vshrl.u32 %v1774_v54, 30 }
 0x28a   :  { %v1682_v56 = vsub.s32 32, %v1681_v45  ;;  %v1683_v30 = vshll.u32 %v3240_v40, %v1681_v45  ;;  %v1686_v7 = vsub.s32 4294967266, %v1681_v45  ;;  %vm1612_vm6 = vcmp.lt.s32.totalorder %v3154_v60, 0 }
 0x28b   :  { %v1832_v32 = vshrl.u32 %v2438_v58, %v1831_v13  ;;  %vm1849_vm7 = vcmp.lt.s32.totalorder %v3271_v38, 2  ;;  %v1853_v12 = vsel %vm1851_vm5, %v1841_v10, 2102212464  ;;  %v1857_v33 = vsel %vm1851_vm5, %v1844_v43, 920167782 }
 0x28c   :  { %v1684_v8 = vshrl.u32 %v1666_v20, %v1682_v56  ;;  %v1687_v53 = vadd.s32 127, %v1686_v7  ;;  %v1776_v2 = vshll.u32 %v3287_v62, 30  ;;  %v1856_v40 = vsel %vm1848_vm3, %v1835_v50, %v1838_v23 }
 0x28d   :  { %v1579_v26 = vmul.f32 %v2351_v51, %v3229_v27  ;;  %v1696_v44 = vsub.s32 4, %v3233_v57  ;;  %v1858_v13 = vsel %vm1850_vm4, %v1841_v10, %v1857_v33  ;;  %v1861_v16 = vsel %vm1851_vm5, %v1847_v52, 1326507024  ;;  %v2353_v34 = vpop.eup %2352 }
 0x28e   :  { %vm3307_vm8 = vcmp.le.f32.partialorder %v1610_v55, 0.7853982  ;;  %v1685_v29 = vor.u32 %v1684_v8, %v1683_v30  ;;  %v1688_v22 = vshll.u32 %v1687_v53, 23  ;;  %v3311_v36 = vsub.s32 %v1773_v0, %v1776_v2 }
 0x28f   :  { %v1860_v24 = vsel %vm1848_vm3, %v1838_v23, %v1841_v10  ;;  %v1852_v61 = vsel %vm1848_vm3, %v1832_v32, %v1835_v50  ;;  %v1854_v25 = vsel %vm1850_vm4, %v1838_v23, %v1853_v12  ;;  %v1859_v54 = vsel %vm1849_vm7, %v1856_v40, %v1858_v13 }
 0x290   :  { %v1862_v55 = vsel %vm1850_vm4, %v1844_v43, %v1861_v16  ;;  %v1689_v45 = vor.u32 4788187, %v1688_v22  ;;  %v1692_v52 = vcvt.s32.f32 %v1685_v29  ;;  %v1779_v0 = vsub.s32 0, %v3311_v36 }
 0x291   :  { %v2241_v51 = vadd.s32 4294967169, %v1923_v35  ;;  %v3325_v56 = vmul.f32 -2.0, %v3257_v48  ;;  %v1863_v50 = vsel %vm1849_vm7, %v1860_v24, %v1862_v55  ;;  %vm1582_vm9 = vcmp.eq.f32.partialorder %v3229_v27, 0.0 }
 0x292   :  { %v3330_v10 = vmul.u32.u64.low %v3259_v39, %v1859_v54  ;;  %v3331_v23 = vmul.u32.u64.high %v3259_v39, %v1859_v54, %v3330_v10  ;;  %v1690_v30 = vand.u32 2147483647, %v1689_v45  ;;  %v2234_v43 = vmin.u32 %v1779_v0, %v3311_v36 }
 0x293   :  { %v1855_v7 = vsel %vm1849_vm7, %v1852_v61, %v1854_v25  ;;  %v1581_v48 = vsel %vm1580_vm1, %v3229_v27, %v1579_v26  ;;  %v1583_v35 = vand.u32 2147483648, %v3229_v27  ;;  %v1697_v8 = vsel %vm1612_vm6, %v1696_v44, %v3233_v57 }
 0x294   :  { %v3343_v32 = vmul.u32.u64.low %v3259_v39, %v1863_v50  ;;  %v3344_v12 = vmul.u32.u64.high %v3259_v39, %v1863_v50, %v3343_v32  ;;  %v1693_v33 = vmul.f32 %v1692_v52, %v1690_v30  ;;  %v1781_v53 = vclz %v2234_v43 }
 0x295   :  { %v1929_v2 = vadd.s32 1, %v2241_v51  ;;  %v3349_v40 = vmul.f32 0.6931472, %v2353_v34  ;;  %v1871_v38 = vmul.u32 %v3259_v39, %v1855_v7  ;;  %v1874_v13 = vadd.s32 1, %v3331_v23 }
 0x296   :  { %v1926_v26 = vand.u32 8388607, %v1919_v3  ;;  %2354 = vrsqrt.f32 %v3325_v56  ;;  %v1694_v16 = vxor.u32 2147483648, %v1693_v33  ;;  %v2235_v29 = vadd.s32 4294967294, %v1781_v53 }
 0x297   :  { %vm1930_vm10 = vcmp.gt.s32.totalorder %v1929_v2, 0  ;;  %v3358_v22 = vsel %vm1582_vm9, %v1583_v35, %v1581_v48  ;;  %v1699_v57 = vsel %vm3307_vm8, 0, %v1697_v8  ;;  %vm1873_vm11 = vc.u32 %v3344_v12, %v3330_v10 }
 0x298   :  { %v1931_v39 = vsel %vm1930_vm10, %v1929_v2, 0  ;;  %v1695_v44 = vsel %vm1612_vm6, %v1694_v16, %v1693_v33  ;;  %vm1715_vm12 = vcmp.lt.s32.totalorder %v3157_v15, 0  ;;  %v1769_v34 = vadd.s32 %v3247_v49, %v3255_v6 }
 0x299   :  { %vm2236_vm13 = vcmp.lt.s32.totalorder %v2235_v29, 0  ;;  %v1875_v27 = vsel %vm1873_vm11, %v1874_v13, %v3331_v23  ;;  %v1698_v24 = vsel %vm3307_vm8, %v3154_v60, %v1695_v44  ;;  %v1933_v54 = vand.u32 31, %v1931_v39 }
 0x29a   :  { %v1784_v61 = vsel %vm2236_vm13, 0, %v2235_v29  ;;  %v1876_v25 = vadd.s32 %v1875_v27, %v1871_v38  ;;  %2356 = vcosq.f32 %v1698_v24  ;;  %v3374_v0 = vand.u32 3, %v1699_v57 }
 0x29b   :  { %v1785_v55 = vsub.s32 32, %v1784_v61  ;;  %v1786_v45 = vshll.u32 %v3311_v36, %v1784_v61  ;;  %v1789_v52 = vsub.s32 4294967266, %v1784_v61  ;;  %2358 = vsinq.f32 %v1698_v24 }
 0x29c   :  { %v1877_v51 = vadd.s32 536870912, %v1876_v25  ;;  %v1934_v49 = vsub.s32 32, %v1933_v54  ;;  %v1799_v23 = vsub.s32 4, %v3287_v62  ;;  %v1927_v30 = vor.u32 8388608, %v1926_v26 }
 0x29d   :  { %v1787_v6 = vshrl.u32 %v1769_v34, %v1785_v55  ;;  %v1790_v50 = vadd.s32 127, %v1789_v52  ;;  %v1936_v43 = vshll.u32 %v2438_v58, %v1933_v54  ;;  %v1939_v7 = vshll.u32 %v2439_v59, %v1933_v54 }
 0x29e   :  { %v3377_v20 = vshrl.u32 %v1877_v51, 30  ;;  %2360 = vrsqrt.f32 %v2479_v17  ;;  %vm3384_vm14 = vcmp.le.f32.partialorder %v1713_v1, 0.7853982  ;;  %v1942_v32 = vshll.u32 %v2440_v63, %v1933_v54 }
 0x29f   :  { %v1788_v48 = vor.u32 %v1787_v6, %v1786_v45  ;;  %v1791_v35 = vshll.u32 %v1790_v50, 23  ;;  %v1945_v33 = vshll.u32 %v2441_v11, %v1933_v54  ;;  %vm1708_vm15 = vcmp.eq.s32.totalorder %v3374_v0, 2 }
 0x2a0   :  { %v1879_v8 = vshll.u32 %v3377_v20, 30  ;;  %v1937_v53 = vshrl.u32 %v2439_v59, %v1934_v49  ;;  %v1940_v2 = vshrl.u32 %v2440_v63, %v1934_v49  ;;  %v1943_v38 = vshrl.u32 %v2441_v11, %v1934_v49 }
 0x2a1   :  { %vm1705_vm0 = vcmp.eq.s32.totalorder %v3374_v0, 0  ;;  %v1792_v1 = vor.u32 4788187, %v1791_v35  ;;  %v1795_v13 = vcvt.s32.f32 %v1788_v48  ;;  %v1932_v26 = vshrl.u32 %v1931_v39, 5 }
 0x2a2   :  { %v1946_v16 = vshrl.u32 %v2442_v42, %v1934_v49  ;;  %vm1704_vm1 = vcmp.lt.s32.totalorder %v3374_v0, 2  ;;  %v3401_v29 = vsel %vm1715_vm12, %v1799_v23, %v3287_v62  ;;  %v3403_v57 = vsub.s32 %v1876_v25, %v1879_v8 }
 0x2a3   :  { %v1948_v59 = vshll.u32 %v2442_v42, %v1933_v54  ;;  %v1949_v63 = vshrl.u32 %v2443_v28, %v1934_v49  ;;  %v1793_v11 = vand.u32 2147483647, %v1792_v1  ;;  %v1935_v44 = vshrl.u32 %v2438_v58, %v1934_v49  ;;  %v3410_v27 = vpop.eup %2354 }
 0x2a4   :  { %v1947_v34 = vor.u32 %v1946_v16, %v1945_v33  ;;  %v3408_v39 = vshll.u32 %v1927_v30, 8  ;;  %vm1702_vm2 = vweird.f32 %v3154_v60  ;;  %v1882_v24 = vsub.s32 0, %v3403_v57 }
 0x2a5   :  { %v1938_v62 = vor.u32 %v1937_v53, %v1936_v43  ;;  %v1941_v61 = vor.u32 %v1940_v2, %v1939_v7  ;;  %v1944_v25 = vor.u32 %v1943_v38, %v1942_v32  ;;  %v1796_v55 = vmul.f32 %v1795_v13, %v1793_v11 }
 0x2a6   :  { %vm1951_vm3 = vcmp.lt.s32.totalorder %v1932_v26, 1  ;;  %vm1953_vm4 = vcmp.lt.s32.totalorder %v1932_v26, 3  ;;  %vm1954_vm5 = vcmp.lt.s32.totalorder %v1932_v26, 4  ;;  %v1872_v42 = vadd.s32 %v3330_v10, %v3344_v12 }
 0x2a7   :  { %v2238_v58 = vmin.u32 %v1882_v24, %v3403_v57  ;;  %v1950_v28 = vor.u32 %v1949_v63, %v1948_v59  ;;  %vm2028_vm6 = vcmp.eq.f32.partialorder %v2479_v17, inf  ;;  %v2031_v54 = vand.u32 2147483648, %v2479_v17  ;;  %v2357_v49 = vpop.eup %2356 }
 0x2a8   :  { %v1797_v45 = vxor.u32 2147483648, %v1796_v55  ;;  %vm1952_vm7 = vcmp.lt.s32.totalorder %v1932_v26, 2  ;;  %v1956_v52 = vsel %vm1954_vm5, %v1944_v25, 2102212464  ;;  %v1960_v51 = vsel %vm1954_vm5, %v1947_v34, 920167782  ;;  %v2359_v12 = vpop.eup %2358 }
 0x2a9   :  { %v1884_v6 = vclz %v2238_v58  ;;  %v1955_v50 = vsel %vm1951_vm3, %v1935_v44, %v1938_v62  ;;  %v1959_v23 = vsel %vm1951_vm3, %v1938_v62, %v1941_v61  ;;  %v1961_v10 = vsel %vm1953_vm4, %v1944_v25, %v1960_v51 }
 0x2aa   :  { %v1709_v30 = vxor.u32 2147483648, %v2357_v49  ;;  %v1798_v43 = vsel %vm1715_vm12, %v1797_v45, %v1796_v55  ;;  %v1957_v7 = vsel %vm1953_vm4, %v1941_v61, %v1956_v52  ;;  %v1963_v48 = vsel %vm1951_vm3, %v1941_v61, %v1944_v25 }
 0x2ab   :  { %v1706_v35 = vxor.u32 2147483648, %v2359_v12  ;;  %v1801_v32 = vsel %vm3384_vm14, %v3157_v15, %v1798_v43  ;;  %v2239_v33 = vadd.s32 4294967294, %v1884_v6  ;;  %v1964_v8 = vsel %vm1954_vm5, %v1950_v28, 1326507024  ;;  %v2361_v53 = vpop.eup %2360 }
 0x2ac   :  { %v1710_v2 = vsel %vm1708_vm15, %v1709_v30, %v2359_v12  ;;  %2362 = vcosq.f32 %v1801_v32  ;;  %v1962_v38 = vsel %vm1952_vm7, %v1959_v23, %v1961_v10  ;;  %v1965_v1 = vsel %vm1953_vm4, %v1947_v34, %v1964_v8 }
 0x2ad   :  { %v1707_v13 = vsel %vm1705_vm0, %v2357_v49, %v1706_v35  ;;  %2364 = vsinq.f32 %v1801_v32  ;;  %vm2240_vm8 = vcmp.lt.s32.totalorder %v2239_v33, 0  ;;  %v1966_v16 = vsel %vm1952_vm7, %v1963_v48, %v1965_v1 }
 0x2ae   :  { %v1711_v59 = vsel %vm1704_vm1, %v1707_v13, %v1710_v2  ;;  %v1887_v63 = vsel %vm2240_vm8, 0, %v2239_v33  ;;  %v3442_v11 = vmul.u32.u64.low %v3408_v39, %v1966_v16  ;;  %v3443_v44 = vmul.u32.u64.high %v3408_v39, %v1966_v16, %v3442_v11 }
 0x2af   :  { %v1888_v24 = vsub.s32 32, %v1887_v63  ;;  %v1889_v62 = vshll.u32 %v3403_v57, %v1887_v63  ;;  %v1892_v61 = vsub.s32 4294967266, %v1887_v63  ;;  %v1958_v34 = vsel %vm1952_vm7, %v1955_v50, %v1957_v7 }
 0x2b0   :  { %v1712_v25 = vsel %vm1702_vm2, nan, %v1711_v59  ;;  %v3450_v55 = vmul.u32.u64.low %v3408_v39, %v1962_v38  ;;  %v3451_v58 = vmul.u32.u64.high %v3408_v39, %v1962_v38, %v3450_v55  ;;  %v2027_v0 = vmul.f32 %v2361_v53, %v2479_v17 }
 0x2b1   :  { %v1890_v28 = vshrl.u32 %v1872_v42, %v1888_v24  ;;  %v1893_v45 = vadd.s32 127, %v1892_v61  ;;  %vm2030_vm9 = vcmp.eq.f32.partialorder %v2479_v17, 0.0  ;;  %2366 = vrsqrt.f32 %v2481_v18 }
 0x2b2   :  { %v3458_v57 = vmul.f32 -2.0, %v3349_v40  ;;  %v1802_v60 = vsel %vm3384_vm14, 0, %v3401_v29  ;;  %v1974_v26 = vmul.u32 %v3408_v39, %v1958_v34  ;;  %v2029_v52 = vsel %vm2028_vm6, %v2479_v17, %v2027_v0 }
 0x2b3   :  { %v1891_v51 = vor.u32 %v1890_v28, %v1889_v62  ;;  %v1894_v42 = vshll.u32 %v1893_v45, 23  ;;  %vm1976_vm10 = vc.u32 %v3443_v44, %v3450_v55  ;;  %v2022_v49 = vmul.f32 %v1712_v25, %v3358_v22 }
 0x2b4   :  { %2368 = vlog2.f32 %v1565_v5  ;;  %v1586_v40 = vmul.f32 %v3410_v27, %v3325_v56  ;;  %v1977_v36 = vadd.s32 1, %v3451_v58  ;;  %v2032_v29 = vsel %vm2030_vm9, %v2031_v54, %v2029_v52 }
 0x2b5   :  { %vm1587_vm11 = vcmp.eq.f32.partialorder %v3325_v56, inf  ;;  %v1806_v39 = vand.u32 3, %v1802_v60  ;;  %v1895_v6 = vor.u32 4788187, %v1894_v42  ;;  %v1898_v50 = vcvt.s32.f32 %v1891_v51 }
 0x2b6   :  { %2370 = vrsqrt.f32 %v3458_v57  ;;  %v1978_v23 = vsel %vm1976_vm10, %v1977_v36, %v3451_v58  ;;  %vm1818_vm12 = vcmp.lt.s32.totalorder %v3161_v4, 0  ;;  %v2054_v5 = vmul.f32 %v2032_v29, %v2022_v49 }
 0x2b7   :  { %v1896_v22 = vand.u32 2147483647, %v1895_v6  ;;  %v1979_v46 = vadd.s32 %v1978_v23, %v1974_v26  ;;  %v1588_v10 = vsel %vm1587_vm11, %v3325_v56, %v1586_v40  ;;  %vm1589_vm13 = vcmp.eq.f32.partialorder %v3325_v56, 0.0 }
 0x2b8   :  { %v1590_v27 = vand.u32 2147483648, %v3325_v56  ;;  %vm3484_vm14 = vcmp.le.f32.partialorder %v1816_v37, 0.7853982  ;;  %vm1811_vm15 = vcmp.eq.s32.totalorder %v1806_v39, 2  ;;  %v2058_v7 = vadd.f32 %v2054_v5, %v2479_v17 }
 0x2b9   :  { %v2363_v12 = vpop.eup %2362  ;;  %v1899_v30 = vmul.f32 %v1898_v50, %v1896_v22  ;;  %v1980_v43 = vadd.s32 536870912, %v1979_v46  ;;  %vm1807_vm0 = vcmp.lt.s32.totalorder %v1806_v39, 2  ;;  %vm1808_vm1 = vcmp.eq.s32.totalorder %v1806_v39, 0 }
 0x2ba   :  { %v2365_v48 = vpop.eup %2364  ;;  %v1812_v35 = vxor.u32 2147483648, %v2363_v12  ;;  %2372 = vrsqrt.f32 %v2483_v19  ;;  %v2062_v37 = vadd.f32 0.5, %v2058_v7  ;;  %vm1805_vm2 = vweird.f32 %v3157_v15 }
 0x2bb   :  { %v1809_v32 = vxor.u32 2147483648, %v2365_v48  ;;  %v1900_v33 = vxor.u32 2147483648, %v1899_v30  ;;  %v3490_v8 = vshrl.u32 %v1980_v43, 30  ;;  %v1591_v2 = vsel %vm1589_vm13, %v1590_v27, %v1588_v10 }
 0x2bc   :  { %v1813_v53 = vsel %vm1811_vm15, %v1812_v35, %v2365_v48  ;;  %v1902_v63 = vsub.s32 4, %v3377_v20  ;;  %v2066_v24 = vfloor.f32 %v2062_v37  ;;  %vm2035_vm3 = vcmp.eq.f32.partialorder %v2481_v18, inf }
 0x2bd   :  { %v1810_v38 = vsel %vm1808_vm1, %v2363_v12, %v1809_v32  ;;  %v1901_v1 = vsel %vm1818_vm12, %v1900_v33, %v1899_v30  ;;  %v1982_v13 = vshll.u32 %v3490_v8, 30  ;;  %vm2037_vm4 = vcmp.eq.f32.partialorder %v2481_v18, 0.0 }
 0x2be   :  { %v2367_v16 = vpop.eup %2366  ;;  %v1814_v59 = vsel %vm1807_vm0, %v1810_v38, %v1813_v53  ;;  %v1904_v11 = vsel %vm3484_vm14, %v3161_v4, %v1901_v1  ;;  %v2038_v61 = vand.u32 2147483648, %v2481_v18  ;;  %v2070_v0 = vmax.f32 %v2066_v24, 0.0 }
 0x2bf   :  { %v1815_v15 = vsel %vm1805_vm2, nan, %v1814_v59  ;;  %2374 = vcosq.f32 %v1904_v11  ;;  %v3502_v56 = vsub.s32 %v1979_v46, %v1982_v13  ;;  %v2034_v62 = vmul.f32 %v2367_v16, %v2481_v18 }
 0x2c0   :  { %2376 = vsinq.f32 %v1904_v11  ;;  %v2023_v58 = vmul.f32 %v1815_v15, %v1591_v2  ;;  %vm2074_vm5 = vcmp.lt.f32.partialorder %v2479_v17, 8.0  ;;  %v1903_v28 = vsel %vm1818_vm12, %v1902_v63, %v3377_v20 }
 0x2c1   :  { %v2369_v34 = vpop.eup %2368  ;;  %v1985_v25 = vsub.s32 0, %v3502_v56  ;;  %v2036_v45 = vsel %vm2035_vm3, %v2481_v18, %v2034_v62  ;;  %v3515_v60 = vstv %s2499_s0  ;;  %v2078_v42 = vsel %vm2074_vm5, %v3144_v31, %v2070_v0 }
 0x2c2   :  { %v2039_v51 = vsel %vm2037_vm4, %v2038_v61, %v2036_v45  ;;  %v1905_v49 = vsel %vm3484_vm14, 0, %v1903_v28  ;;  %v2083_v17 = vmul.f32 %v3515_v60, %v2078_v42  ;;  %v3526_v20 = vstv %s3591_s2 }
 0x2c3   :  { %v2371_v26 = vpop.eup %2370  ;;  %v2242_v52 = vmin.u32 %v1985_v25, %v3502_v56  ;;  %v2055_v36 = vmul.f32 %v2039_v51, %v2023_v58  ;;  %vm1594_vm6 = vcmp.eq.f32.partialorder %v3458_v57, inf  ;;  %vm1908_vm7 = vweird.f32 %v3161_v4 }
 0x2c4   :  { %v1593_v29 = vmul.f32 %v2371_v26, %v3458_v57  ;;  %v2087_v50 = vmax.f32 %v2083_v17, 0.0  ;;  %v1573_v23 = vmul.f32 0.6931472, %v2369_v34  ;;  %vm1596_vm8 = vcmp.eq.f32.partialorder %v3458_v57, 0.0 }
 0x2c5   :  { %v1987_v40 = vclz %v2242_v52  ;;  %v2059_v6 = vadd.f32 %v2055_v36, %v2481_v18  ;;  %v1597_v22 = vand.u32 2147483648, %v3458_v57  ;;  %v1909_v46 = vand.u32 3, %v1905_v49 }
 0x2c6   :  { %v1975_v5 = vadd.s32 %v3450_v55, %v3443_v44  ;;  %v2092_v27 = vmin.f32 %v3526_v20, %v2087_v50  ;;  %v1595_v54 = vsel %vm1594_vm6, %v3458_v57, %v1593_v29  ;;  %vm2042_vm10 = vcmp.eq.f32.partialorder %v2483_v19, inf }
 0x2c7   :  { %v2373_v39 = vpop.eup %2372  ;;  %v2243_v31 = vadd.s32 4294967294, %v1987_v40  ;;  %v2063_v10 = vadd.f32 0.5, %v2059_v6  ;;  %vm1910_vm11 = vcmp.lt.s32.totalorder %v1909_v46, 2  ;;  %vm1911_vm12 = vcmp.eq.s32.totalorder %v1909_v46, 0 }
 0x2c8   :  { %v2041_v30 = vmul.f32 %v2373_v39, %v2483_v19  ;;  %2098 = vst [vmem:[#allocation8] sm:$0xff] %v2092_v27  ;;  %vm1914_vm13 = vcmp.eq.s32.totalorder %v1909_v46, 2  ;;  %vm2075_vm14 = vcmp.lt.f32.partialorder %v2481_v18, 8.0  ;;  %vm2044_vm15 = vcmp.eq.f32.partialorder %v2483_v19, 0.0 }
 0x2c9   :  { %vm2244_vm9 = vcmp.lt.s32.totalorder %v2243_v31, 0  ;;  %v2067_v35 = vfloor.f32 %v2063_v10  ;;  %v2045_v1 = vand.u32 2147483648, %v2483_v19  ;;  %v1598_v18 = vsel %vm1596_vm8, %v1597_v22, %v1595_v54 }
 0x2ca   :  { %v1990_v12 = vsel %vm2244_vm9, 0, %v2243_v31  ;;  %v2043_v38 = vsel %vm2042_vm10, %v2483_v19, %v2041_v30  ;;  %v1577_v15 = vmul.f32 -2.0, %v1573_v23  ;;  %vm1921_vm0 = vcmp.lt.s32.totalorder %v3215_v41, 0 }
 0x2cb   :  { %v1991_v43 = vsub.s32 32, %v1990_v12  ;;  %v1992_v7 = vshll.u32 %v3502_v56, %v1990_v12  ;;  %v1995_v48 = vsub.s32 4294967266, %v1990_v12  ;;  %v2071_v53 = vmax.f32 %v2067_v35, 0.0 }
 0x2cc   :  { %v2375_v32 = vpop.eup %2374  ;;  %v2046_v25 = vsel %vm2044_vm15, %v2045_v1, %v2043_v38  ;;  %2378 = vrsqrt.f32 %v1577_v15  ;;  %vm3558_vm1 = vcmp.le.f32.partialorder %v1919_v3, 0.7853982  ;;  %v2005_v49 = vsub.s32 4, %v3490_v8 }
 0x2cd   :  { %v2377_v44 = vpop.eup %2376  ;;  %v1915_v55 = vxor.u32 2147483648, %v2375_v32  ;;  %v1993_v33 = vshrl.u32 %v1975_v5, %v1991_v43  ;;  %v1996_v37 = vadd.s32 127, %v1995_v48  ;;  %v2079_v63 = vsel %vm2075_vm14, %v3146_v47, %v2071_v53 }
 0x2ce   :  { %v1912_v2 = vxor.u32 2147483648, %v2377_v44  ;;  %v2084_v24 = vmul.f32 %v3515_v60, %v2079_v63  ;;  %2380 = vrsqrt.f32 %v2485_v21  ;;  %vm2076_vm2 = vcmp.lt.f32.partialorder %v2483_v19, 8.0 }
 0x2cf   :  { %v1916_v13 = vsel %vm1914_vm13, %v1915_v55, %v2377_v44  ;;  %v1994_v16 = vor.u32 %v1993_v33, %v1992_v7  ;;  %v1997_v59 = vshll.u32 %v1996_v37, 23  ;;  %v2006_v17 = vsel %vm1921_vm0, %v2005_v49, %v3490_v8 }
 0x2d0   :  { %v1913_v11 = vsel %vm1911_vm12, %v2375_v32, %v1912_v2  ;;  %v2088_v58 = vmax.f32 %v2084_v24, 0.0  ;;  %v2008_v31 = vsel %vm3558_vm1, 0, %v2006_v17  ;;  %vm1601_vm3 = vcmp.eq.f32.partialorder %v1577_v15, inf }
 0x2d1   :  { %v1917_v56 = vsel %vm1910_vm11, %v1913_v11, %v1916_v13  ;;  %v1998_v62 = vor.u32 4788187, %v1997_v59  ;;  %v2001_v61 = vcvt.s32.f32 %v1994_v16  ;;  %v2012_v22 = vand.u32 3, %v2008_v31 }
 0x2d2   :  { %v1918_v34 = vsel %vm1908_vm7, nan, %v1917_v56  ;;  %v2093_v47 = vmin.f32 %v3526_v20, %v2088_v58  ;;  %v1604_v8 = vand.u32 2147483648, %v1577_v15  ;;  %vm2049_vm5 = vcmp.eq.f32.partialorder %v2485_v21, inf }
 0x2d3   :  { %v1999_v0 = vand.u32 2147483647, %v1998_v62  ;;  %v2024_v28 = vmul.f32 %v1918_v34, %v1598_v18  ;;  %vm2017_vm4 = vcmp.eq.s32.totalorder %v2012_v22, 2  ;;  %vm1603_vm6 = vcmp.eq.f32.partialorder %v1577_v15, 0.0 }
 0x2d4   :  { %2099 = vst [vmem:[#allocation8 + $0x8] sm:$0xff] %v2093_v47  ;;  %vm2014_vm7 = vcmp.eq.s32.totalorder %v2012_v22, 0  ;;  %vm2013_vm8 = vcmp.lt.s32.totalorder %v2012_v22, 2  ;;  %v2052_v30 = vand.u32 2147483648, %v2485_v21  ;;  %vm2011_vm9 = vweird.f32 %v3215_v41 }
 0x2d5   :  { %v2002_v57 = vmul.f32 %v2001_v61, %v1999_v0  ;;  %v2056_v45 = vmul.f32 %v2046_v25, %v2024_v28  ;;  %vm2051_vm10 = vcmp.eq.f32.partialorder %v2485_v21, 0.0  ;;  %vm2077_vm11 = vcmp.lt.f32.partialorder %v2485_v21, 8.0 }
 0x2d7   :  { %v2003_v4 = vxor.u32 2147483648, %v2002_v57  ;;  %v2060_v52 = vadd.f32 %v2056_v45, %v2483_v19 }
 0x2d9   :  { %v2004_v51 = vsel %vm1921_vm0, %v2003_v4, %v2002_v57  ;;  %v2064_v42 = vadd.f32 0.5, %v2060_v52  ;;  %v2379_v6 = vpop.eup %2378 }
 0x2da   :  { %v2007_v40 = vsel %vm3558_vm1, %v3215_v41, %v2004_v51  ;;  %v1600_v5 = vmul.f32 %v2379_v6, %v1577_v15 }
 0x2db   :  { %2382 = vcosq.f32 %v2007_v40  ;;  %v2068_v36 = vfloor.f32 %v2064_v42  ;;  %v2381_v23 = vpop.eup %2380 }
 0x2dc   :  { %2384 = vsinq.f32 %v2007_v40  ;;  %v2048_v19 = vmul.f32 %v2381_v23, %v2485_v21  ;;  %v1602_v27 = vsel %vm1601_vm3, %v1577_v15, %v1600_v5 }
 0x2dd   :  { %v2072_v3 = vmax.f32 %v2068_v36, 0.0  ;;  %v1605_v48 = vsel %vm1603_vm6, %v1604_v8, %v1602_v27 }
 0x2de   :  { %v2050_v7 = vsel %vm2049_vm5, %v2485_v21, %v2048_v19 }
 0x2df   :  { %v2080_v29 = vsel %vm2076_vm2, %v3148_v14, %v2072_v3  ;;  %v2053_v55 = vsel %vm2051_vm10, %v2052_v30, %v2050_v7 }
 0x2e0   :  { %v2085_v39 = vmul.f32 %v3515_v60, %v2080_v29 }
 0x2e2   :  { %v2089_v50 = vmax.f32 %v2085_v39, 0.0 }
 0x2e4   :  { %v2094_v46 = vmin.f32 %v3526_v20, %v2089_v50 }
 0x2e6   :  { %2100 = vst [vmem:[#allocation8 + $0x10] sm:$0xff] %v2094_v46 }
 0x2e8   :  { %v2383_v10 = vpop.eup %2382 }
 0x2e9   :  { %v2385_v14 = vpop.eup %2384  ;;  %v2018_v54 = vxor.u32 2147483648, %v2383_v10 }
 0x2ea   :  { %v2015_v12 = vxor.u32 2147483648, %v2385_v14 }
 0x2eb   :  { %v2019_v43 = vsel %vm2017_vm4, %v2018_v54, %v2385_v14 }
 0x2ec   :  { %v2016_v35 = vsel %vm2014_vm7, %v2383_v10, %v2015_v12 }
 0x2ed   :  { %v2020_v32 = vsel %vm2013_vm8, %v2016_v35, %v2019_v43 }
 0x2ee   :  { %v2021_v44 = vsel %vm2011_vm9, nan, %v2020_v32 }
 0x2ef   :  { %v2025_v33 = vmul.f32 %v2021_v44, %v1605_v48 }
 0x2f1   :  { %v2057_v37 = vmul.f32 %v2053_v55, %v2025_v33 }
 0x2f3   :  { %v2061_v53 = vadd.f32 %v2057_v37, %v2485_v21 }
 0x2f5   :  { %v2065_v2 = vadd.f32 0.5, %v2061_v53 }
 0x2f7   :  { %v2069_v38 = vfloor.f32 %v2065_v2 }
 0x2f9   :  { %v2073_v1 = vmax.f32 %v2069_v38, 0.0 }
 0x2fb   :  { %v2081_v41 = vsel %vm2077_vm11, %v3150_v9, %v2073_v1 }
 0x2fc   :  { %v2086_v13 = vmul.f32 %v3515_v60, %v2081_v41 }
 0x2fe   :  { %v2090_v16 = vmax.f32 %v2086_v13, 0.0 }
 0x300   :  { %v2095_v59 = vmin.f32 %v3526_v20, %v2090_v16 }
 0x302   :  { %2101 = vst [vmem:[#allocation8 + $0x18] sm:$0xff] %v2095_v59 }
 0x303 PF:  { %s2444_s2 = smov [#allocation8]  }
 0x304   :  { %s2108_s28 = sshll.u32 %s2444_s2, 4  ;;  %s2109_s28 = int_to_ptr.vmem [resolvable:$true] %s2108_s28 }
 0x305   :  { %s2406_s29 = scalar_lea.vmem %s2109_s28, 512  ;;  %p2411_p7 = scmp.lt.s32.totalorder %s2109_s28, %s2109_s28 }
 0x306   :  { %p2407_p6 = scmp.ne.s32.totalorder %s2109_s28, %s2406_s29  ;;  %p2412_p8 = scmp.lt.s32.totalorder %s2406_s29, %s2406_s29 }
 0x308   :  { %p2413_p9 = por %p2412_p8, %p2411_p7 }
 0x30a   :  { %p2414_p10 = pnand %p2413_p9, %p2407_p6 }
 0x30c   :  { %2417 = shalt.err (!%p2414_p10)
}
 0x30d   :  { %2111 = dma.vmem_to_hbm [thread:$0]  %s2109_s28, 512, %s3593_s4, [#allocation7]  }
 0x30e   :  { %2428 = dma.done.wait [#allocation7], 512  }
 0x30f   :  { %2429 = vsyncadd [#allocation7], 4294966784 }
 0x310   :  { %2115 = vsyncpa [#allocation6], 1 }
 0x311   :  { %2116 = vsyncpa [#allocation7], 1 }

</bundles_post_ra>
